<compile_context>
chip_gen: v6e
topology: v6e:2x2x1
jax: 0.10.0
libtpu: 0.0.40
codegen_flags: <defaults>
</compile_context>

<pallas_src>
import functools

import jax
import jax.numpy as jnp
from jax import lax
from jax.experimental import pallas as pl
from jax.experimental.pallas import tpu as pltpu

N_EMBD = 384
BLOCK_SIZE = 256


def _fused_mha_kernel(x_ref, wqkv_ref, wp_ref, bp_ref, o_ref, qkv_ref, att_ref, *,
                      num_heads, head_size):
    """One batch element: fused QKV projection + H causal attention heads +
    head concat + output projection, entirely in VMEM (no HBM intermediates)."""
    H, hs = num_heads, head_size
    Hhs = H * hs
    T = x_ref.shape[0]
    cdt = qkv_ref.dtype                       # compute dtype (bf16 on the perf path)

    # Single wide QKV matmul: (T, C) @ (C, 3*H*hs), compute-dtype operands on the
    # MXU, f32 accumulation; park the result in a compute-dtype VMEM scratch so the
    # per-head operands below are narrow ref loads, not register slices.
    x = x_ref[...]                                                    # (T, C) cdt
    qkv = jnp.dot(x, wqkv_ref[...], preferred_element_type=jnp.float32)
    qkv_ref[...] = qkv.astype(cdt)

    # Hoisted constants: causal mask + ones column for the MXU-side softmax sum.
    row = lax.broadcasted_iota(jnp.int32, (T, T), 0)
    col = lax.broadcasted_iota(jnp.int32, (T, T), 1)
    causal = col <= row
    ones_col = jnp.ones((T, 1), dtype=cdt)

    for h in range(H):                        # static unroll, H is small
        # Static-offset (multiples of hs) loads from the QKV scratch ref.
        # Softmax scale is already folded into the packed Q weights.
        q = qkv_ref[:, h * hs:(h + 1) * hs]                           # (T, hs) cdt
        k = qkv_ref[:, Hhs + h * hs:Hhs + (h + 1) * hs]               # (T, hs) cdt
        v = qkv_ref[:, 2 * Hhs + h * hs:2 * Hhs + (h + 1) * hs]       # (T, hs) cdt

        # Scores: contract last dims directly (no explicit k.T materialization);
        # compute-dtype operands, f32 accumulation.
        wei = lax.dot_general(q, k, (((1,), (1,)), ((), ())),
                              preferred_element_type=jnp.float32)     # (T, T) f32
        # Large-finite mask: identical result to -inf here (diagonal always
        # unmasked) but NaN-safe if ever reused with other masks.
        wei = jnp.where(causal, wei, -1e30)

        # Softmax elementwise math in f32 (max on XLU, exp on EUP).
        m = jnp.max(wei, axis=-1, keepdims=True)
        e = jnp.exp(wei - m)
        p = e.astype(cdt)                                             # MXU operand

        # Numerator and denominator both from the MXU; normalize AFTER p@v so the
        # divide touches T*hs elements, via the EUP reciprocal (free slot).
        acc = jnp.dot(p, v, preferred_element_type=jnp.float32)       # (T, hs) f32
        denom = jnp.dot(p, ones_col, preferred_element_type=jnp.float32)  # (T, 1)
        out_h = acc * pl.reciprocal(denom, approx=True)

        # Head "concat" = columnwise store into the (T, C) attention scratch.
        att_ref[:, h * hs:(h + 1) * hs] = out_h.astype(cdt)

    # Output projection from the scratch: compute-dtype operands, f32 accumulate,
    # f32 bias add, lane-dense (T, 384) store.
    out = jnp.dot(att_ref[...], wp_ref[...], preferred_element_type=jnp.float32)
    out = out + bp_ref[...]
    o_ref[...] = out.astype(o_ref.dtype)


def multi_head_attention(x, wqkv, wp_t, bp, *, num_heads,
                         compute_dtype=jnp.bfloat16):
    """x: (B, T, C); wqkv: (C, 3*C) stacked [Q heads | K heads | V heads] with the
    softmax scale pre-folded into the Q block; wp_t: (C, C) pre-transposed
    projection weight; bp: (1, C). Matmuls run in `compute_dtype` on the MXU with
    f32 accumulation; output keeps x.dtype."""
    B, T, C = x.shape
    head_size = C // num_heads
    out_dtype = x.dtype

    # Cast once at the boundary: halves x's DMA traffic for bf16 and puts every
    # matmul on the MXU's native low-precision path. Bias stays f32 (added to the
    # f32 accumulator).
    xc = x.astype(compute_dtype)
    wqkv_c = wqkv.astype(compute_dtype)
    wp_c = wp_t.astype(compute_dtype)
    bp_f32 = bp.astype(jnp.float32)

    kernel = functools.partial(_fused_mha_kernel, num_heads=num_heads,
                               head_size=head_size)
    return pl.pallas_call(
        kernel,
        out_shape=jax.ShapeDtypeStruct((B, T, C), out_dtype),
        grid_spec=pltpu.PrefetchScalarGridSpec(
            num_scalar_prefetch=0,
            grid=(B,),
            in_specs=[
                pl.BlockSpec((None, T, C), lambda b: (b, 0, 0)),    # x: one batch row
                pl.BlockSpec((C, 3 * C), lambda b: (0, 0)),         # Wqkv: VMEM-resident
                pl.BlockSpec((C, C), lambda b: (0, 0)),             # Wp^T: VMEM-resident
                pl.BlockSpec((1, C), lambda b: (0, 0)),             # bias: VMEM-resident
            ],
            out_specs=pl.BlockSpec((None, T, C), lambda b: (b, 0, 0)),
            scratch_shapes=[
                pltpu.VMEM((T, 3 * C), compute_dtype),               # QKV parking
                pltpu.VMEM((T, C), compute_dtype),                   # head-concat
            ],
        ),
        compiler_params=pltpu.CompilerParams(
            dimension_semantics=("parallel",),        # B>=2 shards across 2 TCs
            vmem_limit_bytes=32 * 1024 * 1024,        # explicit budget (v5e default is 16 MiB)
        ),
    )(xc, wqkv_c, wp_c, bp_f32)


def pack_qkv_weights(wq, wk, wv, *, scale):
    """wq/wk/wv: (H, C, hs) per-head weights (already in x@W layout) -> (C, 3*H*hs).
    The softmax scale is folded into the Q block (exact, in f32, at pack time)."""
    H, C, hs = wq.shape

    def flat(w):
        return jnp.transpose(w, (1, 0, 2)).reshape(C, H * hs)

    return jnp.concatenate([flat(wq) * scale, flat(wk), flat(wv)], axis=-1)


# ---------------------------------------------------------------------------
# Pure-JAX reference for sanity checking (mirrors the torch module in eval mode).
# ---------------------------------------------------------------------------
def reference(x, wq, wk, wv, wp_t, bp):
    B, T, C = x.shape
    scale = float(C) ** (-0.5)
    mask = jnp.tril(jnp.ones((T, T), dtype=bool))
    heads = []
    for h in range(wq.shape[0]):
        q = x @ wq[h]
        k = x @ wk[h]
        v = x @ wv[h]
        wei = (q @ jnp.swapaxes(k, -2, -1)) * scale
        wei = jnp.where(mask, wei, -jnp.inf)
        wei = jax.nn.softmax(wei, axis=-1)
        heads.append(wei @ v)
    cat = jnp.concatenate(heads, axis=-1)
    return cat @ wp_t + bp


if __name__ == "__main__":
    # Small but module-consistent shapes: C must equal N_EMBD = 384.
    B, T = 2, 64
    NUM_HEADS, HEAD_SIZE = 6, 64          # 6 * 64 == N_EMBD
    assert NUM_HEADS * HEAD_SIZE == N_EMBD and T <= BLOCK_SIZE

    key = jax.random.PRNGKey(0)
    kx, kq, kk, kv, kp, kb = jax.random.split(key, 6)

    x = jax.random.normal(kx, (B, T, N_EMBD), dtype=jnp.float32)

    # nn.Linear weights, pre-transposed to x @ W layout.
    wq = jax.random.normal(kq, (NUM_HEADS, N_EMBD, HEAD_SIZE), jnp.float32) * 0.02
    wk = jax.random.normal(kk, (NUM_HEADS, N_EMBD, HEAD_SIZE), jnp.float32) * 0.02
    wv = jax.random.normal(kv, (NUM_HEADS, N_EMBD, HEAD_SIZE), jnp.float32) * 0.02
    wp_t = jax.random.normal(kp, (N_EMBD, N_EMBD), jnp.float32) * 0.02   # W_proj^T
    bp = jax.random.normal(kb, (1, N_EMBD), jnp.float32) * 0.02

    scale = float(N_EMBD) ** (-0.5)        # matches torch: C from x.shape == N_EMBD
    wqkv = pack_qkv_weights(wq, wk, wv, scale=scale)

    ref = reference(x, wq, wk, wv, wp_t, bp)

    # f32 compute path: tight check (only approx-reciprocal / accumulation-order drift).
    out_f32 = multi_head_attention(x, wqkv, wp_t, bp, num_heads=NUM_HEADS,
                                   compute_dtype=jnp.float32)
    out_f32 = jax.block_until_ready(out_f32)
    assert out_f32.shape == (B, T, N_EMBD)
    assert jnp.allclose(out_f32, ref, atol=5e-3, rtol=5e-3), "f32 path mismatch vs reference"

    # bf16 compute path (default perf path on bf16-native MXUs): loose check.
    out_bf16 = multi_head_attention(x, wqkv, wp_t, bp, num_heads=NUM_HEADS)
    out_bf16 = jax.block_until_ready(out_bf16)
    assert out_bf16.shape == (B, T, N_EMBD)
    assert jnp.allclose(out_bf16, ref, atol=7.5e-2, rtol=7.5e-2), "bf16 path mismatch vs reference"

    print("KERNEL_OK")
</pallas_src>

<mosaic_0001>
module attributes {stable_mosaic.version = 11 : i64} {
  func.func @_fused_mha_kernel(%arg0: i32, %arg1: memref<1x64x384xf32, #tpu.memory_space<vmem>>, %arg2: memref<384x1152xf32, #tpu.memory_space<vmem>>, %arg3: memref<384x384xf32, #tpu.memory_space<vmem>>, %arg4: memref<1x384xf32, #tpu.memory_space<vmem>>, %arg5: memref<1x64x384xf32, #tpu.memory_space<vmem>>, %arg6: memref<64x1152xf32, #tpu.memory_space<vmem>>, %arg7: memref<64x384xf32, #tpu.memory_space<vmem>>) attributes {dimension_semantics = [#tpu.dimension_semantics<parallel>], iteration_bounds = array<i64: 2>, scalar_prefetch = 0 : i64, scratch_operands = 2 : i64, tpu.core_type = #tpu.core_type<tc>, window_params = [{transform_indices = @transform_0, window_bounds = array<i64: 1, 64, 384>}, {pipeline_mode = #tpu.pipeline_mode<synchronous>, transform_indices = @transform_1, window_bounds = array<i64: 384, 1152>}, {pipeline_mode = #tpu.pipeline_mode<synchronous>, transform_indices = @transform_2, window_bounds = array<i64: 384, 384>}, {pipeline_mode = #tpu.pipeline_mode<synchronous>, transform_indices = @transform_3, window_bounds = array<i64: 1, 384>}, {transform_indices = @transform_4, window_bounds = array<i64: 1, 64, 384>}]} {
    %c0 = arith.constant 0 : index
    %c0_0 = arith.constant 0 : index
    %c0_1 = arith.constant 0 : index
    %0 = vector.load %arg1[%c0, %c0_0, %c0_1] : memref<1x64x384xf32, #tpu.memory_space<vmem>>, vector<1x64x384xf32>
    %1 = vector.shape_cast %0 : vector<1x64x384xf32> to vector<64x384xf32>
    %c0_2 = arith.constant 0 : index
    %c0_3 = arith.constant 0 : index
    %2 = vector.load %arg2[%c0_2, %c0_3] : memref<384x1152xf32, #tpu.memory_space<vmem>>, vector<384x1152xf32>
    %cst = arith.constant dense<0.000000e+00> : vector<64x1152xf32>
    %3 = tpu.matmul %1, %2, %cst {dimension_numbers = #tpu.dot_dimension_numbers<[1], [0], [0], [1], [0, 0, 1, 1], [], []>} : vector<64x384xf32>, vector<384x1152xf32>, vector<64x1152xf32> -> vector<64x1152xf32>
    %c0_4 = arith.constant 0 : index
    %c0_5 = arith.constant 0 : index
    %4 = vector.load %arg6[%c0_4, %c0_5] : memref<64x1152xf32, #tpu.memory_space<vmem>>, vector<64x1152xf32>
    tpu.vector_store %arg6[%c0_4, %c0_5], %3 {strides = array<i32>} : memref<64x1152xf32, #tpu.memory_space<vmem>>, vector<64x1152xf32>,
    %5 = tpu.iota {dimensions = array<i32: 0>} : vector<64x64xi32>
    %6 = tpu.iota {dimensions = array<i32: 1>} : vector<64x64xi32>
    %7 = arith.cmpi sle, %6, %5 : vector<64x64xi32>
    %cst_6 = arith.constant 1.000000e+00 : f32
    %8 = vector.broadcast %cst_6 : f32 to vector<64x1xf32>
    %c0_7 = arith.constant 0 : index
    %c0_8 = arith.constant 0 : index
    %9 = vector.load %arg6[%c0_7, %c0_8] : memref<64x1152xf32, #tpu.memory_space<vmem>>, vector<64x64xf32>
    %c0_9 = arith.constant 0 : index
    %c384 = arith.constant 384 : index
    %10 = vector.load %arg6[%c0_9, %c384] : memref<64x1152xf32, #tpu.memory_space<vmem>>, vector<64x64xf32>
    %c0_10 = arith.constant 0 : index
    %c768 = arith.constant 768 : index
    %11 = vector.load %arg6[%c0_10, %c768] : memref<64x1152xf32, #tpu.memory_space<vmem>>, vector<64x64xf32>
    %cst_11 = arith.constant dense<0.000000e+00> : vector<64x64xf32>
    %12 = tpu.matmul %9, %10, %cst_11 {dimension_numbers = #tpu.dot_dimension_numbers<[1], [1], [0], [0], [0, 0, 1, 0], [], []>} : vector<64x64xf32>, vector<64x64xf32>, vector<64x64xf32> -> vector<64x64xf32>
    %cst_12 = arith.constant -1.000000e+30 : f32
    %13 = vector.broadcast %cst_12 : f32 to vector<64x64xf32>
    %14 = arith.select %7, %12, %13 : vector<64x64xi1>, vector<64x64xf32>
    %cst_13 = arith.constant dense<0xFF800000> : vector<64xf32>
    %15 = vector.multi_reduction <maximumf>, %14, %cst_13 [1] : vector<64x64xf32> to vector<64xf32>
    %16 = vector.shape_cast %15 : vector<64xf32> to vector<64x1xf32>
    %17 = vector.broadcast %16 : vector<64x1xf32> to vector<64x64xf32>
    %18 = arith.subf %14, %17 : vector<64x64xf32>
    %19 = math.exp %18 : vector<64x64xf32>
    %cst_14 = arith.constant dense<0.000000e+00> : vector<64x64xf32>
    %20 = tpu.matmul %19, %11, %cst_14 {dimension_numbers = #tpu.dot_dimension_numbers<[1], [0], [0], [1], [0, 0, 1, 1], [], []>} : vector<64x64xf32>, vector<64x64xf32>, vector<64x64xf32> -> vector<64x64xf32>
    %cst_15 = arith.constant dense<0.000000e+00> : vector<64x1xf32>
    %21 = tpu.matmul %19, %8, %cst_15 {dimension_numbers = #tpu.dot_dimension_numbers<[1], [0], [0], [1], [0, 0, 1, 1], [], []>} : vector<64x64xf32>, vector<64x1xf32>, vector<64x1xf32> -> vector<64x1xf32>
    %22 = tpu.reciprocal %21 {approx = true} : vector<64x1xf32> -> vector<64x1xf32>
    %23 = vector.broadcast %22 : vector<64x1xf32> to vector<64x64xf32>
    %24 = arith.mulf %20, %23 : vector<64x64xf32>
    %c0_16 = arith.constant 0 : index
    %c0_17 = arith.constant 0 : index
    %25 = vector.load %arg7[%c0_16, %c0_17] : memref<64x384xf32, #tpu.memory_space<vmem>>, vector<64x64xf32>
    tpu.vector_store %arg7[%c0_16, %c0_17], %24 {strides = array<i32>} : memref<64x384xf32, #tpu.memory_space<vmem>>, vector<64x64xf32>,
    %c0_18 = arith.constant 0 : index
    %c64 = arith.constant 64 : index
    %26 = vector.load %arg6[%c0_18, %c64] : memref<64x1152xf32, #tpu.memory_space<vmem>>, vector<64x64xf32>
    %c0_19 = arith.constant 0 : index
    %c448 = arith.constant 448 : index
    %27 = vector.load %arg6[%c0_19, %c448] : memref<64x1152xf32, #tpu.memory_space<vmem>>, vector<64x64xf32>
    %c0_20 = arith.constant 0 : index
    %c832 = arith.constant 832 : index
    %28 = vector.load %arg6[%c0_20, %c832] : memref<64x1152xf32, #tpu.memory_space<vmem>>, vector<64x64xf32>
    %cst_21 = arith.constant dense<0.000000e+00> : vector<64x64xf32>
    %29 = tpu.matmul %26, %27, %cst_21 {dimension_numbers = #tpu.dot_dimension_numbers<[1], [1], [0], [0], [0, 0, 1, 0], [], []>} : vector<64x64xf32>, vector<64x64xf32>, vector<64x64xf32> -> vector<64x64xf32>
    %cst_22 = arith.constant -1.000000e+30 : f32
    %30 = vector.broadcast %cst_22 : f32 to vector<64x64xf32>
    %31 = arith.select %7, %29, %30 : vector<64x64xi1>, vector<64x64xf32>
    %cst_23 = arith.constant dense<0xFF800000> : vector<64xf32>
    %32 = vector.multi_reduction <maximumf>, %31, %cst_23 [1] : vector<64x64xf32> to vector<64xf32>
    %33 = vector.shape_cast %32 : vector<64xf32> to vector<64x1xf32>
    %34 = vector.broadcast %33 : vector<64x1xf32> to vector<64x64xf32>
    %35 = arith.subf %31, %34 : vector<64x64xf32>
    %36 = math.exp %35 : vector<64x64xf32>
    %cst_24 = arith.constant dense<0.000000e+00> : vector<64x64xf32>
    %37 = tpu.matmul %36, %28, %cst_24 {dimension_numbers = #tpu.dot_dimension_numbers<[1], [0], [0], [1], [0, 0, 1, 1], [], []>} : vector<64x64xf32>, vector<64x64xf32>, vector<64x64xf32> -> vector<64x64xf32>
    %cst_25 = arith.constant dense<0.000000e+00> : vector<64x1xf32>
    %38 = tpu.matmul %36, %8, %cst_25 {dimension_numbers = #tpu.dot_dimension_numbers<[1], [0], [0], [1], [0, 0, 1, 1], [], []>} : vector<64x64xf32>, vector<64x1xf32>, vector<64x1xf32> -> vector<64x1xf32>
    %39 = tpu.reciprocal %38 {approx = true} : vector<64x1xf32> -> vector<64x1xf32>
    %40 = vector.broadcast %39 : vector<64x1xf32> to vector<64x64xf32>
    %41 = arith.mulf %37, %40 : vector<64x64xf32>
    %c0_26 = arith.constant 0 : index
    %c64_27 = arith.constant 64 : index
    %42 = vector.load %arg7[%c0_26, %c64_27] : memref<64x384xf32, #tpu.memory_space<vmem>>, vector<64x64xf32>
    tpu.vector_store %arg7[%c0_26, %c64_27], %41 {strides = array<i32>} : memref<64x384xf32, #tpu.memory_space<vmem>>, vector<64x64xf32>,
    %c0_28 = arith.constant 0 : index
    %c128 = arith.constant 128 : index
    %43 = vector.load %arg6[%c0_28, %c128] : memref<64x1152xf32, #tpu.memory_space<vmem>>, vector<64x64xf32>
    %c0_29 = arith.constant 0 : index
    %c512 = arith.constant 512 : index
    %44 = vector.load %arg6[%c0_29, %c512] : memref<64x1152xf32, #tpu.memory_space<vmem>>, vector<64x64xf32>
    %c0_30 = arith.constant 0 : index
    %c896 = arith.constant 896 : index
    %45 = vector.load %arg6[%c0_30, %c896] : memref<64x1152xf32, #tpu.memory_space<vmem>>, vector<64x64xf32>
    %cst_31 = arith.constant dense<0.000000e+00> : vector<64x64xf32>
    %46 = tpu.matmul %43, %44, %cst_31 {dimension_numbers = #tpu.dot_dimension_numbers<[1], [1], [0], [0], [0, 0, 1, 0], [], []>} : vector<64x64xf32>, vector<64x64xf32>, vector<64x64xf32> -> vector<64x64xf32>
    %cst_32 = arith.constant -1.000000e+30 : f32
    %47 = vector.broadcast %cst_32 : f32 to vector<64x64xf32>
    %48 = arith.select %7, %46, %47 : vector<64x64xi1>, vector<64x64xf32>
    %cst_33 = arith.constant dense<0xFF800000> : vector<64xf32>
    %49 = vector.multi_reduction <maximumf>, %48, %cst_33 [1] : vector<64x64xf32> to vector<64xf32>
    %50 = vector.shape_cast %49 : vector<64xf32> to vector<64x1xf32>
    %51 = vector.broadcast %50 : vector<64x1xf32> to vector<64x64xf32>
    %52 = arith.subf %48, %51 : vector<64x64xf32>
    %53 = math.exp %52 : vector<64x64xf32>
    %cst_34 = arith.constant dense<0.000000e+00> : vector<64x64xf32>
    %54 = tpu.matmul %53, %45, %cst_34 {dimension_numbers = #tpu.dot_dimension_numbers<[1], [0], [0], [1], [0, 0, 1, 1], [], []>} : vector<64x64xf32>, vector<64x64xf32>, vector<64x64xf32> -> vector<64x64xf32>
    %cst_35 = arith.constant dense<0.000000e+00> : vector<64x1xf32>
    %55 = tpu.matmul %53, %8, %cst_35 {dimension_numbers = #tpu.dot_dimension_numbers<[1], [0], [0], [1], [0, 0, 1, 1], [], []>} : vector<64x64xf32>, vector<64x1xf32>, vector<64x1xf32> -> vector<64x1xf32>
    %56 = tpu.reciprocal %55 {approx = true} : vector<64x1xf32> -> vector<64x1xf32>
    %57 = vector.broadcast %56 : vector<64x1xf32> to vector<64x64xf32>
    %58 = arith.mulf %54, %57 : vector<64x64xf32>
    %c0_36 = arith.constant 0 : index
    %c128_37 = arith.constant 128 : index
    %59 = vector.load %arg7[%c0_36, %c128_37] : memref<64x384xf32, #tpu.memory_space<vmem>>, vector<64x64xf32>
    tpu.vector_store %arg7[%c0_36, %c128_37], %58 {strides = array<i32>} : memref<64x384xf32, #tpu.memory_space<vmem>>, vector<64x64xf32>,
    %c0_38 = arith.constant 0 : index
    %c192 = arith.constant 192 : index
    %60 = vector.load %arg6[%c0_38, %c192] : memref<64x1152xf32, #tpu.memory_space<vmem>>, vector<64x64xf32>
    %c0_39 = arith.constant 0 : index
    %c576 = arith.constant 576 : index
    %61 = vector.load %arg6[%c0_39, %c576] : memref<64x1152xf32, #tpu.memory_space<vmem>>, vector<64x64xf32>
    %c0_40 = arith.constant 0 : index
    %c960 = arith.constant 960 : index
    %62 = vector.load %arg6[%c0_40, %c960] : memref<64x1152xf32, #tpu.memory_space<vmem>>, vector<64x64xf32>
    %cst_41 = arith.constant dense<0.000000e+00> : vector<64x64xf32>
    %63 = tpu.matmul %60, %61, %cst_41 {dimension_numbers = #tpu.dot_dimension_numbers<[1], [1], [0], [0], [0, 0, 1, 0], [], []>} : vector<64x64xf32>, vector<64x64xf32>, vector<64x64xf32> -> vector<64x64xf32>
    %cst_42 = arith.constant -1.000000e+30 : f32
    %64 = vector.broadcast %cst_42 : f32 to vector<64x64xf32>
    %65 = arith.select %7, %63, %64 : vector<64x64xi1>, vector<64x64xf32>
    %cst_43 = arith.constant dense<0xFF800000> : vector<64xf32>
    %66 = vector.multi_reduction <maximumf>, %65, %cst_43 [1] : vector<64x64xf32> to vector<64xf32>
    %67 = vector.shape_cast %66 : vector<64xf32> to vector<64x1xf32>
    %68 = vector.broadcast %67 : vector<64x1xf32> to vector<64x64xf32>
    %69 = arith.subf %65, %68 : vector<64x64xf32>
    %70 = math.exp %69 : vector<64x64xf32>
    %cst_44 = arith.constant dense<0.000000e+00> : vector<64x64xf32>
    %71 = tpu.matmul %70, %62, %cst_44 {dimension_numbers = #tpu.dot_dimension_numbers<[1], [0], [0], [1], [0, 0, 1, 1], [], []>} : vector<64x64xf32>, vector<64x64xf32>, vector<64x64xf32> -> vector<64x64xf32>
    %cst_45 = arith.constant dense<0.000000e+00> : vector<64x1xf32>
    %72 = tpu.matmul %70, %8, %cst_45 {dimension_numbers = #tpu.dot_dimension_numbers<[1], [0], [0], [1], [0, 0, 1, 1], [], []>} : vector<64x64xf32>, vector<64x1xf32>, vector<64x1xf32> -> vector<64x1xf32>
    %73 = tpu.reciprocal %72 {approx = true} : vector<64x1xf32> -> vector<64x1xf32>
    %74 = vector.broadcast %73 : vector<64x1xf32> to vector<64x64xf32>
    %75 = arith.mulf %71, %74 : vector<64x64xf32>
    %c0_46 = arith.constant 0 : index
    %c192_47 = arith.constant 192 : index
    %76 = vector.load %arg7[%c0_46, %c192_47] : memref<64x384xf32, #tpu.memory_space<vmem>>, vector<64x64xf32>
    tpu.vector_store %arg7[%c0_46, %c192_47], %75 {strides = array<i32>} : memref<64x384xf32, #tpu.memory_space<vmem>>, vector<64x64xf32>,
    %c0_48 = arith.constant 0 : index
    %c256 = arith.constant 256 : index
    %77 = vector.load %arg6[%c0_48, %c256] : memref<64x1152xf32, #tpu.memory_space<vmem>>, vector<64x64xf32>
    %c0_49 = arith.constant 0 : index
    %c640 = arith.constant 640 : index
    %78 = vector.load %arg6[%c0_49, %c640] : memref<64x1152xf32, #tpu.memory_space<vmem>>, vector<64x64xf32>
    %c0_50 = arith.constant 0 : index
    %c1024 = arith.constant 1024 : index
    %79 = vector.load %arg6[%c0_50, %c1024] : memref<64x1152xf32, #tpu.memory_space<vmem>>, vector<64x64xf32>
    %cst_51 = arith.constant dense<0.000000e+00> : vector<64x64xf32>
    %80 = tpu.matmul %77, %78, %cst_51 {dimension_numbers = #tpu.dot_dimension_numbers<[1], [1], [0], [0], [0, 0, 1, 0], [], []>} : vector<64x64xf32>, vector<64x64xf32>, vector<64x64xf32> -> vector<64x64xf32>
    %cst_52 = arith.constant -1.000000e+30 : f32
    %81 = vector.broadcast %cst_52 : f32 to vector<64x64xf32>
    %82 = arith.select %7, %80, %81 : vector<64x64xi1>, vector<64x64xf32>
    %cst_53 = arith.constant dense<0xFF800000> : vector<64xf32>
    %83 = vector.multi_reduction <maximumf>, %82, %cst_53 [1] : vector<64x64xf32> to vector<64xf32>
    %84 = vector.shape_cast %83 : vector<64xf32> to vector<64x1xf32>
    %85 = vector.broadcast %84 : vector<64x1xf32> to vector<64x64xf32>
    %86 = arith.subf %82, %85 : vector<64x64xf32>
    %87 = math.exp %86 : vector<64x64xf32>
    %cst_54 = arith.constant dense<0.000000e+00> : vector<64x64xf32>
    %88 = tpu.matmul %87, %79, %cst_54 {dimension_numbers = #tpu.dot_dimension_numbers<[1], [0], [0], [1], [0, 0, 1, 1], [], []>} : vector<64x64xf32>, vector<64x64xf32>, vector<64x64xf32> -> vector<64x64xf32>
    %cst_55 = arith.constant dense<0.000000e+00> : vector<64x1xf32>
    %89 = tpu.matmul %87, %8, %cst_55 {dimension_numbers = #tpu.dot_dimension_numbers<[1], [0], [0], [1], [0, 0, 1, 1], [], []>} : vector<64x64xf32>, vector<64x1xf32>, vector<64x1xf32> -> vector<64x1xf32>
    %90 = tpu.reciprocal %89 {approx = true} : vector<64x1xf32> -> vector<64x1xf32>
    %91 = vector.broadcast %90 : vector<64x1xf32> to vector<64x64xf32>
    %92 = arith.mulf %88, %91 : vector<64x64xf32>
    %c0_56 = arith.constant 0 : index
    %c256_57 = arith.constant 256 : index
    %93 = vector.load %arg7[%c0_56, %c256_57] : memref<64x384xf32, #tpu.memory_space<vmem>>, vector<64x64xf32>
    tpu.vector_store %arg7[%c0_56, %c256_57], %92 {strides = array<i32>} : memref<64x384xf32, #tpu.memory_space<vmem>>, vector<64x64xf32>,
    %c0_58 = arith.constant 0 : index
    %c320 = arith.constant 320 : index
    %94 = vector.load %arg6[%c0_58, %c320] : memref<64x1152xf32, #tpu.memory_space<vmem>>, vector<64x64xf32>
    %c0_59 = arith.constant 0 : index
    %c704 = arith.constant 704 : index
    %95 = vector.load %arg6[%c0_59, %c704] : memref<64x1152xf32, #tpu.memory_space<vmem>>, vector<64x64xf32>
    %c0_60 = arith.constant 0 : index
    %c1088 = arith.constant 1088 : index
    %96 = vector.load %arg6[%c0_60, %c1088] : memref<64x1152xf32, #tpu.memory_space<vmem>>, vector<64x64xf32>
    %cst_61 = arith.constant dense<0.000000e+00> : vector<64x64xf32>
    %97 = tpu.matmul %94, %95, %cst_61 {dimension_numbers = #tpu.dot_dimension_numbers<[1], [1], [0], [0], [0, 0, 1, 0], [], []>} : vector<64x64xf32>, vector<64x64xf32>, vector<64x64xf32> -> vector<64x64xf32>
    %cst_62 = arith.constant -1.000000e+30 : f32
    %98 = vector.broadcast %cst_62 : f32 to vector<64x64xf32>
    %99 = arith.select %7, %97, %98 : vector<64x64xi1>, vector<64x64xf32>
    %cst_63 = arith.constant dense<0xFF800000> : vector<64xf32>
    %100 = vector.multi_reduction <maximumf>, %99, %cst_63 [1] : vector<64x64xf32> to vector<64xf32>
    %101 = vector.shape_cast %100 : vector<64xf32> to vector<64x1xf32>
    %102 = vector.broadcast %101 : vector<64x1xf32> to vector<64x64xf32>
    %103 = arith.subf %99, %102 : vector<64x64xf32>
    %104 = math.exp %103 : vector<64x64xf32>
    %cst_64 = arith.constant dense<0.000000e+00> : vector<64x64xf32>
    %105 = tpu.matmul %104, %96, %cst_64 {dimension_numbers = #tpu.dot_dimension_numbers<[1], [0], [0], [1], [0, 0, 1, 1], [], []>} : vector<64x64xf32>, vector<64x64xf32>, vector<64x64xf32> -> vector<64x64xf32>
    %cst_65 = arith.constant dense<0.000000e+00> : vector<64x1xf32>
    %106 = tpu.matmul %104, %8, %cst_65 {dimension_numbers = #tpu.dot_dimension_numbers<[1], [0], [0], [1], [0, 0, 1, 1], [], []>} : vector<64x64xf32>, vector<64x1xf32>, vector<64x1xf32> -> vector<64x1xf32>
    %107 = tpu.reciprocal %106 {approx = true} : vector<64x1xf32> -> vector<64x1xf32>
    %108 = vector.broadcast %107 : vector<64x1xf32> to vector<64x64xf32>
    %109 = arith.mulf %105, %108 : vector<64x64xf32>
    %c0_66 = arith.constant 0 : index
    %c320_67 = arith.constant 320 : index
    %110 = vector.load %arg7[%c0_66, %c320_67] : memref<64x384xf32, #tpu.memory_space<vmem>>, vector<64x64xf32>
    tpu.vector_store %arg7[%c0_66, %c320_67], %109 {strides = array<i32>} : memref<64x384xf32, #tpu.memory_space<vmem>>, vector<64x64xf32>,
    %c0_68 = arith.constant 0 : index
    %c0_69 = arith.constant 0 : index
    %111 = vector.load %arg7[%c0_68, %c0_69] : memref<64x384xf32, #tpu.memory_space<vmem>>, vector<64x384xf32>
    %c0_70 = arith.constant 0 : index
    %c0_71 = arith.constant 0 : index
    %112 = vector.load %arg3[%c0_70, %c0_71] : memref<384x384xf32, #tpu.memory_space<vmem>>, vector<384x384xf32>
    %cst_72 = arith.constant dense<0.000000e+00> : vector<64x384xf32>
    %113 = tpu.matmul %111, %112, %cst_72 {dimension_numbers = #tpu.dot_dimension_numbers<[1], [0], [0], [1], [0, 0, 1, 1], [], []>} : vector<64x384xf32>, vector<384x384xf32>, vector<64x384xf32> -> vector<64x384xf32>
    %c0_73 = arith.constant 0 : index
    %c0_74 = arith.constant 0 : index
    %114 = vector.load %arg4[%c0_73, %c0_74] : memref<1x384xf32, #tpu.memory_space<vmem>>, vector<1x384xf32>
    %115 = vector.broadcast %114 : vector<1x384xf32> to vector<64x384xf32>
    %116 = arith.addf %113, %115 : vector<64x384xf32>
    %c0_75 = arith.constant 0 : index
    %c0_76 = arith.constant 0 : index
    %c0_77 = arith.constant 0 : index
    %117 = vector.load %arg5[%c0_75, %c0_76, %c0_77] : memref<1x64x384xf32, #tpu.memory_space<vmem>>, vector<1x64x384xf32>
    %118 = vector.shape_cast %117 : vector<1x64x384xf32> to vector<64x384xf32>
    %119 = vector.shape_cast %116 : vector<64x384xf32> to vector<1x64x384xf32>
    tpu.vector_store %arg5[%c0_75, %c0_76, %c0_77], %119 {strides = array<i32>} : memref<1x64x384xf32, #tpu.memory_space<vmem>>, vector<1x64x384xf32>,
    return
  }
  func.func @transform_0(%arg0: i32) -> (i32, i32, i32) {
    %c0_i32 = arith.constant 0 : i32
    %c0_i32_0 = arith.constant 0 : i32
    %c0_i32_1 = arith.constant 0 : i32
    return %arg0, %c0_i32, %c0_i32_0 : i32, i32, i32
  }
  func.func @transform_1(%arg0: i32) -> (i32, i32) {
    %c0_i32 = arith.constant 0 : i32
    %c0_i32_0 = arith.constant 0 : i32
    %c0_i32_1 = arith.constant 0 : i32
    return %c0_i32, %c0_i32_0 : i32, i32
  }
  func.func @transform_2(%arg0: i32) -> (i32, i32) {
    %c0_i32 = arith.constant 0 : i32
    %c0_i32_0 = arith.constant 0 : i32
    %c0_i32_1 = arith.constant 0 : i32
    return %c0_i32, %c0_i32_0 : i32, i32
  }
  func.func @transform_3(%arg0: i32) -> (i32, i32) {
    %c0_i32 = arith.constant 0 : i32
    %c0_i32_0 = arith.constant 0 : i32
    %c0_i32_1 = arith.constant 0 : i32
    return %c0_i32, %c0_i32_0 : i32, i32
  }
  func.func @transform_4(%arg0: i32) -> (i32, i32, i32) {
    %c0_i32 = arith.constant 0 : i32
    %c0_i32_0 = arith.constant 0 : i32
    %c0_i32_1 = arith.constant 0 : i32
    return %arg0, %c0_i32, %c0_i32_0 : i32, i32, i32
  }
}

</mosaic_0001>

<bundles_post_ra>
// kernel: tpu_custom_call.1
= control target key start
LH: loop header
LB: loop body
LE: loop exit
PB: predicated region body
PF: predicated region fallthrough
CT: control target
= control target key end

     0   :  { %9 = vsyncpa [#allocation5], 0  ;;  %s10371_s0 = inlined_call_operand.hbm [shape: f32[2,64,384], index: 0, kind: input, shape index: {}]   ;;  %s10372_s1 = inlined_call_operand.hbm [shape: f32[384,1152], index: 1, kind: input, shape index: {}]   ;;  %s10373_s2 = inlined_call_operand.hbm [shape: f32[384,384], index: 2, kind: input, shape index: {}]   ;;  %s10374_s3 = inlined_call_operand.hbm [shape: f32[1,384], index: 3, kind: input, shape index: {}]   ;;  %s10375_s4 = inlined_call_operand.hbm [shape: f32[2,64,384], index: 4, kind: output, shape index: {}]  }
   0x1   :  { %11 = vsyncpa [#allocation5 + $0x1], 0 }
   0x2   :  { %12 = vsyncpa [#allocation8], 0 }
   0x3   :  { %13 = vsyncpa [#allocation11], 0 }
   0x4   :  { %14 = vsyncpa [#allocation6], 0 }
   0x5   :  { %16 = vsyncpa [#allocation6 + $0x1], 0  ;;  %s7963_s15 = smov 0   ;;  %s7965_s16 = smov 0  }
   0x6   :  { %s7967_s17 = smov 0   ;;  %s7969_s18 = smov 0  }
   0x7 LB: > { %s7984_s19 = sadd.s32 4294967295, %s7921_s18   ;;  %s6156_s20 = sadd.s32 4294967294, %s7921_s18   ;;  %s7921_s18 = sphi %s7969_s18, %s10548_s18   ;;  %s7917_s17 = sphi %s7967_s17, %s10547_s17   ;;  %s7913_s16 = sphi %s7965_s16, %s10546_s16   ;;  %s7909_s15 = sphi %s7963_s15, %s10545_s15  }
   0x8   : > { %p42_p0 = scmp.ne.s32.totalorder %s7913_s16, %s7909_s15  ;;  %p10376_p1 = scmp.eq.s32.totalorder %s7984_s19, 0 }
   0x9   : > { %p135_p3 = scmp.eq.s32.totalorder %s6156_s20, 1  ;;  %p6157_p5 = scmp.ge.s32.totalorder %s7921_s18, 1 }
   0xa   : > { %p7993_p4 = por %p10376_p1, %p42_p0  ;;  %p142_p7 = scmp.lt.s32.totalorder %s7921_s18, 3 }
   0xb   : > { %p7998_p6 = por %p135_p3, %p42_p0  ;;  %s7923_s24 = smov [#allocation7]  }
   0xc   : > { %s10412_s21 = scalar_select %p7993_p4, 1, 0 }
   0xd   : > { %s10413_s22 = scalar_select %p7998_p6, 1, 0 }
   0xe   : > { %p8003_p8 = pnand %p6157_p5, %p142_p7  ;;  %s154_s25 = sshll.u32 %s7923_s24, 4  ;;  %s155_s25 = int_to_ptr.vmem [resolvable:$true] %s154_s25 }
   0xf   : > { %s7924_s27 = smov [#allocation9]   ;;  %s7754_s29 = scalar_lea.vmem %s155_s25, 55296 }
  0x10   : > { %s10414_s23 = scalar_select %p8003_p8, 1, 0 }
  0x11   : > { %p7454_p9 = pneg %p8003_p8  ;;  %s167_s28 = sshll.u32 %s7924_s27, 4  ;;  %s168_s28 = int_to_ptr.vmem [resolvable:$true] %s167_s28 }
  0x12   : > { %p7755_p13 = scmp.ne.s32.totalorder %s155_s25, %s7754_s29  ;;  %p7762_p5 = scmp.lt.s32.totalorder %s155_s25, %s155_s25 }
  0x13   : > { %p8012_p11 = pnand %p7454_p9, %p10376_p1  ;;  %p7763_p7 = scmp.lt.s32.totalorder %s7754_s29, %s7754_s29 }
  0x15   : > { %p7745_p12 = pneg %p8012_p11  ;;  %p7764_p10 = por %p7763_p7, %p7762_p5 }
  0x17   : > { %p7757_p0 = pnand %p7755_p13, %p7745_p12 }
  0x19   : > { %p7758_p3 = pneg %p7757_p0 }
  0x1b   : > { %p7765_p9 = pnand %p7764_p10, %p7758_p3 }
  0x1d   : > { %7768 = shalt.err (!%p7765_p9)
}
  0x1e   : > { %s7925_s30 = smov 1152   ;;  %s7926_s5 = smov 72  }
  0x1f   : > { %7457 = dma.hbm_to_vmem [thread:$0]  (!%p8012_p11), %s10372_s1, 55296, %s155_s25, [#allocation8], %s7925_s30, %s7925_s30, %s7926_s5  }
  0x20   : > { %s7780_s8 = scalar_lea.vmem %s168_s28, 18432  ;;  %p7788_p2 = scmp.lt.s32.totalorder %s168_s28, %s168_s28 }
  0x21   : > { %p7781_p1 = scmp.ne.s32.totalorder %s168_s28, %s7780_s8  ;;  %p7789_p6 = scmp.lt.s32.totalorder %s7780_s8, %s7780_s8 }
  0x23   : > { %p7783_p13 = pnand %p7781_p1, %p7745_p12  ;;  %p7790_p5 = por %p7789_p6, %p7788_p2 }
  0x25   : > { %p7784_p0 = pneg %p7783_p13 }
  0x27   : > { %p7791_p10 = pnand %p7790_p5, %p7784_p0 }
  0x29   : > { %7794 = shalt.err (!%p7791_p10)
}
  0x2a   : > { %s7927_s9 = smov 384   ;;  %s7928_s10 = smov 24  }
  0x2b   : > { %7460 = dma.hbm_to_vmem [thread:$0]  (!%p8012_p11), %s10373_s2, 18432, %s168_s28, [#allocation8], %s7927_s9, %s7927_s9, %s7928_s10  }
  0x2c   : > { %s7929_s13 = smov [#allocation10]   ;;  %s8038_s20 = sadd.s32 1, %s7921_s18  }
  0x2d   : > { %s181_s14 = sshll.u32 %s7929_s13, 4  ;;  %s182_s14 = int_to_ptr.vmem [resolvable:$true] %s181_s14 }
  0x2e   : > { %s7806_s24 = scalar_lea.vmem %s182_s14, 48  ;;  %s7813_s25 = scalar_lea.vmem %s182_s14, 64 }
  0x2f   : > { %p7807_p1 = scmp.ne.s32.totalorder %s182_s14, %s7806_s24  ;;  %p7814_p3 = scmp.lt.s32.totalorder %s182_s14, %s182_s14 }
  0x30   : > { %p7815_p7 = scmp.lt.s32.totalorder %s7813_s25, %s7806_s24 }
  0x31   : > { %p7809_p2 = pnand %p7807_p1, %p7745_p12 }
  0x32   : > { %p7816_p9 = por %p7815_p7, %p7814_p3 }
  0x33   : > { %p7810_p6 = pneg %p7809_p2 }
  0x35   : > { %p7817_p13 = pnand %p7816_p9, %p7810_p6 }
  0x37   : > { %7820 = shalt.err (!%p7817_p13)
}
  0x38   : > { %7463 = dma.hbm_to_vmem [thread:$0]  (!%p8012_p11), %s10374_s3, 48, %s182_s14, [#allocation11]  }
  0x39   : > { %s26_s29 = ssub.s32 %s7921_s18, %s8038_s20  ;;  %s29_s30 = sadd.s32 1, %s7917_s17 }
  0x3a   : > { %p27_p12 = scmp.eq.s32.totalorder %s26_s29, 0  ;;  %p36_p0 = scmp.ne.s32.totalorder %s7917_s17, %s7913_s16 }
  0x3b   : > { %p37_p5 = scmp.eq.s32.totalorder %s7921_s18, 0  ;;  %p7475_p10 = scmp.lt.s32.totalorder %s7921_s18, 2 }
  0x3c   : > { %s8056_s26 = scalar_select %p27_p12, %s7917_s17, %s29_s30  }
  0x3d   : > { %p38_p1 = por %p37_p5, %p36_p0  ;;  %p10416_p2 = scmp.eq.s32.totalorder %s7984_s19, 1 }
  0x3e   : > { %s192_s6 = sand.u32 1, %s7917_s17   ;;  %s7435_s7 = smul.u32 3072, %s7921_s18 }
  0x3f   : > { %p8060_p6 = por %p10416_p2, %p36_p0  ;;  %s7434_s8 = smul.u32 192, %s192_s6 }
  0x40   : > { %p8066_p3 = pnand %p7475_p10, %p38_p1  ;;  %s8073_s14 = scalar_lea.hbm %s10371_s0, %s7435_s7 }
  0x41   : > { %s10417_s5 = scalar_select %p8060_p6, 1, 0 }
  0x42   : > { %s196_s24 = scalar_lea.vmem [#allocation4], %s7434_s8  ;;  %s8077_s27 = scalar_lea.sflag [#allocation5], %s192_s6 }
  0x43   : > { %s203_s25 = sshll.u32 %s196_s24, 4  ;;  %s7821_s28 = scalar_lea.hbm %s8073_s14, 3072  ;;  %s8075_s25 = int_to_ptr.vmem [resolvable:$true] %s203_s25 }
  0x44   : > { %p7822_p11 = scmp.ne.s32.totalorder %s8073_s14, %s7821_s28  ;;  %p7823_p7 = pneg %p8066_p3 }
  0x45   : > { %s7826_s7 = scalar_lea.hbm %s10371_s0, 6144  ;;  %p7827_p12 = scmp.lt.s32.totalorder %s8073_s14, %s10371_s0 }
  0x46   : > { %p7824_p9 = pnand %p7823_p7, %p7822_p11  ;;  %p7828_p0 = scmp.lt.s32.totalorder %s7826_s7, %s7821_s28 }
  0x48   : > { %p7825_p13 = pneg %p7824_p9  ;;  %p7829_p5 = por %p7828_p0, %p7827_p12 }
  0x4a   : > { %p7830_p10 = pnand %p7829_p5, %p7825_p13 }
  0x4c   : > { %7833 = shalt.err (!%p7830_p10)
}
  0x4d   : > { %s7834_s6 = scalar_lea.vmem %s8075_s25, 3072  ;;  %s7930_s8 = smov [#allocation4]  }
  0x4e   : > { %p7835_p1 = scmp.ne.s32.totalorder %s8075_s25, %s7834_s6  ;;  %s7839_s24 = sshll.u32 %s7930_s8, 4  ;;  %s7840_s24 = int_to_ptr.vmem [resolvable:$false] %s7839_s24 }
  0x4f   : > { %s7841_s29 = scalar_lea.vmem %s7840_s24, 6144  ;;  %p7842_p9 = scmp.lt.s32.totalorder %s8075_s25, %s7840_s24 }
  0x50   : > { %p7837_p2 = pnand %p7835_p1, %p7823_p7  ;;  %p7843_p6 = scmp.lt.s32.totalorder %s7841_s29, %s7834_s6 }
  0x52   : > { %p7838_p11 = pneg %p7837_p2  ;;  %p7844_p4 = por %p7843_p6, %p7842_p9 }
  0x54   : > { %p7845_p8 = pnand %p7844_p4, %p7838_p11 }
  0x56   : > { %7848 = shalt.err (!%p7845_p8)
}
  0x57   : > { %7467 = dma.hbm_to_vmem [thread:$0]  (!%p8066_p3), %s8073_s14, 3072, %s8075_s25, %s8077_s27, %s7927_s9, %s7927_s9, %s7928_s10  }
  0x58   : > { %p10419_p7 = scmp.ne.s32.totalorder %s10414_s23, 0 }
  0x5a   : > { %215 = sbr.rel (%p10419_p7) target bundleno = 1882 (0x75a), region = 36 }
  0x5f   : > { %s8104_s28 = sand.u32 1, %s7913_s16   ;;  %p10420_p4 = scmp.ne.s32.totalorder %s10412_s21, 0 }
  0x60   : > { %s7436_s30 = smul.u32 192, %s8104_s28  ;;  %s218_s7 = scalar_lea.sflag [#allocation5], %s8104_s28 }
  0x62   : > { %s8110_s11 = scalar_lea.vmem [#allocation4], %s7436_s30 }
  0x63   : > { %7892 = dma.done.wait (%p10420_p4), %s218_s7, 3072  }
  0x64   : > { %7894 = vsyncadd (%p10420_p4), %s218_s7, 4294964224  ;;  %p10421_p8 = scmp.eq.s32.totalorder %s7984_s19, 0 }
  0x66   : > { %7896 = dma.done.wait (%p10421_p8), [#allocation8], 73728   ;;  %p10422_p6 = pmov %p10421_p8 }
  0x68   : > { %7898 = vsyncadd (%p10422_p6), [#allocation8], 4294893568  ;;  %p10423_p3 = pmov %p10422_p6 }
  0x6a   : > { %7900 = dma.done.wait (%p10423_p3), [#allocation11], 48   ;;  %p10424_p13 = pmov %p10423_p3 }
  0x6b   : > { %v10380_v0 = vmov 0.0   ;;  %v418_v1 = vld [vmem:[#allocation7 + $0x440] sm:$0xff]  ;;  %v417_v3 = vld [vmem:[#allocation7 + $0x438] sm:$0xff]  ;;  %v408_v7 = vld [vmem:[#allocation7 + $0x3f0] sm:$0xff]  ;;  %vm1943_vm0 = vcmask 523264   ;;  %s7932_s21 = smov 64  }
  0x6c   : > { %7902 = vsyncadd (%p10424_p13), [#allocation11], 4294967248  ;;  %891 = vmatprep.mubr.f32.mxu1 %v10380_v0  ;;  %v706_v2 = vld [vmem:[#allocation7 + $0xd40] sm:$0xff]  ;;  %714 = vmatprep.subr.mxu0 %v418_v1  ;;  %v705_v4 = vld [vmem:[#allocation7 + $0xd38] sm:$0xff]  ;;  %vm3070_vm9 = vcmask 1048064   ;;  %s10274_s23 = scalar_lea.vmem [#allocation12], %s7436_s30 }
  0x6d   : > { %827 = vmatprep.subr.mxu1 %v706_v2  ;;  %v409_v5 = vld [vmem:[#allocation7 + $0x3f8] sm:$0xff]  ;;  %715 = vmatpush1.msra.mxu0 %v417_v3  ;;  %v696_v8 = vld [vmem:[#allocation7 + $0xcf0] sm:$0xff]  ;;  %v399_v11 = vld [vmem:[#allocation7 + $0x3a8] sm:$0xff]  ;;  %s7437_s9 = smul.u32 3072, %s7984_s19  ;;  %s6054_s10 = sshll.u32 %s10274_s23, 4  ;;  %s10325_s10 = int_to_ptr.vmem [resolvable:$true] %s6054_s10 }
  0x6e   : > { %v697_v6 = vld [vmem:[#allocation7 + $0xcf8] sm:$0xff]  ;;  %828 = vmatpush1.msra.mxu1 %v705_v4  ;;  %v400_v9 = vld [vmem:[#allocation7 + $0x3b0] sm:$0xff]  ;;  %716 = vmatprep.subr.mxu0 %v409_v5  ;;  %v687_v12 = vld [vmem:[#allocation7 + $0xca8] sm:$0xff]  ;;  %s6041_s27 = scalar_lea.sflag [#allocation6], %s8104_s28  ;;  %s7849_s12 = scalar_lea.vmem %s10325_s10, 3072 }
  0x6f   : > { %829 = vmatprep.subr.mxu1 %v697_v6  ;;  %v688_v10 = vld [vmem:[#allocation7 + $0xcb0] sm:$0xff]  ;;  %717 = vmatpush1.msra.mxu0 %v408_v7  ;;  %v391_v13 = vld [vmem:[#allocation7 + $0x368] sm:$0xff]  ;;  %v390_v15 = vld [vmem:[#allocation7 + $0x360] sm:$0xff]  ;;  %s10323_s25 = scalar_lea.hbm %s10375_s4, %s7437_s9  ;;  %p7850_p12 = scmp.ne.s32.totalorder %s10325_s10, %s7849_s12 }
  0x70   : > { %830 = vmatpush1.msra.mxu1 %v696_v8  ;;  %v679_v14 = vld [vmem:[#allocation7 + $0xc68] sm:$0xff]  ;;  %718 = vmatprep.subr.mxu0 %v400_v9  ;;  %v678_v16 = vld [vmem:[#allocation7 + $0xc60] sm:$0xff]  ;;  %v381_v19 = vld [vmem:[#allocation7 + $0x318] sm:$0xff]  ;;  %p10542_p0 = scmp.ne.s32.totalorder %s10417_s5, 0  ;;  %s7935_s13 = smov [#allocation12]  }
  0x71   : > { %831 = vmatprep.subr.mxu1 %v688_v10  ;;  %719 = vmatpush1.msra.mxu0 %v399_v11  ;;  %v382_v17 = vld [vmem:[#allocation7 + $0x320] sm:$0xff]  ;;  %v669_v20 = vld [vmem:[#allocation7 + $0xc18] sm:$0xff]  ;;  %v372_v23 = vld [vmem:[#allocation7 + $0x2d0] sm:$0xff]  ;;  %s7853_s6 = sshll.u32 %s7935_s13, 4  ;;  %s7854_s6 = int_to_ptr.vmem [resolvable:$false] %s7853_s6 }
  0x72   : > { %832 = vmatpush1.msra.mxu1 %v687_v12  ;;  %v670_v18 = vld [vmem:[#allocation7 + $0xc20] sm:$0xff]  ;;  %720 = vmatprep.subr.mxu0 %v391_v13  ;;  %v373_v21 = vld [vmem:[#allocation7 + $0x2d8] sm:$0xff]  ;;  %v660_v24 = vld [vmem:[#allocation7 + $0xbd0] sm:$0xff]  ;;  %p7851_p5 = pnand %p7850_p12, %p10542_p0  ;;  %s7855_s8 = scalar_lea.vmem %s7854_s6, 6144 }
  0x73   : > { %833 = vmatprep.subr.mxu1 %v679_v14  ;;  %721 = vmatpush1.msra.mxu0 %v390_v15  ;;  %v661_v22 = vld [vmem:[#allocation7 + $0xbd8] sm:$0xff]  ;;  %v364_v25 = vld [vmem:[#allocation7 + $0x290] sm:$0xff]  ;;  %v363_v27 = vld [vmem:[#allocation7 + $0x288] sm:$0xff]  ;;  %p7856_p1 = scmp.lt.s32.totalorder %s10325_s10, %s7854_s6  ;;  %p7857_p2 = scmp.lt.s32.totalorder %s7855_s8, %s7849_s12 }
  0x74   : > { %834 = vmatpush1.msra.mxu1 %v678_v16  ;;  %722 = vmatprep.subr.mxu0 %v382_v17  ;;  %v652_v26 = vld [vmem:[#allocation7 + $0xb90] sm:$0xff]  ;;  %v651_v28 = vld [vmem:[#allocation7 + $0xb88] sm:$0xff]  ;;  %v354_v31 = vld [vmem:[#allocation7 + $0x240] sm:$0xff]  ;;  %p7852_p10 = pneg %p7851_p5 }
  0x75   : > { %835 = vmatprep.subr.mxu1 %v670_v18  ;;  %723 = vmatpush1.msra.mxu0 %v381_v19  ;;  %v355_v29 = vld [vmem:[#allocation7 + $0x248] sm:$0xff]  ;;  %v642_v32 = vld [vmem:[#allocation7 + $0xb40] sm:$0xff]  ;;  %v345_v35 = vld [vmem:[#allocation7 + $0x1f8] sm:$0xff]  ;;  %p7858_p11 = por %p7857_p2, %p7856_p1 }
  0x76   : > { %836 = vmatpush1.msra.mxu1 %v669_v20  ;;  %724 = vmatprep.subr.mxu0 %v373_v21  ;;  %v643_v30 = vld [vmem:[#allocation7 + $0xb48] sm:$0xff]  ;;  %v346_v33 = vld [vmem:[#allocation7 + $0x200] sm:$0xff]  ;;  %v633_v36 = vld [vmem:[#allocation7 + $0xaf8] sm:$0xff] }
  0x77   : > { %837 = vmatprep.subr.mxu1 %v661_v22  ;;  %725 = vmatpush1.msra.mxu0 %v372_v23  ;;  %v634_v34 = vld [vmem:[#allocation7 + $0xb00] sm:$0xff]  ;;  %v337_v37 = vld [vmem:[#allocation7 + $0x1b8] sm:$0xff]  ;;  %v336_v39 = vld [vmem:[#allocation7 + $0x1b0] sm:$0xff]  ;;  %p7859_p9 = pnand %p7858_p11, %p7852_p10 }
  0x78   : > { %838 = vmatpush1.msra.mxu1 %v660_v24  ;;  %726 = vmatprep.subr.mxu0 %v364_v25  ;;  %v625_v38 = vld [vmem:[#allocation7 + $0xab8] sm:$0xff]  ;;  %v624_v40 = vld [vmem:[#allocation7 + $0xab0] sm:$0xff]  ;;  %v327_v43 = vld [vmem:[#allocation7 + $0x168] sm:$0xff] }
  0x79   : > { %839 = vmatprep.subr.mxu1 %v652_v26  ;;  %727 = vmatpush1.msra.mxu0 %v363_v27  ;;  %v328_v41 = vld [vmem:[#allocation7 + $0x170] sm:$0xff]  ;;  %v615_v44 = vld [vmem:[#allocation7 + $0xa68] sm:$0xff]  ;;  %v318_v47 = vld [vmem:[#allocation7 + $0x120] sm:$0xff] }
  0x7a   : > { %840 = vmatpush1.msra.mxu1 %v651_v28  ;;  %728 = vmatprep.subr.mxu0 %v355_v29  ;;  %v616_v42 = vld [vmem:[#allocation7 + $0xa70] sm:$0xff]  ;;  %v319_v45 = vld [vmem:[#allocation7 + $0x128] sm:$0xff]  ;;  %v606_v48 = vld [vmem:[#allocation7 + $0xa20] sm:$0xff] }
  0x7b   : > { %841 = vmatprep.subr.mxu1 %v643_v30  ;;  %729 = vmatpush1.msra.mxu0 %v354_v31  ;;  %v607_v46 = vld [vmem:[#allocation7 + $0xa28] sm:$0xff]  ;;  %v310_v49 = vld [vmem:[#allocation7 + $0xe0] sm:$0xff]  ;;  %v309_v51 = vld [vmem:[#allocation7 + $0xd8] sm:$0xff] }
  0x7c   : > { %842 = vmatpush1.msra.mxu1 %v642_v32  ;;  %730 = vmatprep.subr.mxu0 %v346_v33  ;;  %v598_v50 = vld [vmem:[#allocation7 + $0x9e0] sm:$0xff]  ;;  %v597_v52 = vld [vmem:[#allocation7 + $0x9d8] sm:$0xff]  ;;  %v300_v55 = vld [vmem:[#allocation7 + $0x90] sm:$0xff] }
  0x7d   : > { %843 = vmatprep.subr.mxu1 %v634_v34  ;;  %731 = vmatpush1.msra.mxu0 %v345_v35  ;;  %v301_v53 = vld [vmem:[#allocation7 + $0x98] sm:$0xff]  ;;  %v588_v56 = vld [vmem:[#allocation7 + $0x990] sm:$0xff]  ;;  %v291_v59 = vld [vmem:[#allocation7 + $0x48] sm:$0xff] }
  0x7e   : > { %844 = vmatpush1.msra.mxu1 %v633_v36  ;;  %732 = vmatprep.subr.mxu0 %v337_v37  ;;  %v589_v54 = vld [vmem:[#allocation7 + $0x998] sm:$0xff]  ;;  %v292_v57 = vld [vmem:[#allocation7 + $0x50] sm:$0xff]  ;;  %v579_v60 = vld [vmem:[#allocation7 + $0x948] sm:$0xff] }
  0x7f   : > { %845 = vmatprep.subr.mxu1 %v625_v38  ;;  %733 = vmatpush1.msra.mxu0 %v336_v39  ;;  %v580_v58 = vld [vmem:[#allocation7 + $0x950] sm:$0xff]  ;;  %v283_v61 = vld [vmem:[#allocation7 + $0x8] sm:$0xff]  ;;  %v282_v63 = vld [vmem:[#allocation7] sm:$0xff] }
  0x80   : > { %846 = vmatpush1.msra.mxu1 %v624_v40  ;;  %734 = vmatprep.subr.mxu0 %v328_v41  ;;  %v571_v62 = vld [vmem:[#allocation7 + $0x908] sm:$0xff]  ;;  %v570_v1 = vld [vmem:[#allocation7 + $0x900] sm:$0xff]  ;;  %v8126_v3 = vld [vmem:[%s8110_s11 + $0x10] sm:$0xff] }
  0x81   : > { %847 = vmatprep.subr.mxu1 %v616_v42  ;;  %735 = vmatpush1.msra.mxu0 %v327_v43  ;;  %v562_v2 = vld [vmem:[#allocation7 + $0x8c0] sm:$0xff]  ;;  %v420_v4 = vld [vmem:[#allocation7 + $0x450] sm:$0xff]  ;;  %v561_v5 = vld [vmem:[#allocation7 + $0x8b8] sm:$0xff] }
  0x82   : > { %848 = vmatpush1.msra.mxu1 %v615_v44  ;;  %736 = vmatprep.subr.mxu0 %v319_v45  ;;  %v419_v6 = vld [vmem:[#allocation7 + $0x448] sm:$0xff]  ;;  %v553_v7 = vld [vmem:[#allocation7 + $0x878] sm:$0xff]  ;;  %v552_v9 = vld [vmem:[#allocation7 + $0x870] sm:$0xff] }
  0x83   : > { %849 = vmatprep.subr.mxu1 %v607_v46  ;;  %737 = vmatpush1.msra.mxu0 %v318_v47  ;;  %v411_v8 = vld [vmem:[#allocation7 + $0x408] sm:$0xff]  ;;  %v410_v10 = vld [vmem:[#allocation7 + $0x400] sm:$0xff]  ;;  %v544_v11 = vld [vmem:[#allocation7 + $0x830] sm:$0xff] }
  0x84   : > { %850 = vmatpush1.msra.mxu1 %v606_v48  ;;  %738 = vmatprep.subr.mxu0 %v310_v49  ;;  %v402_v12 = vld [vmem:[#allocation7 + $0x3c0] sm:$0xff]  ;;  %v543_v13 = vld [vmem:[#allocation7 + $0x828] sm:$0xff]  ;;  %v401_v14 = vld [vmem:[#allocation7 + $0x3b8] sm:$0xff] }
  0x85   : > { %851 = vmatprep.subr.mxu1 %v598_v50  ;;  %739 = vmatpush1.msra.mxu0 %v309_v51  ;;  %v535_v15 = vld [vmem:[#allocation7 + $0x7e8] sm:$0xff]  ;;  %v393_v16 = vld [vmem:[#allocation7 + $0x378] sm:$0xff]  ;;  %v534_v17 = vld [vmem:[#allocation7 + $0x7e0] sm:$0xff] }
  0x86   : > { %852 = vmatpush1.msra.mxu1 %v597_v52  ;;  %740 = vmatprep.subr.mxu0 %v301_v53  ;;  %v392_v18 = vld [vmem:[#allocation7 + $0x370] sm:$0xff]  ;;  %v526_v19 = vld [vmem:[#allocation7 + $0x7a0] sm:$0xff]  ;;  %v525_v21 = vld [vmem:[#allocation7 + $0x798] sm:$0xff] }
  0x87   : > { %853 = vmatprep.subr.mxu1 %v589_v54  ;;  %741 = vmatpush1.msra.mxu0 %v300_v55  ;;  %v384_v20 = vld [vmem:[#allocation7 + $0x330] sm:$0xff]  ;;  %v383_v22 = vld [vmem:[#allocation7 + $0x328] sm:$0xff]  ;;  %v517_v23 = vld [vmem:[#allocation7 + $0x758] sm:$0xff] }
  0x88   : > { %854 = vmatpush1.msra.mxu1 %v588_v56  ;;  %742 = vmatprep.subr.mxu0 %v292_v57  ;;  %v375_v24 = vld [vmem:[#allocation7 + $0x2e8] sm:$0xff]  ;;  %v516_v25 = vld [vmem:[#allocation7 + $0x750] sm:$0xff]  ;;  %v374_v26 = vld [vmem:[#allocation7 + $0x2e0] sm:$0xff] }
  0x89   : > { %855 = vmatprep.subr.mxu1 %v580_v58  ;;  %743 = vmatpush1.msra.mxu0 %v291_v59  ;;  %v508_v27 = vld [vmem:[#allocation7 + $0x710] sm:$0xff]  ;;  %v366_v28 = vld [vmem:[#allocation7 + $0x2a0] sm:$0xff]  ;;  %v507_v29 = vld [vmem:[#allocation7 + $0x708] sm:$0xff] }
  0x8a   : > { %856 = vmatpush1.msra.mxu1 %v579_v60  ;;  %744 = vmatprep.subr.mxu0 %v283_v61  ;;  %v365_v30 = vld [vmem:[#allocation7 + $0x298] sm:$0xff]  ;;  %v499_v31 = vld [vmem:[#allocation7 + $0x6c8] sm:$0xff]  ;;  %v498_v33 = vld [vmem:[#allocation7 + $0x6c0] sm:$0xff] }
  0x8b   : > { %857 = vmatprep.subr.mxu1 %v571_v62  ;;  %745 = vmatpush1.msra.mxu0 %v282_v63  ;;  %v357_v32 = vld [vmem:[#allocation7 + $0x258] sm:$0xff]  ;;  %v356_v34 = vld [vmem:[#allocation7 + $0x250] sm:$0xff]  ;;  %v490_v35 = vld [vmem:[#allocation7 + $0x680] sm:$0xff] }
  0x8c   : > { %858 = vmatpush1.msra.mxu1 %v570_v1  ;;  %746 = vmatprep.subr.mxu0 %v562_v2  ;;  %v348_v36 = vld [vmem:[#allocation7 + $0x210] sm:$0xff]  ;;  %v489_v37 = vld [vmem:[#allocation7 + $0x678] sm:$0xff]  ;;  %v347_v38 = vld [vmem:[#allocation7 + $0x208] sm:$0xff] }
  0x8d   : > { %892 = vmatmul.mubr.f32.vlgmr.msra.gmra.mxu1 %v8126_v3  ;;  %940 = vmatprep.subr.mxu1 %v420_v4  ;;  %v481_v39 = vld [vmem:[#allocation7 + $0x638] sm:$0xff]  ;;  %v339_v40 = vld [vmem:[#allocation7 + $0x1c8] sm:$0xff]  ;;  %v480_v41 = vld [vmem:[#allocation7 + $0x630] sm:$0xff] }
  0x8e   : > { %747 = vmatpush2.msra.mxu0 %v561_v5  ;;  %941 = vmatpush1.msra.mxu1 %v419_v6  ;;  %v338_v42 = vld [vmem:[#allocation7 + $0x1c0] sm:$0xff]  ;;  %v472_v43 = vld [vmem:[#allocation7 + $0x5f0] sm:$0xff]  ;;  %v471_v45 = vld [vmem:[#allocation7 + $0x5e8] sm:$0xff] }
  0x8f   : > { %748 = vmatprep.subr.mxu0 %v553_v7  ;;  %942 = vmatprep.subr.mxu1 %v411_v8  ;;  %v330_v44 = vld [vmem:[#allocation7 + $0x180] sm:$0xff]  ;;  %v329_v46 = vld [vmem:[#allocation7 + $0x178] sm:$0xff]  ;;  %v463_v47 = vld [vmem:[#allocation7 + $0x5a8] sm:$0xff] }
  0x90   : > { %749 = vmatpush2.msra.mxu0 %v552_v9  ;;  %943 = vmatpush1.msra.mxu1 %v410_v10  ;;  %v321_v48 = vld [vmem:[#allocation7 + $0x138] sm:$0xff]  ;;  %v462_v49 = vld [vmem:[#allocation7 + $0x5a0] sm:$0xff]  ;;  %v320_v50 = vld [vmem:[#allocation7 + $0x130] sm:$0xff] }
  0x91   : > { %750 = vmatprep.subr.mxu0 %v544_v11  ;;  %944 = vmatprep.subr.mxu1 %v402_v12  ;;  %v454_v51 = vld [vmem:[#allocation7 + $0x560] sm:$0xff]  ;;  %v312_v52 = vld [vmem:[#allocation7 + $0xf0] sm:$0xff]  ;;  %v453_v53 = vld [vmem:[#allocation7 + $0x558] sm:$0xff] }
  0x92   : > { %751 = vmatpush2.msra.mxu0 %v543_v13  ;;  %945 = vmatpush1.msra.mxu1 %v401_v14  ;;  %v311_v54 = vld [vmem:[#allocation7 + $0xe8] sm:$0xff]  ;;  %v445_v55 = vld [vmem:[#allocation7 + $0x518] sm:$0xff]  ;;  %v444_v57 = vld [vmem:[#allocation7 + $0x510] sm:$0xff] }
  0x93   : > { %752 = vmatprep.subr.mxu0 %v535_v15  ;;  %946 = vmatprep.subr.mxu1 %v393_v16  ;;  %v303_v56 = vld [vmem:[#allocation7 + $0xa8] sm:$0xff]  ;;  %v302_v58 = vld [vmem:[#allocation7 + $0xa0] sm:$0xff]  ;;  %v436_v59 = vld [vmem:[#allocation7 + $0x4d0] sm:$0xff] }
  0x94   : > { %753 = vmatpush2.msra.mxu0 %v534_v17  ;;  %947 = vmatpush1.msra.mxu1 %v392_v18  ;;  %v294_v60 = vld [vmem:[#allocation7 + $0x60] sm:$0xff]  ;;  %v435_v61 = vld [vmem:[#allocation7 + $0x4c8] sm:$0xff]  ;;  %v293_v62 = vld [vmem:[#allocation7 + $0x58] sm:$0xff] }
  0x95   : > { %754 = vmatprep.subr.mxu0 %v526_v19  ;;  %948 = vmatprep.subr.mxu1 %v384_v20  ;;  %v427_v63 = vld [vmem:[#allocation7 + $0x488] sm:$0xff]  ;;  %v285_v1 = vld [vmem:[#allocation7 + $0x18] sm:$0xff]  ;;  %v426_v2 = vld [vmem:[#allocation7 + $0x480] sm:$0xff] }
  0x96   : > { %755 = vmatpush2.msra.mxu0 %v525_v21  ;;  %949 = vmatpush1.msra.mxu1 %v383_v22  ;;  %v8130_v4 = vld [vmem:[%s8110_s11 + $0x8] sm:$0xff]  ;;  %v284_v5 = vld [vmem:[#allocation7 + $0x10] sm:$0xff]  ;;  %v8133_v6 = vld [vmem:[%s8110_s11] sm:$0xff] }
  0x97   : > { %756 = vmatprep.subr.mxu0 %v517_v23  ;;  %950 = vmatprep.subr.mxu1 %v375_v24  ;;  %v564_v7 = vld [vmem:[#allocation7 + $0x8d0] sm:$0xff]  ;;  %v563_v9 = vld [vmem:[#allocation7 + $0x8c8] sm:$0xff]  ;;  %v8138_v13 = vld [vmem:[%s8110_s11 + $0x20] sm:$0xff] }
  0x98   : > { %757 = vmatpush2.msra.mxu0 %v516_v25  ;;  %951 = vmatpush1.msra.mxu1 %v374_v26  ;;  %v708_v8 = vld [vmem:[#allocation7 + $0xd50] sm:$0xff]  ;;  %v707_v10 = vld [vmem:[#allocation7 + $0xd48] sm:$0xff]  ;;  %v554_v15 = vld [vmem:[#allocation7 + $0x880] sm:$0xff] }
  0x99   : > { %758 = vmatprep.subr.mxu0 %v508_v27  ;;  %952 = vmatprep.subr.mxu1 %v366_v28  ;;  %v555_v11 = vld [vmem:[#allocation7 + $0x888] sm:$0xff]  ;;  %v698_v16 = vld [vmem:[#allocation7 + $0xd00] sm:$0xff]  ;;  %v8145_v17 = vld [vmem:[%s8110_s11 + $0x18] sm:$0xff] }
  0x9a   : > { %759 = vmatpush2.msra.mxu0 %v507_v29  ;;  %953 = vmatpush1.msra.mxu1 %v365_v30  ;;  %v699_v12 = vld [vmem:[#allocation7 + $0xd08] sm:$0xff]  ;;  %v546_v18 = vld [vmem:[#allocation7 + $0x840] sm:$0xff]  ;;  %v545_v20 = vld [vmem:[#allocation7 + $0x838] sm:$0xff] }
  0x9b   : > { %760 = vmatprep.subr.mxu0 %v499_v31  ;;  %954 = vmatprep.subr.mxu1 %v357_v32  ;;  %v8141_v14 = vld [vmem:[%s8110_s11 + $0x28] sm:$0xff]  ;;  %v690_v19 = vld [vmem:[#allocation7 + $0xcc0] sm:$0xff]  ;;  %v689_v21 = vld [vmem:[#allocation7 + $0xcb8] sm:$0xff] }
  0x9c   : > { %761 = vmatpush2.msra.mxu0 %v498_v33  ;;  %955 = vmatpush1.msra.mxu1 %v356_v34  ;;  %v537_v22 = vld [vmem:[#allocation7 + $0x7f8] sm:$0xff]  ;;  %v8154_v25 = vld [vmem:[%s8110_s11 + $0x40] sm:$0xff]  ;;  %v536_v26 = vld [vmem:[#allocation7 + $0x7f0] sm:$0xff] }
  0x9d   : > { %762 = vmatprep.subr.mxu0 %v490_v35  ;;  %956 = vmatprep.subr.mxu1 %v348_v36  ;;  %v681_v23 = vld [vmem:[#allocation7 + $0xc78] sm:$0xff]  ;;  %v680_v27 = vld [vmem:[#allocation7 + $0xc70] sm:$0xff]  ;;  %v527_v31 = vld [vmem:[#allocation7 + $0x7a8] sm:$0xff] }
  0x9e   : > { %763 = vmatpush2.msra.mxu0 %v489_v37  ;;  %957 = vmatpush1.msra.mxu1 %v347_v38  ;;  %v8151_v24 = vld [vmem:[%s8110_s11 + $0x38] sm:$0xff]  ;;  %v8158_v28 = vld [vmem:[%s8110_s11 + $0x30] sm:$0xff]  ;;  %v671_v32 = vld [vmem:[#allocation7 + $0xc28] sm:$0xff] }
  0x9f   : > { %764 = vmatprep.subr.mxu0 %v481_v39  ;;  %958 = vmatprep.subr.mxu1 %v339_v40  ;;  %v528_v29 = vld [vmem:[#allocation7 + $0x7b0] sm:$0xff]  ;;  %v519_v33 = vld [vmem:[#allocation7 + $0x768] sm:$0xff]  ;;  %v8167_v36 = vld [vmem:[%s8110_s11 + $0x58] sm:$0xff] }
  0xa0   : > { %765 = vmatpush2.msra.mxu0 %v480_v41  ;;  %959 = vmatpush1.msra.mxu1 %v338_v42  ;;  %v672_v30 = vld [vmem:[#allocation7 + $0xc30] sm:$0xff]  ;;  %v663_v34 = vld [vmem:[#allocation7 + $0xbe8] sm:$0xff]  ;;  %v518_v37 = vld [vmem:[#allocation7 + $0x760] sm:$0xff] }
  0xa1   : > { %766 = vmatprep.subr.mxu0 %v472_v43  ;;  %960 = vmatprep.subr.mxu1 %v330_v44  ;;  %v8164_v35 = vld [vmem:[%s8110_s11 + $0x50] sm:$0xff]  ;;  %v662_v38 = vld [vmem:[#allocation7 + $0xbe0] sm:$0xff]  ;;  %v8171_v39 = vld [vmem:[%s8110_s11 + $0x48] sm:$0xff] }
  0xa2   : > { %767 = vmatpush2.msra.mxu0 %v471_v45  ;;  %961 = vmatpush1.msra.mxu1 %v329_v46  ;;  %v510_v40 = vld [vmem:[#allocation7 + $0x720] sm:$0xff]  ;;  %v509_v42 = vld [vmem:[#allocation7 + $0x718] sm:$0xff]  ;;  %v8177_v46 = vld [vmem:[%s8110_s11 + $0x68] sm:$0xff] }
  0xa3   : > { %768 = vmatprep.subr.mxu0 %v463_v47  ;;  %962 = vmatprep.subr.mxu1 %v321_v48  ;;  %v654_v41 = vld [vmem:[#allocation7 + $0xba0] sm:$0xff]  ;;  %v653_v43 = vld [vmem:[#allocation7 + $0xb98] sm:$0xff]  ;;  %v8180_v47 = vld [vmem:[%s8110_s11 + $0x70] sm:$0xff] }
  0xa4   : > { %769 = vmatpush2.msra.mxu0 %v462_v49  ;;  %963 = vmatpush1.msra.mxu1 %v320_v50  ;;  %v501_v44 = vld [vmem:[#allocation7 + $0x6d8] sm:$0xff]  ;;  %v500_v48 = vld [vmem:[#allocation7 + $0x6d0] sm:$0xff]  ;;  %v8184_v50 = vld [vmem:[%s8110_s11 + $0x60] sm:$0xff] }
  0xa5   : > { %770 = vmatprep.subr.mxu0 %v454_v51  ;;  %964 = vmatprep.subr.mxu1 %v312_v52  ;;  %v645_v45 = vld [vmem:[#allocation7 + $0xb58] sm:$0xff]  ;;  %v644_v49 = vld [vmem:[#allocation7 + $0xb50] sm:$0xff] }
  0xa6   : > { %771 = vmatpush2.msra.mxu0 %v453_v53  ;;  %965 = vmatpush1.msra.mxu1 %v311_v54  ;;  %v492_v51 = vld [vmem:[#allocation7 + $0x690] sm:$0xff]  ;;  %v491_v53 = vld [vmem:[#allocation7 + $0x688] sm:$0xff] }
  0xa7   : > { %772 = vmatprep.subr.mxu0 %v445_v55  ;;  %966 = vmatprep.subr.mxu1 %v303_v56  ;;  %v636_v52 = vld [vmem:[#allocation7 + $0xb10] sm:$0xff]  ;;  %v635_v54 = vld [vmem:[#allocation7 + $0xb08] sm:$0xff] }
  0xa8   : > { %773 = vmatpush2.msra.mxu0 %v444_v57  ;;  %967 = vmatpush1.msra.mxu1 %v302_v58  ;;  %v483_v55 = vld [vmem:[#allocation7 + $0x648] sm:$0xff]  ;;  %v8190_v57 = vld [vmem:[%s8110_s11 + $0x80] sm:$0xff] }
  0xa9   : > { %774 = vmatprep.subr.mxu0 %v436_v59  ;;  %968 = vmatprep.subr.mxu1 %v294_v60  ;;  %v627_v56 = vld [vmem:[#allocation7 + $0xac8] sm:$0xff]  ;;  %v482_v59 = vld [vmem:[#allocation7 + $0x640] sm:$0xff] }
  0xaa   : > { %775 = vmatpush2.msra.mxu0 %v435_v61  ;;  %969 = vmatpush1.msra.mxu1 %v293_v62  ;;  %v8193_v58 = vld [vmem:[%s8110_s11 + $0x88] sm:$0xff]  ;;  %v626_v60 = vld [vmem:[#allocation7 + $0xac0] sm:$0xff]  ;;  %v8197_v61 = vld [vmem:[%s8110_s11 + $0x78] sm:$0xff] }
  0xab   : > { %776 = vmatprep.subr.mxu0 %v427_v63  ;;  %970 = vmatprep.subr.mxu1 %v285_v1  ;;  %v474_v62 = vld [vmem:[#allocation7 + $0x600] sm:$0xff]  ;;  %v473_v1 = vld [vmem:[#allocation7 + $0x5f8] sm:$0xff] }
  0xac   : > { %777 = vmatpush2.msra.mxu0 %v426_v2  ;;  %778 = vmatprep.mubr.f32.mxu0 %v8130_v4  ;;  %v618_v63 = vld [vmem:[#allocation7 + $0xa80] sm:$0xff]  ;;  %v617_v2 = vld [vmem:[#allocation7 + $0xa78] sm:$0xff] }
  0xad   : > { %971 = vmatpush1.msra.mxu1 %v284_v5  ;;  %779 = vmatmul.mubr.f32.vlgmr.msra.gmra.mxu0 %v8133_v6  ;;  %v465_v5 = vld [vmem:[#allocation7 + $0x5b8] sm:$0xff] }
  0xae   : > { %972 = vmatprep.subr.mxu1 %v564_v7  ;;  %1053 = vmatprep.subr.mxu0 %v708_v8  ;;  %v609_v7 = vld [vmem:[#allocation7 + $0xa38] sm:$0xff] }
  0xaf   : > { %973 = vmatpush2.msra.mxu1 %v563_v9  ;;  %1054 = vmatpush1.msra.mxu0 %v707_v10  ;;  %v8203_v8 = vld [vmem:[%s8110_s11 + $0x98] sm:$0xff]  ;;  %v8206_v9 = vld [vmem:[%s8110_s11 + $0xa0] sm:$0xff]  ;;  %v464_v10 = vld [vmem:[#allocation7 + $0x5b0] sm:$0xff] }
  0xb0   : > { %897 = vmatprep.mubr.f32.mxu1 %v10380_v0  ;;  %974 = vmatprep.subr.mxu1 %v555_v11  ;;  %v608_v11 = vld [vmem:[#allocation7 + $0xa30] sm:$0xff] }
  0xb1   : > { %1055 = vmatprep.subr.mxu0 %v699_v12  ;;  %784 = vmatprep.mubr.f32.mxu0 %v8138_v13  ;;  %v8210_v12 = vld [vmem:[%s8110_s11 + $0x90] sm:$0xff] }
  0xb2   : > { %898 = vmatmul.mubr.f32.gmra.mxu1 %v8141_v14  ;;  %1056 = vmatpush1.msra.mxu0 %v698_v16  ;;  %v600_v16 = vld [vmem:[#allocation7 + $0x9f0] sm:$0xff] }
  0xb3   : > { %975 = vmatpush2.msra.mxu1 %v554_v15  ;;  %785 = vmatmul.mubr.f32.gmra.mxu0 %v8145_v17  ;;  %v456_v15 = vld [vmem:[#allocation7 + $0x570] sm:$0xff] }
  0xb4   : > { %976 = vmatprep.subr.mxu1 %v546_v18  ;;  %1057 = vmatprep.subr.mxu0 %v690_v19  ;;  %v455_v18 = vld [vmem:[#allocation7 + $0x568] sm:$0xff] }
  0xb5   : > { %977 = vmatpush2.msra.mxu1 %v545_v20  ;;  %1058 = vmatpush1.msra.mxu0 %v689_v21  ;;  %v599_v19 = vld [vmem:[#allocation7 + $0x9e8] sm:$0xff] }
  0xb6   : > { %903 = vmatprep.mubr.f32.mxu1 %v10380_v0  ;;  %978 = vmatprep.subr.mxu1 %v537_v22  ;;  %v447_v20 = vld [vmem:[#allocation7 + $0x528] sm:$0xff]  ;;  %v8216_v22 = vld [vmem:[%s8110_s11 + $0xb0] sm:$0xff] }
  0xb7   : > { %1059 = vmatprep.subr.mxu0 %v681_v23  ;;  %790 = vmatprep.mubr.f32.mxu0 %v8151_v24  ;;  %v591_v21 = vld [vmem:[#allocation7 + $0x9a8] sm:$0xff]  ;;  %v8219_v23 = vld [vmem:[%s8110_s11 + $0xb8] sm:$0xff] }
  0xb8   : > { %904 = vmatmul.mubr.f32.gmra.mxu1 %v8154_v25  ;;  %1060 = vmatpush1.msra.mxu0 %v680_v27  ;;  %v590_v27 = vld [vmem:[#allocation7 + $0x9a0] sm:$0xff] }
  0xb9   : > { %979 = vmatpush2.msra.mxu1 %v536_v26  ;;  %791 = vmatmul.mubr.f32.gmra.mxu0 %v8158_v28  ;;  %v446_v26 = vld [vmem:[#allocation7 + $0x520] sm:$0xff] }
  0xba   : > { %980 = vmatprep.subr.mxu1 %v528_v29  ;;  %1061 = vmatprep.subr.mxu0 %v672_v30  ;;  %v8223_v29 = vld [vmem:[%s8110_s11 + $0xa8] sm:$0xff]  ;;  %v438_v30 = vld [vmem:[#allocation7 + $0x4e0] sm:$0xff] }
  0xbb   : > { %981 = vmatpush2.msra.mxu1 %v527_v31  ;;  %1062 = vmatpush1.msra.mxu0 %v671_v32  ;;  %v582_v31 = vld [vmem:[#allocation7 + $0x960] sm:$0xff]  ;;  %v437_v32 = vld [vmem:[#allocation7 + $0x4d8] sm:$0xff] }
  0xbc   : > { %909 = vmatprep.mubr.f32.mxu1 %v10380_v0  ;;  %982 = vmatprep.subr.mxu1 %v519_v33  ;;  %v581_v33 = vld [vmem:[#allocation7 + $0x958] sm:$0xff] }
  0xbd   : > { %1063 = vmatprep.subr.mxu0 %v663_v34  ;;  %796 = vmatprep.mubr.f32.mxu0 %v8164_v35  ;;  %v429_v34 = vld [vmem:[#allocation7 + $0x498] sm:$0xff] }
  0xbe   : > { %910 = vmatmul.mubr.f32.gmra.mxu1 %v8167_v36  ;;  %1064 = vmatpush1.msra.mxu0 %v662_v38  ;;  %v428_v38 = vld [vmem:[#allocation7 + $0x490] sm:$0xff] }
  0xbf   : > { %983 = vmatpush2.msra.mxu1 %v518_v37  ;;  %797 = vmatmul.mubr.f32.gmra.mxu0 %v8171_v39  ;;  %v573_v37 = vld [vmem:[#allocation7 + $0x918] sm:$0xff] }
  0xc0   : > { %984 = vmatprep.subr.mxu1 %v510_v40  ;;  %1065 = vmatprep.subr.mxu0 %v654_v41  ;;  %v572_v40 = vld [vmem:[#allocation7 + $0x910] sm:$0xff]  ;;  %v422_v41 = vld [vmem:[#allocation7 + $0x460] sm:$0xff] }
  0xc1   : > { %985 = vmatpush2.msra.mxu1 %v509_v42  ;;  %1066 = vmatpush1.msra.mxu0 %v653_v43  ;;  %v421_v42 = vld [vmem:[#allocation7 + $0x458] sm:$0xff] }
  0xc2   : > { %915 = vmatprep.mubr.f32.mxu1 %v10380_v0  ;;  %986 = vmatprep.subr.mxu1 %v501_v44  ;;  %v413_v43 = vld [vmem:[#allocation7 + $0x418] sm:$0xff]  ;;  %v412_v44 = vld [vmem:[#allocation7 + $0x410] sm:$0xff] }
  0xc3   : > { %1067 = vmatprep.subr.mxu0 %v645_v45  ;;  %802 = vmatprep.mubr.f32.mxu0 %v8177_v46  ;;  %v404_v45 = vld [vmem:[#allocation7 + $0x3d0] sm:$0xff] }
  0xc4   : > { %916 = vmatmul.mubr.f32.gmra.mxu1 %v8180_v47  ;;  %1068 = vmatpush1.msra.mxu0 %v644_v49  ;;  %v395_v49 = vld [vmem:[#allocation7 + $0x388] sm:$0xff] }
  0xc5   : > { %987 = vmatpush2.msra.mxu1 %v500_v48  ;;  %803 = vmatmul.mubr.f32.gmra.mxu0 %v8184_v50  ;;  %v403_v48 = vld [vmem:[#allocation7 + $0x3c8] sm:$0xff] }
  0xc6   : > { %988 = vmatprep.subr.mxu1 %v492_v51  ;;  %1069 = vmatprep.subr.mxu0 %v636_v52  ;;  %v394_v51 = vld [vmem:[#allocation7 + $0x380] sm:$0xff]  ;;  %v385_v52 = vld [vmem:[#allocation7 + $0x338] sm:$0xff] }
  0xc7   : > { %989 = vmatpush2.msra.mxu1 %v491_v53  ;;  %1070 = vmatpush1.msra.mxu0 %v635_v54  ;;  %v377_v53 = vld [vmem:[#allocation7 + $0x2f8] sm:$0xff]  ;;  %v376_v54 = vld [vmem:[#allocation7 + $0x2f0] sm:$0xff] }
  0xc8   : > { %921 = vmatprep.mubr.f32.mxu1 %v10380_v0  ;;  %990 = vmatprep.subr.mxu1 %v483_v55  ;;  %v368_v55 = vld [vmem:[#allocation7 + $0x2b0] sm:$0xff] }
  0xc9   : > { %1071 = vmatprep.subr.mxu0 %v627_v56  ;;  %808 = vmatprep.mubr.f32.mxu0 %v8190_v57  ;;  %v367_v56 = vld [vmem:[#allocation7 + $0x2a8] sm:$0xff] }
  0xca   : > { %922 = vmatmul.mubr.f32.gmra.mxu1 %v8193_v58  ;;  %1072 = vmatpush1.msra.mxu0 %v626_v60  ;;  %v358_v60 = vld [vmem:[#allocation7 + $0x260] sm:$0xff] }
  0xcb   : > { %991 = vmatpush2.msra.mxu1 %v482_v59  ;;  %809 = vmatmul.mubr.f32.gmra.mxu0 %v8197_v61  ;;  %v359_v59 = vld [vmem:[#allocation7 + $0x268] sm:$0xff] }
  0xcc   : > { %992 = vmatprep.subr.mxu1 %v474_v62  ;;  %1073 = vmatprep.subr.mxu0 %v618_v63  ;;  %v350_v62 = vld [vmem:[#allocation7 + $0x220] sm:$0xff]  ;;  %v349_v63 = vld [vmem:[#allocation7 + $0x218] sm:$0xff] }
  0xcd   : > { %993 = vmatpush2.msra.mxu1 %v473_v1  ;;  %1074 = vmatpush1.msra.mxu0 %v617_v2  ;;  %v341_v1 = vld [vmem:[#allocation7 + $0x1d8] sm:$0xff]  ;;  %v340_v2 = vld [vmem:[#allocation7 + $0x1d0] sm:$0xff] }
  0xce   : > { %927 = vmatprep.mubr.f32.mxu1 %v10380_v0  ;;  %994 = vmatprep.subr.mxu1 %v465_v5  ;;  %v332_v5 = vld [vmem:[#allocation7 + $0x190] sm:$0xff] }
  0xcf   : > { %1075 = vmatprep.subr.mxu0 %v609_v7  ;;  %814 = vmatprep.mubr.f32.mxu0 %v8203_v8  ;;  %v331_v7 = vld [vmem:[#allocation7 + $0x188] sm:$0xff] }
  0xd0   : > { %928 = vmatmul.mubr.f32.gmra.mxu1 %v8206_v9  ;;  %1076 = vmatpush1.msra.mxu0 %v608_v11  ;;  %v322_v11 = vld [vmem:[#allocation7 + $0x140] sm:$0xff] }
  0xd1   : > { %995 = vmatpush2.msra.mxu1 %v464_v10  ;;  %815 = vmatmul.mubr.f32.gmra.mxu0 %v8210_v12  ;;  %v323_v10 = vld [vmem:[#allocation7 + $0x148] sm:$0xff] }
  0xd2   : > { %996 = vmatprep.subr.mxu1 %v456_v15  ;;  %1077 = vmatprep.subr.mxu0 %v600_v16  ;;  %v314_v15 = vld [vmem:[#allocation7 + $0x100] sm:$0xff]  ;;  %v313_v16 = vld [vmem:[#allocation7 + $0xf8] sm:$0xff] }
  0xd3   : > { %997 = vmatpush2.msra.mxu1 %v455_v18  ;;  %1078 = vmatpush1.msra.mxu0 %v599_v19  ;;  %v305_v18 = vld [vmem:[#allocation7 + $0xb8] sm:$0xff]  ;;  %v304_v19 = vld [vmem:[#allocation7 + $0xb0] sm:$0xff] }
  0xd4   : > { %933 = vmatprep.mubr.f32.mxu1 %v10380_v0  ;;  %998 = vmatprep.subr.mxu1 %v447_v20  ;;  %v296_v20 = vld [vmem:[#allocation7 + $0x70] sm:$0xff] }
  0xd5   : > { %1079 = vmatprep.subr.mxu0 %v591_v21  ;;  %820 = vmatprep.mubr.f32.mxu0 %v8216_v22  ;;  %v295_v21 = vld [vmem:[#allocation7 + $0x68] sm:$0xff] }
  0xd6   : > { %934 = vmatmul.mubr.f32.gmra.mxu1 %v8219_v23  ;;  %1080 = vmatpush1.msra.mxu0 %v590_v27  ;;  %v287_v27 = vld [vmem:[#allocation7 + $0x28] sm:$0xff] }
  0xd7   : > { %999 = vmatpush2.msra.mxu1 %v446_v26  ;;  %821 = vmatmul.mubr.f32.gmra.mxu0 %v8223_v29  ;;  %v710_v26 = vld [vmem:[#allocation7 + $0xd60] sm:$0xff] }
  0xd8   : > { %1000 = vmatprep.subr.mxu1 %v438_v30  ;;  %1081 = vmatprep.subr.mxu0 %v582_v31  ;;  %v709_v30 = vld [vmem:[#allocation7 + $0xd58] sm:$0xff]  ;;  %v286_v31 = vld [vmem:[#allocation7 + $0x20] sm:$0xff] }
  0xd9   : > { %1001 = vmatpush2.msra.mxu1 %v437_v32  ;;  %1082 = vmatpush1.msra.mxu0 %v581_v33  ;;  %v701_v32 = vld [vmem:[#allocation7 + $0xd18] sm:$0xff]  ;;  %v566_v33 = vld [vmem:[#allocation7 + $0x8e0] sm:$0xff] }
  0xda   : > { %1002 = vmatprep.subr.mxu1 %v429_v34  ;;  %1083 = vmatprep.subr.mxu0 %v573_v37  ;;  %v700_v34 = vld [vmem:[#allocation7 + $0xd10] sm:$0xff]  ;;  %v565_v37 = vld [vmem:[#allocation7 + $0x8d8] sm:$0xff] }
  0xdb   : > { %1003 = vmatpush2.msra.mxu1 %v428_v38  ;;  %1004 = vmatprep.mubr.f32.mxu1 %v8130_v4  ;;  %v692_v38 = vld [vmem:[#allocation7 + $0xcd0] sm:$0xff] }
  0xdc   : > { %1084 = vmatpush1.msra.mxu0 %v572_v40  ;;  %1117 = vmatprep.mubr.f32.mxu0 %v10380_v0  ;;  %v557_v40 = vld [vmem:[#allocation7 + $0x898] sm:$0xff] }
  0xdd   : > { %1005 = vmatmul.mubr.f32.vlgmr.msra.gmra.mxu1 %v8133_v6  ;;  %1118 = vmatmul.mubr.f32.vlgmr.msra.gmra.mxu0 %v8126_v3  ;;  %v386_v3 = vld [vmem:[#allocation7 + $0x340] sm:$0xff] }
  0xde   : > { %1166 = vmatprep.subr.mxu0 %v422_v41  ;;  %1010 = vmatprep.mubr.f32.mxu1 %v8138_v13  ;;  %v691_v41 = vld [vmem:[#allocation7 + $0xcc8] sm:$0xff] }
  0xdf   : > { %1167 = vmatpush1.msra.mxu0 %v421_v42  ;;  %1123 = vmatprep.mubr.f32.mxu0 %v10380_v0  ;;  %v556_v42 = vld [vmem:[#allocation7 + $0x890] sm:$0xff] }
  0xe0   : > { %1168 = vmatprep.subr.mxu0 %v413_v43  ;;  %1279 = vmatprep.subr.mxu1 %v710_v26  ;;  %v683_v43 = vld [vmem:[#allocation7 + $0xc88] sm:$0xff]  ;;  %v620_v26 = vld [vmem:[#allocation7 + $0xa90] sm:$0xff] }
  0xe1   : > { %1169 = vmatpush1.msra.mxu0 %v412_v44  ;;  %1011 = vmatmul.mubr.f32.gmra.mxu1 %v8145_v17  ;;  %v548_v44 = vld [vmem:[#allocation7 + $0x850] sm:$0xff] }
  0xe2   : > { %1124 = vmatmul.mubr.f32.gmra.mxu0 %v8141_v14  ;;  %1170 = vmatprep.subr.mxu0 %v404_v45  ;;  %v682_v45 = vld [vmem:[#allocation7 + $0xc80] sm:$0xff] }
  0xe3   : > { %1171 = vmatpush1.msra.mxu0 %v403_v48  ;;  %1016 = vmatprep.mubr.f32.mxu1 %v8151_v24  ;;  %v547_v48 = vld [vmem:[#allocation7 + $0x848] sm:$0xff] }
  0xe4   : > { %1172 = vmatprep.subr.mxu0 %v395_v49  ;;  %1129 = vmatprep.mubr.f32.mxu0 %v10380_v0  ;;  %v674_v49 = vld [vmem:[#allocation7 + $0xc40] sm:$0xff] }
  0xe5   : > { %1173 = vmatpush1.msra.mxu0 %v394_v51  ;;  %1017 = vmatmul.mubr.f32.gmra.mxu1 %v8158_v28  ;;  %v539_v51 = vld [vmem:[#allocation7 + $0x808] sm:$0xff] }
  0xe6   : > { %1130 = vmatmul.mubr.f32.gmra.mxu0 %v8154_v25  ;;  %1174 = vmatprep.subr.mxu0 %v386_v3  ;;  %v673_v3 = vld [vmem:[#allocation7 + $0xc38] sm:$0xff] }
  0xe7   : > { %1175 = vmatpush1.msra.mxu0 %v385_v52  ;;  %1022 = vmatprep.mubr.f32.mxu1 %v8164_v35  ;;  %v538_v52 = vld [vmem:[#allocation7 + $0x800] sm:$0xff] }
  0xe8   : > { %1176 = vmatprep.subr.mxu0 %v377_v53  ;;  %1135 = vmatprep.mubr.f32.mxu0 %v10380_v0  ;;  %v665_v53 = vld [vmem:[#allocation7 + $0xbf8] sm:$0xff] }
  0xe9   : > { %1177 = vmatpush1.msra.mxu0 %v376_v54  ;;  %1023 = vmatmul.mubr.f32.gmra.mxu1 %v8171_v39  ;;  %v530_v54 = vld [vmem:[#allocation7 + $0x7c0] sm:$0xff] }
  0xea   : > { %1136 = vmatmul.mubr.f32.gmra.mxu0 %v8167_v36  ;;  %1178 = vmatprep.subr.mxu0 %v368_v55  ;;  %v664_v55 = vld [vmem:[#allocation7 + $0xbf0] sm:$0xff] }
  0xeb   : > { %1179 = vmatpush1.msra.mxu0 %v367_v56  ;;  %1028 = vmatprep.mubr.f32.mxu1 %v8177_v46  ;;  %v529_v56 = vld [vmem:[#allocation7 + $0x7b8] sm:$0xff] }
  0xec   : > { %1180 = vmatprep.subr.mxu0 %v359_v59  ;;  %1141 = vmatprep.mubr.f32.mxu0 %v10380_v0  ;;  %v656_v59 = vld [vmem:[#allocation7 + $0xbb0] sm:$0xff] }
  0xed   : > { %1181 = vmatpush1.msra.mxu0 %v358_v60  ;;  %1029 = vmatmul.mubr.f32.gmra.mxu1 %v8184_v50  ;;  %v521_v60 = vld [vmem:[#allocation7 + $0x778] sm:$0xff] }
  0xee   : > { %1142 = vmatmul.mubr.f32.gmra.mxu0 %v8180_v47  ;;  %1182 = vmatprep.subr.mxu0 %v350_v62  ;;  %v655_v62 = vld [vmem:[#allocation7 + $0xba8] sm:$0xff] }
  0xef   : > { %1183 = vmatpush1.msra.mxu0 %v349_v63  ;;  %1034 = vmatprep.mubr.f32.mxu1 %v8190_v57  ;;  %v520_v63 = vld [vmem:[#allocation7 + $0x770] sm:$0xff] }
  0xf0   : > { %1184 = vmatprep.subr.mxu0 %v341_v1  ;;  %1147 = vmatprep.mubr.f32.mxu0 %v10380_v0  ;;  %v647_v1 = vld [vmem:[#allocation7 + $0xb68] sm:$0xff] }
  0xf1   : > { %1185 = vmatpush1.msra.mxu0 %v340_v2  ;;  %1035 = vmatmul.mubr.f32.gmra.mxu1 %v8197_v61  ;;  %v512_v2 = vld [vmem:[#allocation7 + $0x730] sm:$0xff] }
  0xf2   : > { %1148 = vmatmul.mubr.f32.gmra.mxu0 %v8193_v58  ;;  %1186 = vmatprep.subr.mxu0 %v332_v5  ;;  %v646_v5 = vld [vmem:[#allocation7 + $0xb60] sm:$0xff] }
  0xf3   : > { %1187 = vmatpush1.msra.mxu0 %v331_v7  ;;  %1040 = vmatprep.mubr.f32.mxu1 %v8203_v8  ;;  %v511_v7 = vld [vmem:[#allocation7 + $0x728] sm:$0xff] }
  0xf4   : > { %1188 = vmatprep.subr.mxu0 %v323_v10  ;;  %1153 = vmatprep.mubr.f32.mxu0 %v10380_v0  ;;  %v638_v10 = vld [vmem:[#allocation7 + $0xb20] sm:$0xff] }
  0xf5   : > { %1189 = vmatpush1.msra.mxu0 %v322_v11  ;;  %1041 = vmatmul.mubr.f32.gmra.mxu1 %v8210_v12  ;;  %v503_v11 = vld [vmem:[#allocation7 + $0x6e8] sm:$0xff] }
  0xf6   : > { %1154 = vmatmul.mubr.f32.gmra.mxu0 %v8206_v9  ;;  %1190 = vmatprep.subr.mxu0 %v314_v15  ;;  %v637_v15 = vld [vmem:[#allocation7 + $0xb18] sm:$0xff] }
  0xf7   : > { %1191 = vmatpush1.msra.mxu0 %v313_v16  ;;  %1046 = vmatprep.mubr.f32.mxu1 %v8216_v22  ;;  %v502_v16 = vld [vmem:[#allocation7 + $0x6e0] sm:$0xff] }
  0xf8   : > { %1192 = vmatprep.subr.mxu0 %v305_v18  ;;  %1159 = vmatprep.mubr.f32.mxu0 %v10380_v0  ;;  %v629_v18 = vld [vmem:[#allocation7 + $0xad8] sm:$0xff] }
  0xf9   : > { %1193 = vmatpush1.msra.mxu0 %v304_v19  ;;  %1047 = vmatmul.mubr.f32.gmra.mxu1 %v8223_v29  ;;  %v494_v19 = vld [vmem:[#allocation7 + $0x6a0] sm:$0xff] }
  0xfa   : > { %1160 = vmatmul.mubr.f32.gmra.mxu0 %v8219_v23  ;;  %1194 = vmatprep.subr.mxu0 %v296_v20  ;;  %v628_v20 = vld [vmem:[#allocation7 + $0xad0] sm:$0xff] }
  0xfb   : > { %1195 = vmatpush1.msra.mxu0 %v295_v21  ;;  %1280 = vmatpush1.msra.mxu1 %v709_v30  ;;  %v493_v21 = vld [vmem:[#allocation7 + $0x698] sm:$0xff]  ;;  %v619_v30 = vld [vmem:[#allocation7 + $0xa88] sm:$0xff] }
  0xfc   : > { %1196 = vmatprep.subr.mxu0 %v287_v27  ;;  %1281 = vmatprep.subr.mxu1 %v701_v32  ;;  %v485_v27 = vld [vmem:[#allocation7 + $0x658] sm:$0xff]  ;;  %v611_v32 = vld [vmem:[#allocation7 + $0xa48] sm:$0xff] }
  0xfd   : > { %1197 = vmatpush1.msra.mxu0 %v286_v31  ;;  %1282 = vmatpush1.msra.mxu1 %v700_v34  ;;  %v484_v31 = vld [vmem:[#allocation7 + $0x650] sm:$0xff]  ;;  %v610_v34 = vld [vmem:[#allocation7 + $0xa40] sm:$0xff] }
  0xfe   : > { %1198 = vmatprep.subr.mxu0 %v566_v33  ;;  %1283 = vmatprep.subr.mxu1 %v692_v38  ;;  %v476_v33 = vld [vmem:[#allocation7 + $0x610] sm:$0xff]  ;;  %v602_v38 = vld [vmem:[#allocation7 + $0xa00] sm:$0xff] }
  0xff   : > { %1199 = vmatpush2.msra.mxu0 %v565_v37  ;;  %1284 = vmatpush1.msra.mxu1 %v691_v41  ;;  %v475_v37 = vld [vmem:[#allocation7 + $0x608] sm:$0xff]  ;;  %v601_v41 = vld [vmem:[#allocation7 + $0x9f8] sm:$0xff] }
 0x100   : > { %1200 = vmatprep.subr.mxu0 %v557_v40  ;;  %1285 = vmatprep.subr.mxu1 %v683_v43  ;;  %v467_v40 = vld [vmem:[#allocation7 + $0x5c8] sm:$0xff]  ;;  %v593_v43 = vld [vmem:[#allocation7 + $0x9b8] sm:$0xff] }
 0x101   : > { %1201 = vmatpush2.msra.mxu0 %v556_v42  ;;  %1286 = vmatpush1.msra.mxu1 %v682_v45  ;;  %v466_v42 = vld [vmem:[#allocation7 + $0x5c0] sm:$0xff]  ;;  %v592_v45 = vld [vmem:[#allocation7 + $0x9b0] sm:$0xff] }
 0x102   : > { %1202 = vmatprep.subr.mxu0 %v548_v44  ;;  %1287 = vmatprep.subr.mxu1 %v674_v49  ;;  %v458_v44 = vld [vmem:[#allocation7 + $0x580] sm:$0xff]  ;;  %v584_v49 = vld [vmem:[#allocation7 + $0x970] sm:$0xff] }
 0x103   : > { %1203 = vmatpush2.msra.mxu0 %v547_v48  ;;  %1288 = vmatpush1.msra.mxu1 %v673_v3  ;;  %v457_v48 = vld [vmem:[#allocation7 + $0x578] sm:$0xff]  ;;  %v583_v3 = vld [vmem:[#allocation7 + $0x968] sm:$0xff] }
 0x104   : > { %1204 = vmatprep.subr.mxu0 %v539_v51  ;;  %1289 = vmatprep.subr.mxu1 %v665_v53  ;;  %v449_v51 = vld [vmem:[#allocation7 + $0x538] sm:$0xff]  ;;  %v575_v53 = vld [vmem:[#allocation7 + $0x928] sm:$0xff] }
 0x105   : > { %1205 = vmatpush2.msra.mxu0 %v538_v52  ;;  %1290 = vmatpush1.msra.mxu1 %v664_v55  ;;  %v448_v52 = vld [vmem:[#allocation7 + $0x530] sm:$0xff]  ;;  %v439_v55 = vld [vmem:[#allocation7 + $0x4e8] sm:$0xff] }
 0x106   : > { %1206 = vmatprep.subr.mxu0 %v530_v54  ;;  %1291 = vmatprep.subr.mxu1 %v656_v59  ;;  %v440_v54 = vld [vmem:[#allocation7 + $0x4f0] sm:$0xff]  ;;  %v431_v59 = vld [vmem:[#allocation7 + $0x4a8] sm:$0xff] }
 0x107   : > { %1207 = vmatpush2.msra.mxu0 %v529_v56  ;;  %1292 = vmatpush1.msra.mxu1 %v655_v62  ;;  %v574_v56 = vld [vmem:[#allocation7 + $0x920] sm:$0xff]  ;;  %v712_v62 = vld [vmem:[#allocation7 + $0xd70] sm:$0xff] }
 0x108   : > { %1208 = vmatprep.subr.mxu0 %v521_v60  ;;  %1293 = vmatprep.subr.mxu1 %v647_v1  ;;  %v430_v60 = vld [vmem:[#allocation7 + $0x4a0] sm:$0xff]  ;;  %v711_v1 = vld [vmem:[#allocation7 + $0xd68] sm:$0xff] }
 0x109   : > { %1209 = vmatpush2.msra.mxu0 %v520_v63  ;;  %1294 = vmatpush1.msra.mxu1 %v646_v5  ;;  %v8263_v63 = vld [vmem:[%s8110_s11 + $0x10] sm:$0xff]  ;;  %v703_v5 = vld [vmem:[#allocation7 + $0xd28] sm:$0xff] }
 0x10a   : > { %1210 = vmatprep.subr.mxu0 %v512_v2  ;;  %1295 = vmatprep.subr.mxu1 %v638_v10  ;;  %v424_v2 = vld [vmem:[#allocation7 + $0x470] sm:$0xff]  ;;  %v423_v10 = vld [vmem:[#allocation7 + $0x468] sm:$0xff] }
 0x10b   : > { %1211 = vmatpush2.msra.mxu0 %v511_v7  ;;  %1296 = vmatpush1.msra.mxu1 %v637_v15  ;;  %v694_v7 = vld [vmem:[#allocation7 + $0xce0] sm:$0xff]  ;;  %v415_v15 = vld [vmem:[#allocation7 + $0x428] sm:$0xff] }
 0x10c   : > { %1212 = vmatprep.subr.mxu0 %v503_v11  ;;  %1297 = vmatprep.subr.mxu1 %v629_v18  ;;  %v693_v11 = vld [vmem:[#allocation7 + $0xcd8] sm:$0xff]  ;;  %v406_v18 = vld [vmem:[#allocation7 + $0x3e0] sm:$0xff] }
 0x10d   : > { %1213 = vmatpush2.msra.mxu0 %v502_v16  ;;  %1298 = vmatpush1.msra.mxu1 %v628_v20  ;;  %v414_v16 = vld [vmem:[#allocation7 + $0x420] sm:$0xff]  ;;  %v639_v20 = vld [vmem:[#allocation7 + $0xb28] sm:$0xff] }
 0x10e   : > { %1214 = vmatprep.subr.mxu0 %v494_v19  ;;  %1299 = vmatprep.subr.mxu1 %v620_v26  ;;  %v405_v19 = vld [vmem:[#allocation7 + $0x3d8] sm:$0xff] }
 0x10f   : > { %1215 = vmatpush2.msra.mxu0 %v493_v21  ;;  %1300 = vmatpush1.msra.mxu1 %v619_v30  ;;  %v622_v21 = vld [vmem:[#allocation7 + $0xaa0] sm:$0xff]  ;;  %v621_v26 = vld [vmem:[#allocation7 + $0xa98] sm:$0xff] }
 0x110   : > { %1216 = vmatprep.subr.mxu0 %v485_v27  ;;  %1301 = vmatprep.subr.mxu1 %v611_v32  ;;  %v604_v27 = vld [vmem:[#allocation7 + $0xa10] sm:$0xff]  ;;  %v397_v30 = vld [vmem:[#allocation7 + $0x398] sm:$0xff]  ;;  %v595_v32 = vld [vmem:[#allocation7 + $0x9c8] sm:$0xff] }
 0x111   : > { %1217 = vmatpush2.msra.mxu0 %v484_v31  ;;  %1302 = vmatpush1.msra.mxu1 %v610_v34  ;;  %v603_v31 = vld [vmem:[#allocation7 + $0xa08] sm:$0xff] }
 0x112   : > { %1218 = vmatprep.subr.mxu0 %v476_v33  ;;  %1303 = vmatprep.subr.mxu1 %v602_v38  ;;  %v594_v33 = vld [vmem:[#allocation7 + $0x9c0] sm:$0xff]  ;;  %v387_v34 = vld [vmem:[#allocation7 + $0x348] sm:$0xff] }
 0x113   : > { %1219 = vmatpush2.msra.mxu0 %v475_v37  ;;  %1304 = vmatpush1.msra.mxu1 %v601_v41  ;;  %v586_v37 = vld [vmem:[#allocation7 + $0x980] sm:$0xff]  ;;  %v379_v38 = vld [vmem:[#allocation7 + $0x308] sm:$0xff]  ;;  %v577_v41 = vld [vmem:[#allocation7 + $0x938] sm:$0xff] }
 0x114   : > { %1220 = vmatprep.subr.mxu0 %v467_v40  ;;  %1305 = vmatprep.subr.mxu1 %v593_v43  ;;  %v585_v40 = vld [vmem:[#allocation7 + $0x978] sm:$0xff]  ;;  %v576_v43 = vld [vmem:[#allocation7 + $0x930] sm:$0xff] }
 0x115   : > { %1221 = vmatpush2.msra.mxu0 %v466_v42  ;;  %1306 = vmatpush1.msra.mxu1 %v592_v45  ;;  %v370_v42 = vld [vmem:[#allocation7 + $0x2c0] sm:$0xff]  ;;  %v569_v45 = vld [vmem:[#allocation7 + $0x8f8] sm:$0xff] }
 0x116   : > { %1222 = vmatprep.subr.mxu0 %v458_v44  ;;  %1307 = vmatprep.subr.mxu1 %v584_v49  ;;  %v369_v44 = vld [vmem:[#allocation7 + $0x2b8] sm:$0xff]  ;;  %v560_v49 = vld [vmem:[#allocation7 + $0x8b0] sm:$0xff] }
 0x117   : > { %1223 = vmatpush2.msra.mxu0 %v457_v48  ;;  %1308 = vmatpush1.msra.mxu1 %v583_v3  ;;  %v425_v48 = vld [vmem:[#allocation7 + $0x478] sm:$0xff]  ;;  %v416_v3 = vld [vmem:[#allocation7 + $0x430] sm:$0xff] }
 0x118   : > { %1224 = vmatprep.subr.mxu0 %v449_v51  ;;  %1309 = vmatprep.subr.mxu1 %v575_v53  ;;  %v361_v51 = vld [vmem:[#allocation7 + $0x278] sm:$0xff]  ;;  %v551_v53 = vld [vmem:[#allocation7 + $0x868] sm:$0xff] }
 0x119   : > { %1225 = vmatpush2.msra.mxu0 %v448_v52  ;;  %1230 = vmatprep.mubr.f32.mxu0 %v8130_v4  ;;  %v702_v4 = vld [vmem:[#allocation7 + $0xd20] sm:$0xff]  ;;  %v360_v52 = vld [vmem:[#allocation7 + $0x270] sm:$0xff] }
 0x11a   : > { %1226 = vmatprep.subr.mxu0 %v440_v54  ;;  %1310 = vmatpush1.msra.mxu1 %v574_v56  ;;  %v407_v54 = vld [vmem:[#allocation7 + $0x3e8] sm:$0xff]  ;;  %v352_v56 = vld [vmem:[#allocation7 + $0x230] sm:$0xff] }
 0x11b   : > { %1227 = vmatpush2.msra.mxu0 %v439_v55  ;;  %1343 = vmatprep.mubr.f32.mxu1 %v10380_v0  ;;  %v542_v55 = vld [vmem:[#allocation7 + $0x820] sm:$0xff] }
 0x11c   : > { %1228 = vmatprep.subr.mxu0 %v431_v59  ;;  %1344 = vmatmul.mubr.f32.vlgmr.msra.gmra.mxu1 %v8263_v63  ;;  %v8299_v59 = vld [vmem:[%s8110_s11 + $0x28] sm:$0xff] }
 0x11d   : > { %1229 = vmatpush2.msra.mxu0 %v430_v60  ;;  %1349 = vmatprep.mubr.f32.mxu1 %v10380_v0  ;;  %v398_v60 = vld [vmem:[#allocation7 + $0x3a0] sm:$0xff] }
 0x11e   : > { %1231 = vmatmul.mubr.f32.vlgmr.msra.gmra.mxu0 %v8133_v6  ;;  %1505 = vmatprep.subr.mxu0 %v712_v62  ;;  %v685_v6 = vld [vmem:[#allocation7 + $0xc98] sm:$0xff]  ;;  %v351_v62 = vld [vmem:[#allocation7 + $0x228] sm:$0xff] }
 0x11f   : > { %1236 = vmatprep.mubr.f32.mxu0 %v8138_v13  ;;  %1506 = vmatpush1.msra.mxu0 %v711_v1  ;;  %v684_v13 = vld [vmem:[#allocation7 + $0xc90] sm:$0xff]  ;;  %v533_v1 = vld [vmem:[#allocation7 + $0x7d8] sm:$0xff] }
 0x120   : > { %1392 = vmatprep.subr.mxu1 %v424_v2  ;;  %1350 = vmatmul.mubr.f32.gmra.mxu1 %v8141_v14  ;;  %v676_v14 = vld [vmem:[#allocation7 + $0xc50] sm:$0xff]  ;;  %v389_v2 = vld [vmem:[#allocation7 + $0x358] sm:$0xff] }
 0x121   : > { %1507 = vmatprep.subr.mxu0 %v703_v5  ;;  %1355 = vmatprep.mubr.f32.mxu1 %v10380_v0  ;;  %v524_v5 = vld [vmem:[#allocation7 + $0x790] sm:$0xff] }
 0x122   : > { %1237 = vmatmul.mubr.f32.gmra.mxu0 %v8145_v17  ;;  %1393 = vmatpush1.msra.mxu1 %v423_v10  ;;  %v675_v17 = vld [vmem:[#allocation7 + $0xc48] sm:$0xff]  ;;  %v380_v10 = vld [vmem:[#allocation7 + $0x310] sm:$0xff] }
 0x123   : > { %1242 = vmatprep.mubr.f32.mxu0 %v8151_v24  ;;  %1508 = vmatpush1.msra.mxu0 %v702_v4  ;;  %v667_v24 = vld [vmem:[#allocation7 + $0xc08] sm:$0xff] }
 0x124   : > { %1509 = vmatprep.subr.mxu0 %v694_v7  ;;  %1356 = vmatmul.mubr.f32.gmra.mxu1 %v8154_v25  ;;  %v666_v25 = vld [vmem:[#allocation7 + $0xc00] sm:$0xff]  ;;  %v343_v4 = vld [vmem:[#allocation7 + $0x1e8] sm:$0xff] }
 0x125   : > { %1510 = vmatpush1.msra.mxu0 %v693_v11  ;;  %1361 = vmatprep.mubr.f32.mxu1 %v10380_v0  ;;  %v8304_v7 = vld [vmem:[%s8110_s11 + $0x40] sm:$0xff] }
 0x126   : > { %1243 = vmatmul.mubr.f32.gmra.mxu0 %v8158_v28  ;;  %1511 = vmatprep.subr.mxu0 %v685_v6  ;;  %v658_v28 = vld [vmem:[#allocation7 + $0xbc0] sm:$0xff]  ;;  %v515_v6 = vld [vmem:[#allocation7 + $0x748] sm:$0xff] }
 0x127   : > { %1248 = vmatprep.mubr.f32.mxu0 %v8164_v35  ;;  %1512 = vmatpush1.msra.mxu0 %v684_v13  ;;  %v657_v35 = vld [vmem:[#allocation7 + $0xbb8] sm:$0xff]  ;;  %v342_v11 = vld [vmem:[#allocation7 + $0x1e0] sm:$0xff]  ;;  %v371_v13 = vld [vmem:[#allocation7 + $0x2c8] sm:$0xff] }
 0x128   : > { %1394 = vmatprep.subr.mxu1 %v415_v15  ;;  %1362 = vmatmul.mubr.f32.gmra.mxu1 %v8167_v36  ;;  %v649_v36 = vld [vmem:[#allocation7 + $0xb78] sm:$0xff]  ;;  %v506_v15 = vld [vmem:[#allocation7 + $0x700] sm:$0xff] }
 0x129   : > { %1513 = vmatprep.subr.mxu0 %v676_v14  ;;  %1367 = vmatprep.mubr.f32.mxu1 %v10380_v0  ;;  %v334_v14 = vld [vmem:[#allocation7 + $0x1a0] sm:$0xff] }
 0x12a   : > { %1249 = vmatmul.mubr.f32.gmra.mxu0 %v8171_v39  ;;  %1395 = vmatpush1.msra.mxu1 %v414_v16  ;;  %v648_v39 = vld [vmem:[#allocation7 + $0xb70] sm:$0xff]  ;;  %v333_v16 = vld [vmem:[#allocation7 + $0x198] sm:$0xff] }
 0x12b   : > { %1254 = vmatprep.mubr.f32.mxu0 %v8177_v46  ;;  %1514 = vmatpush1.msra.mxu0 %v675_v17  ;;  %v640_v46 = vld [vmem:[#allocation7 + $0xb30] sm:$0xff]  ;;  %v8309_v17 = vld [vmem:[%s8110_s11 + $0x58] sm:$0xff] }
 0x12c   : > { %1515 = vmatprep.subr.mxu0 %v667_v24  ;;  %1368 = vmatmul.mubr.f32.gmra.mxu1 %v8180_v47  ;;  %v362_v24 = vld [vmem:[#allocation7 + $0x280] sm:$0xff] }
 0x12d   : > { %1516 = vmatpush1.msra.mxu0 %v666_v25  ;;  %1373 = vmatprep.mubr.f32.mxu1 %v10380_v0  ;;  %v497_v25 = vld [vmem:[#allocation7 + $0x6b8] sm:$0xff] }
 0x12e   : > { %1255 = vmatmul.mubr.f32.gmra.mxu0 %v8184_v50  ;;  %1517 = vmatprep.subr.mxu0 %v658_v28  ;;  %v631_v50 = vld [vmem:[#allocation7 + $0xae8] sm:$0xff]  ;;  %v353_v28 = vld [vmem:[#allocation7 + $0x238] sm:$0xff] }
 0x12f   : > { %1260 = vmatprep.mubr.f32.mxu0 %v8190_v57  ;;  %1518 = vmatpush1.msra.mxu0 %v657_v35  ;;  %v630_v57 = vld [vmem:[#allocation7 + $0xae0] sm:$0xff]  ;;  %v488_v35 = vld [vmem:[#allocation7 + $0x670] sm:$0xff] }
 0x130   : > { %1396 = vmatprep.subr.mxu1 %v406_v18  ;;  %1374 = vmatmul.mubr.f32.gmra.mxu1 %v8193_v58  ;;  %v325_v18 = vld [vmem:[#allocation7 + $0x158] sm:$0xff] }
 0x131   : > { %1519 = vmatprep.subr.mxu0 %v649_v36  ;;  %1379 = vmatprep.mubr.f32.mxu1 %v10380_v0  ;;  %v344_v36 = vld [vmem:[#allocation7 + $0x1f0] sm:$0xff] }
 0x132   : > { %1261 = vmatmul.mubr.f32.gmra.mxu0 %v8197_v61  ;;  %1397 = vmatpush1.msra.mxu1 %v405_v19  ;;  %v613_v61 = vld [vmem:[#allocation7 + $0xa58] sm:$0xff]  ;;  %v335_v19 = vld [vmem:[#allocation7 + $0x1a8] sm:$0xff] }
 0x133   : > { %1520 = vmatpush1.msra.mxu0 %v648_v39  ;;  %1266 = vmatprep.mubr.f32.mxu0 %v8203_v8  ;;  %v612_v8 = vld [vmem:[#allocation7 + $0xa50] sm:$0xff] }
 0x134   : > { %1521 = vmatprep.subr.mxu0 %v640_v46  ;;  %1380 = vmatmul.mubr.f32.gmra.mxu1 %v8206_v9  ;;  %v324_v39 = vld [vmem:[#allocation7 + $0x150] sm:$0xff]  ;;  %v479_v46 = vld [vmem:[#allocation7 + $0x628] sm:$0xff] }
 0x135   : > { %1522 = vmatpush1.msra.mxu0 %v639_v20  ;;  %1385 = vmatprep.mubr.f32.mxu1 %v10380_v0  ;;  %v470_v20 = vld [vmem:[#allocation7 + $0x5e0] sm:$0xff] }
 0x136   : > { %1267 = vmatmul.mubr.f32.gmra.mxu0 %v8210_v12  ;;  %1523 = vmatprep.subr.mxu0 %v631_v50  ;;  %v396_v12 = vld [vmem:[#allocation7 + $0x390] sm:$0xff] }
 0x137   : > { %1524 = vmatpush1.msra.mxu0 %v630_v57  ;;  %1272 = vmatprep.mubr.f32.mxu0 %v8216_v22  ;;  %v388_v22 = vld [vmem:[#allocation7 + $0x350] sm:$0xff]  ;;  %v326_v57 = vld [vmem:[#allocation7 + $0x160] sm:$0xff] }
 0x138   : > { %1525 = vmatprep.subr.mxu0 %v622_v21  ;;  %1386 = vmatmul.mubr.f32.gmra.mxu1 %v8219_v23  ;;  %v316_v50 = vld [vmem:[#allocation7 + $0x110] sm:$0xff]  ;;  %v315_v21 = vld [vmem:[#allocation7 + $0x108] sm:$0xff] }
 0x139   : > { %1526 = vmatpush1.msra.mxu0 %v621_v26  ;;  %1398 = vmatprep.subr.mxu1 %v397_v30  ;;  %v317_v26 = vld [vmem:[#allocation7 + $0x118] sm:$0xff]  ;;  %v306_v30 = vld [vmem:[#allocation7 + $0xc0] sm:$0xff] }
 0x13a   : > { %1273 = vmatmul.mubr.f32.gmra.mxu0 %v8223_v29  ;;  %1527 = vmatprep.subr.mxu0 %v613_v61  ;;  %v378_v29 = vld [vmem:[#allocation7 + $0x300] sm:$0xff]  ;;  %v452_v61 = vld [vmem:[#allocation7 + $0x550] sm:$0xff] }
 0x13b   : > { %1528 = vmatpush1.msra.mxu0 %v612_v8  ;;  %1569 = vmatprep.mubr.f32.mxu0 %v10380_v0  ;;  %v307_v8 = vld [vmem:[#allocation7 + $0xc8] sm:$0xff] }
 0x13c   : > { %1529 = vmatprep.subr.mxu0 %v604_v27  ;;  %1399 = vmatpush1.msra.mxu1 %v396_v12  ;;  %v308_v27 = vld [vmem:[#allocation7 + $0xd0] sm:$0xff]  ;;  %v434_v12 = vld [vmem:[#allocation7 + $0x4c0] sm:$0xff] }
 0x13d   : > { %1530 = vmatpush1.msra.mxu0 %v603_v31  ;;  %1400 = vmatprep.subr.mxu1 %v388_v22  ;;  %v299_v31 = vld [vmem:[#allocation7 + $0x88] sm:$0xff]  ;;  %v297_v22 = vld [vmem:[#allocation7 + $0x78] sm:$0xff] }
 0x13e   : > { %1531 = vmatprep.subr.mxu0 %v595_v32  ;;  %1401 = vmatpush1.msra.mxu1 %v387_v34  ;;  %v298_v32 = vld [vmem:[#allocation7 + $0x80] sm:$0xff]  ;;  %v289_v34 = vld [vmem:[#allocation7 + $0x38] sm:$0xff] }
 0x13f   : > { %1532 = vmatpush1.msra.mxu0 %v594_v33  ;;  %1402 = vmatprep.subr.mxu1 %v379_v38  ;;  %v7723_v33 = vld [vmem:[%s8110_s11 + $0x8] sm:$0xff]  ;;  %v568_v38 = vld [vmem:[#allocation7 + $0x8f0] sm:$0xff] }
 0x140   : > { %1533 = vmatprep.subr.mxu0 %v586_v37  ;;  %1403 = vmatpush1.msra.mxu1 %v378_v29  ;;  %v288_v37 = vld [vmem:[#allocation7 + $0x30] sm:$0xff]  ;;  %v8326_v29 = vld [vmem:[%s8110_s11 + $0x20] sm:$0xff] }
 0x141   : > { %1534 = vmatpush1.msra.mxu0 %v585_v40  ;;  %1404 = vmatprep.subr.mxu1 %v370_v42  ;;  %v8322_v40 = vld [vmem:[%s8110_s11] sm:$0xff] }
 0x142   : > { %1535 = vmatprep.subr.mxu0 %v577_v41  ;;  %1405 = vmatpush1.msra.mxu1 %v369_v44  ;;  %v559_v41 = vld [vmem:[#allocation7 + $0x8a8] sm:$0xff]  ;;  %v558_v42 = vld [vmem:[#allocation7 + $0x8a0] sm:$0xff]  ;;  %v8330_v44 = vld [vmem:[%s8110_s11 + $0x18] sm:$0xff] }
 0x143   : > { %1536 = vmatpush1.msra.mxu0 %v576_v43  ;;  %1406 = vmatprep.subr.mxu1 %v361_v51  ;;  %v550_v43 = vld [vmem:[#allocation7 + $0x860] sm:$0xff]  ;;  %v540_v51 = vld [vmem:[#allocation7 + $0x810] sm:$0xff] }
 0x144   : > { %1570 = vmatmul.mubr.f32.vlgmr.msra.gmra.mxu0 %v8263_v63  ;;  %6362 = vmatprep.subr.mxu0 %v569_v45  ;;  %v549_v45 = vld [vmem:[#allocation7 + $0x858] sm:$0xff] }
 0x145   : > { %6363 = vmatpush3.msra.mxu0 %v425_v48  ;;  %1575 = vmatprep.mubr.f32.mxu0 %v10380_v0  ;;  %v8334_v48 = vld [vmem:[%s8110_s11 + $0x38] sm:$0xff] }
 0x146   : > { %6364 = vmatprep.subr.mxu0 %v560_v49  ;;  %1407 = vmatpush1.msra.mxu1 %v360_v52  ;;  %v541_v49 = vld [vmem:[#allocation7 + $0x818] sm:$0xff] }
 0x147   : > { %6365 = vmatpush3.msra.mxu0 %v416_v3  ;;  %1408 = vmatprep.subr.mxu1 %v352_v56  ;;  %v532_v3 = vld [vmem:[#allocation7 + $0x7d0] sm:$0xff]  ;;  %v523_v56 = vld [vmem:[#allocation7 + $0x788] sm:$0xff] }
 0x148   : > { %1576 = vmatmul.mubr.f32.gmra.mxu0 %v8299_v59  ;;  %6366 = vmatprep.subr.mxu0 %v551_v53  ;;  %v8340_v53 = vld [vmem:[%s8110_s11 + $0x30] sm:$0xff] }
 0x149   : > { %6367 = vmatpush3.msra.mxu0 %v407_v54  ;;  %1581 = vmatprep.mubr.f32.mxu0 %v10380_v0  ;;  %v531_v54 = vld [vmem:[#allocation7 + $0x7c8] sm:$0xff] }
 0x14a   : > { %6368 = vmatprep.subr.mxu0 %v542_v55  ;;  %1409 = vmatpush1.msra.mxu1 %v351_v62  ;;  %v8344_v55 = vld [vmem:[%s8110_s11 + $0x50] sm:$0xff] }
 0x14b   : > { %6369 = vmatpush3.msra.mxu0 %v398_v60  ;;  %1410 = vmatprep.subr.mxu1 %v343_v4  ;;  %v522_v60 = vld [vmem:[#allocation7 + $0x780] sm:$0xff]  ;;  %v513_v4 = vld [vmem:[#allocation7 + $0x738] sm:$0xff] }
 0x14c   : > { %1582 = vmatmul.mubr.f32.gmra.mxu0 %v8304_v7  ;;  %6370 = vmatprep.subr.mxu0 %v533_v1  ;;  %v514_v1 = vld [vmem:[#allocation7 + $0x740] sm:$0xff] }
 0x14d   : > { %6371 = vmatpush3.msra.mxu0 %v389_v2  ;;  %1587 = vmatprep.mubr.f32.mxu0 %v10380_v0  ;;  %v8337_v52 = vpop.f32.mrf.mxu1 }
 0x14e   : > { %6372 = vmatprep.subr.mxu0 %v524_v5  ;;  %1411 = vmatpush1.msra.mxu1 %v342_v11  ;;  %v8350_v5 = vld [vmem:[%s8110_s11 + $0x48] sm:$0xff] }
 0x14f   : > { %6373 = vmatpush3.msra.mxu0 %v380_v10  ;;  %1412 = vmatprep.subr.mxu1 %v334_v14  ;;  %v8347_v2 = vpop.f32.mrf.mxu1  ;;  %v8356_v11 = vld [vmem:[%s8110_s11 + $0x68] sm:$0xff]  ;;  %v496_v14 = vld [vmem:[#allocation7 + $0x6b0] sm:$0xff] }
 0x150   : > { %1588 = vmatmul.mubr.f32.gmra.mxu0 %v8309_v17  ;;  %6374 = vmatprep.subr.mxu0 %v515_v6  ;;  %v505_v6 = vld [vmem:[#allocation7 + $0x6f8] sm:$0xff] }
 0x151   : > { %6375 = vmatpush3.msra.mxu0 %v371_v13  ;;  %1593 = vmatprep.mubr.f32.mxu0 %v10380_v0  ;;  %v504_v13 = vld [vmem:[#allocation7 + $0x6f0] sm:$0xff] }
 0x152   : > { %6376 = vmatprep.subr.mxu0 %v506_v15  ;;  %1413 = vmatpush1.msra.mxu1 %v333_v16  ;;  %v495_v16 = vld [vmem:[#allocation7 + $0x6a8] sm:$0xff] }
 0x153   : > { %6377 = vmatpush3.msra.mxu0 %v362_v24  ;;  %1414 = vmatprep.subr.mxu1 %v325_v18  ;;  %v8360_v24 = vld [vmem:[%s8110_s11 + $0x60] sm:$0xff]  ;;  %v487_v18 = vld [vmem:[#allocation7 + $0x668] sm:$0xff] }
 0x154   : > { %1594 = vmatmul.mubr.f32.gmra.mxu0 %v8180_v47  ;;  %6378 = vmatprep.subr.mxu0 %v497_v25  ;;  %v461_v47 = vld [vmem:[#allocation7 + $0x598] sm:$0xff] }
 0x155   : > { %6379 = vmatpush3.msra.mxu0 %v353_v28  ;;  %1599 = vmatprep.mubr.f32.mxu0 %v10380_v0 }
 0x156   : > { %6380 = vmatprep.subr.mxu0 %v488_v35  ;;  %1415 = vmatpush1.msra.mxu1 %v324_v39  ;;  %v8366_v35 = vld [vmem:[%s8110_s11 + $0x80] sm:$0xff] }
 0x157   : > { %6381 = vmatpush3.msra.mxu0 %v344_v36  ;;  %1416 = vmatprep.subr.mxu1 %v316_v50  ;;  %v486_v39 = vld [vmem:[#allocation7 + $0x660] sm:$0xff]  ;;  %v477_v50 = vld [vmem:[#allocation7 + $0x618] sm:$0xff] }
 0x158   : > { %1600 = vmatmul.mubr.f32.gmra.mxu0 %v8193_v58  ;;  %6382 = vmatprep.subr.mxu0 %v479_v46  ;;  %v443_v58 = vld [vmem:[#allocation7 + $0x508] sm:$0xff] }
 0x159   : > { %6383 = vmatpush3.msra.mxu0 %v335_v19  ;;  %1605 = vmatprep.mubr.f32.mxu0 %v10380_v0  ;;  %v478_v19 = vld [vmem:[#allocation7 + $0x620] sm:$0xff] }
 0x15a   : > { %6384 = vmatprep.subr.mxu0 %v470_v20  ;;  %1417 = vmatpush1.msra.mxu1 %v315_v21  ;;  %v8374_v20 = vld [vmem:[%s8110_s11 + $0x78] sm:$0xff] }
 0x15b   : > { %6385 = vmatpush3.msra.mxu0 %v326_v57  ;;  %1418 = vmatprep.subr.mxu1 %v307_v8  ;;  %v8378_v21 = vld [vmem:[%s8110_s11 + $0x98] sm:$0xff] }
 0x15c   : > { %1606 = vmatmul.mubr.f32.gmra.mxu0 %v8206_v9  ;;  %6386 = vmatprep.subr.mxu0 %v461_v47  ;;  %v290_v9 = vld [vmem:[#allocation7 + $0x40] sm:$0xff]  ;;  %v469_v47 = vld [vmem:[#allocation7 + $0x5d8] sm:$0xff] }
 0x15d   : > { %6387 = vmatpush3.msra.mxu0 %v317_v26  ;;  %1611 = vmatprep.mubr.f32.mxu0 %v10380_v0  ;;  %v468_v26 = vld [vmem:[#allocation7 + $0x5d0] sm:$0xff] }
 0x15e   : > { %6388 = vmatprep.subr.mxu0 %v452_v61  ;;  %1419 = vmatpush1.msra.mxu1 %v306_v30 }
 0x15f   : > { %6389 = vmatpush3.msra.mxu0 %v308_v27  ;;  %1420 = vmatprep.subr.mxu1 %v298_v32  ;;  %v460_v27 = vld [vmem:[#allocation7 + $0x590] sm:$0xff] }
 0x160   : > { %1612 = vmatmul.mubr.f32.gmra.mxu0 %v8219_v23  ;;  %6390 = vmatprep.subr.mxu0 %v443_v58  ;;  %v567_v23 = vld [vmem:[#allocation7 + $0x8e8] sm:$0xff]  ;;  %v8386_v58 = vld [vmem:[%s8110_s11 + $0x90] sm:$0xff] }
 0x161   : > { %6391 = vmatpush3.msra.mxu0 %v299_v31  ;;  %1682 = vmatprep.mubr.f32.mxu0 %v7723_v33  ;;  %v459_v31 = vld [vmem:[#allocation7 + $0x588] sm:$0xff] }
 0x162   : > { %6392 = vmatprep.subr.mxu0 %v434_v12  ;;  %1421 = vmatpush1.msra.mxu1 %v297_v22  ;;  %v451_v22 = vld [vmem:[#allocation7 + $0x548] sm:$0xff] }
 0x163   : > { %6393 = vmatpush3.msra.mxu0 %v290_v9  ;;  %1422 = vmatprep.subr.mxu1 %v289_v34  ;;  %v8395_v9 = vld [vmem:[%s8110_s11 + $0xb0] sm:$0xff] }
 0x164   : > { %1683 = vmatmul.mubr.f32.vlgmr.msra.gmra.mxu0 %v8322_v40  ;;  %1423 = vmatpush1.msra.mxu1 %v288_v37  ;;  %v442_v37 = vld [vmem:[#allocation7 + $0x500] sm:$0xff] }
 0x165   : > { %1687 = vmatprep.mubr.f32.mxu0 %v8326_v29  ;;  %1424 = vmatprep.subr.mxu1 %v568_v38  ;;  %v8401_v38 = vld [vmem:[%s8110_s11 + $0xa8] sm:$0xff] }
 0x166   : > { %1456 = vmatprep.mubr.f32.mxu1 %v7723_v33  ;;  %1425 = vmatpush2.msra.mxu1 %v567_v23  ;;  %v450_v33 = vld [vmem:[#allocation7 + $0x540] sm:$0xff]  ;;  %v441_v23 = vld [vmem:[#allocation7 + $0x4f8] sm:$0xff] }
 0x167   : > { %1426 = vmatprep.subr.mxu1 %v559_v41 }
 0x168   : > { %1688 = vmatmul.mubr.f32.gmra.mxu0 %v8330_v44  ;;  %1427 = vmatpush2.msra.mxu1 %v558_v42 }
 0x169   : > { %1692 = vmatprep.mubr.f32.mxu0 %v8334_v48  ;;  %1428 = vmatprep.subr.mxu1 %v550_v43  ;;  %v433_v43 = vld [vmem:[#allocation7 + $0x4b8] sm:$0xff] }
 0x16a   : > { %1429 = vmatpush2.msra.mxu1 %v549_v45  ;;  %v432_v45 = vld [vmem:[#allocation7 + $0x4b0] sm:$0xff] }
 0x16b   : > { %1430 = vmatprep.subr.mxu1 %v541_v49 }
 0x16c   : > { %1693 = vmatmul.mubr.f32.gmra.mxu0 %v8340_v53  ;;  %1431 = vmatpush2.msra.mxu1 %v540_v51  ;;  %v713_v51 = vld [vmem:[#allocation7 + $0xd78] sm:$0xff] }
 0x16d   : > { %1697 = vmatprep.mubr.f32.mxu0 %v8344_v55  ;;  %1432 = vmatprep.subr.mxu1 %v532_v3  ;;  %v780_v62 = vpop.f32.mrf.mxu0 }
 0x16e   : > { %1433 = vmatpush2.msra.mxu1 %v531_v54  ;;  %v8392_v32 = vadd.f32 %v8337_v52, %v780_v62  ;;  %v704_v52 = vld [vmem:[#allocation7 + $0xd30] sm:$0xff]  ;;  %v695_v62 = vld [vmem:[#allocation7 + $0xce8] sm:$0xff] }
 0x16f   : > { %1434 = vmatprep.subr.mxu1 %v523_v56  ;;  %v8353_v10 = vpop.f32.mrf.mxu0 }
 0x170   : > { %1698 = vmatmul.mubr.f32.gmra.mxu0 %v8350_v5  ;;  %1435 = vmatpush2.msra.mxu1 %v522_v60 }
 0x171   : > { %1702 = vmatprep.mubr.f32.mxu0 %v8356_v11  ;;  %1436 = vmatprep.subr.mxu1 %v514_v1 }
 0x172   : > { %v899_v15 = vpop.f32.mrf.mxu1  ;;  %1437 = vmatpush2.msra.mxu1 %v513_v4  ;;  %v686_v4 = vld [vmem:[#allocation7 + $0xca0] sm:$0xff] }
 0x173   : > { %1438 = vmatprep.subr.mxu1 %v505_v6  ;;  %v786_v25 = vpop.f32.mrf.mxu0 }
 0x174   : > { %1703 = vmatmul.mubr.f32.gmra.mxu0 %v8360_v24  ;;  %v8363_v28 = vpop.f32.mrf.mxu1  ;;  %1439 = vmatpush2.msra.mxu1 %v504_v13  ;;  %v8369_v36 = vadd.f32 %v899_v15, %v786_v25  ;;  %v668_v15 = vld [vmem:[#allocation7 + $0xc10] sm:$0xff] }
 0x175   : > { %1707 = vmatprep.mubr.f32.mxu0 %v8366_v35  ;;  %1440 = vmatprep.subr.mxu1 %v496_v14  ;;  %v8371_v46 = vpop.f32.mrf.mxu0 }
 0x176   : > { %1441 = vmatpush2.msra.mxu1 %v495_v16 }
 0x177   : > { %1442 = vmatprep.subr.mxu1 %v487_v18 }
 0x178   : > { %1708 = vmatmul.mubr.f32.gmra.mxu0 %v8374_v20  ;;  %v905_v57 = vpop.f32.mrf.mxu1  ;;  %1443 = vmatpush2.msra.mxu1 %v486_v39 }
 0x179   : > { %1712 = vmatprep.mubr.f32.mxu0 %v8378_v21  ;;  %1444 = vmatprep.subr.mxu1 %v478_v19  ;;  %v792_v61 = vpop.f32.mrf.mxu0 }
 0x17a   : > { %v8381_v8 = vpop.f32.mrf.mxu1  ;;  %1445 = vmatpush2.msra.mxu1 %v477_v50  ;;  %v8383_v30 = vadd.f32 %v905_v57, %v792_v61  ;;  %v596_v61 = vld [vmem:[#allocation7 + $0x9d0] sm:$0xff] }
 0x17b   : > { %1446 = vmatprep.subr.mxu1 %v469_v47  ;;  %v8389_v12 = vpop.f32.mrf.mxu0 }
 0x17c   : > { %1713 = vmatmul.mubr.f32.gmra.mxu0 %v8386_v58  ;;  %1447 = vmatpush2.msra.mxu1 %v468_v26 }
 0x17d   : > { %1717 = vmatprep.mubr.f32.mxu0 %v8395_v9  ;;  %1448 = vmatprep.subr.mxu1 %v460_v27 }
 0x17e   : > { %v8398_v34 = vpop.f32.mrf.mxu1  ;;  %1449 = vmatpush2.msra.mxu1 %v459_v31 }
 0x17f   : > { %1450 = vmatprep.subr.mxu1 %v451_v22  ;;  %v8404_v41 = vpop.f32.mrf.mxu0 }
 0x180   : > { %1718 = vmatmul.mubr.f32.gmra.mxu0 %v8401_v38  ;;  %v8406_v42 = vpop.f32.mrf.mxu1  ;;  %1451 = vmatpush2.msra.mxu1 %v450_v33 }
 0x181   : > { %6870 = vmatprep.mubr.msk.f32.mxu0 %vm1943_vm0, %v8392_v32  ;;  %1452 = vmatprep.subr.mxu1 %v442_v37  ;;  %v8410_v49 = vpop.f32.mrf.mxu0  ;;  %v578_v37 = vld [vmem:[#allocation7 + $0x940] sm:$0xff] }
 0x182   : > { %1453 = vmatpush2.msra.mxu1 %v441_v23 }
 0x183   : > { %1454 = vmatprep.subr.mxu1 %v433_v43 }
 0x184   : > { %v917_v3 = vpop.f32.mrf.mxu1  ;;  %1455 = vmatpush2.msra.mxu1 %v432_v45 }
 0x185   : > { %1457 = vmatmul.mubr.f32.vlgmr.msra.gmra.mxu1 %v8322_v40  ;;  %v804_v54 = vpop.f32.mrf.mxu0  ;;  %6810 = vmatprep.subr.mxu1 %v713_v51  ;;  %v677_v40 = vld [vmem:[#allocation7 + $0xc58] sm:$0xff] }
 0x186   : > { %v8413_v56 = vpop.f32.mrf.mxu1  ;;  %1462 = vmatprep.mubr.f32.mxu1 %v8326_v29  ;;  %v8416_v60 = vadd.f32 %v917_v3, %v804_v54  ;;  %6811 = vmatpush3.msra.mxu1 %v713_v51 }
 0x187   : > { %v8418_v1 = vpop.f32.mrf.mxu0  ;;  %6812 = vmatprep.subr.mxu1 %v704_v52 }
 0x188   : > { %6813 = vmatpush3.msra.mxu1 %v704_v52 }
 0x189   : > { %1463 = vmatmul.mubr.f32.gmra.mxu1 %v8330_v44  ;;  %6814 = vmatprep.subr.mxu1 %v695_v62  ;;  %v659_v44 = vld [vmem:[#allocation7 + $0xbc8] sm:$0xff] }
 0x18a   : > { %v8421_v6 = vpop.f32.mrf.mxu1  ;;  %1468 = vmatprep.mubr.f32.mxu1 %v8334_v48  ;;  %6815 = vmatpush3.msra.mxu1 %v695_v62  ;;  %v650_v48 = vld [vmem:[#allocation7 + $0xb80] sm:$0xff] }
 0x18b   : > { %v8424_v13 = vpop.f32.mrf.mxu0  ;;  %6816 = vmatprep.subr.mxu1 %v686_v4 }
 0x18c   : > { %v8426_v29 = vpop.f32.mrf.mxu1  ;;  %6817 = vmatpush3.msra.mxu1 %v686_v4 }
 0x18d   : > { %1469 = vmatmul.mubr.f32.gmra.mxu1 %v8340_v53  ;;  %v8429_v14 = vpop.f32.mrf.mxu0  ;;  %6818 = vmatprep.subr.mxu1 %v677_v40  ;;  %v641_v53 = vld [vmem:[#allocation7 + $0xb38] sm:$0xff] }
 0x18e   : > { %1474 = vmatprep.mubr.f32.mxu1 %v8344_v55  ;;  %6819 = vmatpush3.msra.mxu1 %v677_v40  ;;  %v632_v55 = vld [vmem:[#allocation7 + $0xaf0] sm:$0xff] }
 0x18f   : > { %6820 = vmatprep.subr.mxu1 %v668_v15  ;;  %v7739_v40 = vld [vmem:[%s8110_s11 + $0x70] sm:$0xff] }
 0x190   : > { %v929_v16 = vpop.f32.mrf.mxu1  ;;  %6821 = vmatpush3.msra.mxu1 %v668_v15 }
 0x191   : > { %1475 = vmatmul.mubr.f32.gmra.mxu1 %v8350_v5  ;;  %v816_v25 = vpop.f32.mrf.mxu0  ;;  %6822 = vmatprep.subr.mxu1 %v659_v44  ;;  %v623_v5 = vld [vmem:[#allocation7 + $0xaa8] sm:$0xff] }
 0x192   : > { %v8433_v18 = vadd.f32 %v929_v16, %v816_v25  ;;  %v8435_v39 = vpop.f32.mrf.mxu1  ;;  %1480 = vmatprep.mubr.f32.mxu1 %v8356_v11  ;;  %6823 = vmatpush3.msra.mxu1 %v659_v44  ;;  %v614_v11 = vld [vmem:[#allocation7 + $0xa60] sm:$0xff]  ;;  %v7740_v16 = vld [vmem:[%s8110_s11 + $0x88] sm:$0xff] }
 0x193   : > { %v8438_v19 = vpop.f32.mrf.mxu0  ;;  %6824 = vmatprep.subr.mxu1 %v650_v48  ;;  %v7741_v25 = vld [vmem:[%s8110_s11 + $0xa0] sm:$0xff] }
 0x194   : > { %6825 = vmatpush3.msra.mxu1 %v650_v48 }
 0x195   : > { %1481 = vmatmul.mubr.f32.gmra.mxu1 %v8360_v24  ;;  %6826 = vmatprep.subr.mxu1 %v641_v53  ;;  %v605_v24 = vld [vmem:[#allocation7 + $0xa18] sm:$0xff] }
 0x196   : > { %v8441_v50 = vpop.f32.mrf.mxu1  ;;  %1486 = vmatprep.mubr.f32.mxu1 %v8366_v35  ;;  %6827 = vmatpush3.msra.mxu1 %v641_v53 }
 0x197   : > { %v8444_v57 = vpop.f32.mrf.mxu0  ;;  %6828 = vmatprep.subr.mxu1 %v632_v55 }
 0x198   : > { %6829 = vmatpush3.msra.mxu1 %v632_v55  ;;  %v8449_v26 = vpop.f32.mrf.mxu1 }
 0x199   : > { %v8446_v47 = vpop.f32.mrf.mxu0  ;;  %1487 = vmatmul.mubr.f32.gmra.mxu1 %v8374_v20  ;;  %6830 = vmatprep.subr.mxu1 %v623_v5  ;;  %v587_v20 = vld [vmem:[#allocation7 + $0x988] sm:$0xff] }
 0x19a   : > { %1492 = vmatprep.mubr.f32.mxu1 %v8378_v21  ;;  %6831 = vmatpush3.msra.mxu1 %v623_v5 }
 0x19b   : > { %6832 = vmatprep.subr.mxu1 %v614_v11 }
 0x19c   : > { %6833 = vmatpush3.msra.mxu1 %v614_v11 }
 0x19d   : > { %v1006_v35 = vpop.f32.mrf.mxu1  ;;  %v1119_v27 = vpop.f32.mrf.mxu0  ;;  %1493 = vmatmul.mubr.f32.gmra.mxu1 %v8386_v58  ;;  %6834 = vmatprep.subr.mxu1 %v605_v24 }
 0x19e   : > { %v8453_v31 = vadd.f32 %v1119_v27, %v1006_v35  ;;  %1498 = vmatprep.mubr.f32.mxu1 %v8395_v9  ;;  %6835 = vmatpush3.msra.mxu1 %v605_v24 }
 0x19f   : > { %v8455_v22 = vpop.f32.mrf.mxu1  ;;  %v8458_v33 = vpop.f32.mrf.mxu0  ;;  %6836 = vmatprep.subr.mxu1 %v596_v61 }
 0x1a0   : > { %6837 = vmatpush3.msra.mxu1 %v596_v61 }
 0x1a1   : > { %v1012_v21 = vpop.f32.mrf.mxu1  ;;  %1499 = vmatmul.mubr.f32.gmra.mxu1 %v8401_v38  ;;  %6838 = vmatprep.subr.mxu1 %v587_v20 }
 0x1a2   : > { %v1125_v23 = vpop.f32.mrf.mxu0  ;;  %6839 = vmatpush3.msra.mxu1 %v587_v20  ;;  %6842 = vmatprep.mubr.f32.mxu1 %v8263_v63 }
 0x1a3   : > { %v8461_v58 = vadd.f32 %v1125_v23, %v1012_v21  ;;  %v8463_v43 = vpop.f32.mrf.mxu1  ;;  %6840 = vmatprep.subr.mxu1 %v578_v37 }
 0x1a4   : > { %v8466_v9 = vpop.f32.mrf.mxu0  ;;  %6841 = vmatpush3.msra.mxu1 %v578_v37 }
 0x1a5   : > { %v1018_v45 = vpop.f32.mrf.mxu1  ;;  %6843 = vmatmul.mubr.f32.vlgmr.msra.gmra.mxu1 %v8299_v59 }
 0x1a6   : > { %v1131_v51 = vpop.f32.mrf.mxu0  ;;  %6845 = vmatprep.mubr.f32.mxu1 %v8304_v7 }
 0x1a7   : > { %v8469_v3 = vadd.f32 %v1131_v51, %v1018_v45  ;;  %v1020_v38 = vpop.f32.mrf.mxu1 }
 0x1a8   : > { %v1133_v52 = vpop.f32.mrf.mxu0 }
 0x1a9   : > { %v1024_v54 = vpop.f32.mrf.mxu1  ;;  %6846 = vmatmul.mubr.f32.gmra.mxu1 %v8309_v17  ;;  %v7742_v17 = vld [vmem:[%s8110_s11 + $0xb8] sm:$0xff] }
 0x1aa   : > { %v1137_v62 = vpop.f32.mrf.mxu0  ;;  %6848 = vmatprep.mubr.f32.mxu1 %v7739_v40 }
 0x1ab   : > { %v8473_v63 = vadd.f32 %v1137_v62, %v1024_v54  ;;  %v1026_v4 = vpop.f32.mrf.mxu1 }
 0x1ac   : > { %v1139_v15 = vpop.f32.mrf.mxu0 }
 0x1ad   : > { %v1030_v44 = vpop.f32.mrf.mxu1  ;;  %6849 = vmatmul.mubr.f32.gmra.mxu1 %v7740_v16  ;;  %v1134_v16 = vadd.f32 %v1133_v52, %v1020_v38  ;;  %v1140_v38 = vadd.f32 %v1139_v15, %v1026_v4  ;;  %v1128_v52 = vadd.f32 %v8466_v9, %v8463_v43 }
 0x1ae   : > { %v1143_v59 = vpop.f32.mrf.mxu0  ;;  %6851 = vmatprep.mubr.f32.mxu1 %v7741_v25 }
 0x1af   : > { %v8477_v48 = vadd.f32 %v1143_v59, %v1030_v44  ;;  %v1032_v7 = vpop.f32.mrf.mxu1 }
 0x1b0   : > { %v1145_v53 = vpop.f32.mrf.mxu0 }
 0x1b1   : > { %v1036_v55 = vpop.f32.mrf.mxu1  ;;  %6852 = vmatmul.mubr.f32.gmra.mxu1 %v7742_v17  ;;  %v1146_v45 = vadd.f32 %v1145_v53, %v1032_v7  ;;  %v1122_v7 = vadd.f32 %v8458_v33, %v8455_v22  ;;  %v912_v22 = vadd.f32 %v8398_v34, %v8404_v41  ;;  %v924_v33 = vadd.f32 %v8421_v6, %v8424_v13 }
 0x1b2   : > { %v1149_v5 = vpop.f32.mrf.mxu0  ;;  %v936_v34 = vadd.f32 %v8441_v50, %v8444_v57 }
 0x1b3   : > { %v8481_v11 = vadd.f32 %v1149_v5, %v1036_v55  ;;  %v1038_v24 = vpop.f32.mrf.mxu1 }
 0x1b4   : > { %v1151_v35 = vpop.f32.mrf.mxu0 }
 0x1b5   : > { %v1152_v61 = vadd.f32 %v1151_v35, %v1038_v24  ;;  %v1042_v27 = vpop.f32.mrf.mxu1 }
 0x1b6   : > { %v1155_v20 = vpop.f32.mrf.mxu0 }
 0x1b7   : > { %v8483_v21 = vadd.f32 %v1155_v20, %v1042_v27  ;;  %2517 = vrot.lane.b32.xlu1 %v1152_v61, %s7932_s21  ;;  %v1044_v37 = vpop.f32.mrf.mxu1 }
 0x1b8   : > { %v1157_v23 = vpop.f32.mrf.mxu0 }
 0x1b9   : > { %v1048_v51 = vpop.f32.mrf.mxu1  ;;  %v1158_v25 = vadd.f32 %v1157_v23, %v1044_v37 }
 0x1ba   : > { %v1161_v54 = vpop.f32.mrf.mxu0 }
 0x1bb   : > { %v8486_v62 = vadd.f32 %v1161_v54, %v1048_v51  ;;  %2515 = vrot.lane.b32.xlu1 %v1146_v45, %s7932_s21  ;;  %v1050_v40 = vpop.f32.mrf.mxu1 }
 0x1bc   : > { %v1163_v44 = vpop.f32.mrf.mxu0 }
 0x1bd   : > { %v1164_v59 = vadd.f32 %v1163_v44, %v1050_v40 }
 0x1bf   : > { %2521 = vrot.lane.b32.xlu0 %v1164_v59, %s7932_s21  ;;  %6854 = vmatprep.subr.msk.mxu0 %vm1943_vm0, %v1164_v59 }
 0x1c0   : > { %2511 = vrot.lane.b32.xlu1 %v1134_v16, %s7932_s21  ;;  %6855 = vmatpush3.xpose.msk.msra.mxu0 %vm1943_vm0, %v1164_v59 }
 0x1c1   : > { %6856 = vmatprep.subr.msk.mxu0 %vm1943_vm0, %v1158_v25 }
 0x1c3   : > { %2519 = vrot.lane.b32.xlu0 %v1158_v25, %s7932_s21 }
 0x1c4   : > { %2507 = vrot.lane.b32.xlu1 %v1122_v7, %s7932_s21  ;;  %6857 = vmatpush3.xpose.msk.msra.mxu0 %vm1943_vm0, %v1158_v25 }
 0x1c5   : > { %6858 = vmatprep.subr.msk.mxu0 %vm1943_vm0, %v1152_v61 }
 0x1c7   : > { %2513 = vrot.lane.b32.xlu0 %v1140_v38, %s7932_s21 }
 0x1c8   : > { %2485 = vrot.lane.b32.xlu1 %v8369_v36, %s7932_s21  ;;  %6859 = vmatpush3.xpose.msk.msra.mxu0 %vm1943_vm0, %v1152_v61 }
 0x1c9   : > { %6860 = vmatprep.subr.msk.mxu0 %vm1943_vm0, %v1146_v45 }
 0x1cb   : > { %2509 = vrot.lane.b32.xlu0 %v1128_v52, %s7932_s21 }
 0x1cc   : > { %2489 = vrot.lane.b32.xlu1 %v912_v22, %s7932_s21  ;;  %6861 = vmatpush3.xpose.msk.msra.mxu0 %vm1943_vm0, %v1146_v45 }
 0x1cd   : > { %6862 = vmatprep.subr.msk.mxu0 %vm1943_vm0, %v1140_v38 }
 0x1cf   : > { %2483 = vrot.lane.b32.xlu0 %v8392_v32, %s7932_s21 }
 0x1d0   : > { %2493 = vrot.lane.b32.xlu1 %v924_v33, %s7932_s21  ;;  %6863 = vmatpush3.xpose.msk.msra.mxu0 %vm1943_vm0, %v1140_v38 }
 0x1d1   : > { %6864 = vmatprep.subr.msk.mxu0 %vm1943_vm0, %v1134_v16 }
 0x1d3   : > { %2487 = vrot.lane.b32.xlu0 %v8383_v30, %s7932_s21 }
 0x1d4   : > { %2497 = vrot.lane.b32.xlu1 %v936_v34, %s7932_s21  ;;  %6865 = vmatpush3.xpose.msk.msra.mxu0 %vm1943_vm0, %v1134_v16 }
 0x1d5   : > { %6866 = vmatprep.subr.msk.mxu0 %vm1943_vm0, %v1128_v52 }
 0x1d7   : > { %2491 = vrot.lane.b32.xlu0 %v8416_v60, %s7932_s21 }
 0x1d8   : > { %6867 = vmatpush3.xpose.msk.msra.mxu0 %vm1943_vm0, %v1128_v52 }
 0x1d9   : > { %6868 = vmatprep.subr.msk.mxu0 %vm1943_vm0, %v1122_v7 }
 0x1db   : > { %2495 = vrot.lane.b32.xlu0 %v8433_v18, %s7932_s21 }
 0x1dc   : > { %6869 = vmatpush3.xpose.msk.msra.mxu0 %vm1943_vm0, %v1122_v7  ;;  %v1345_v32 = vpop.f32.mrf.mxu1 }
 0x1de   : > { %v1232_v41 = vpop.f32.mrf.mxu0  ;;  %v8536_v6 = vpop.f32.mrf.mxu1 }
 0x1df   : > { %6871 = vmatmul.mubr.msk.f32.vlgmr.msra.gmra.mxu0 %vm1943_vm0, %v8369_v36 }
 0x1e0   : > { %v8538_v13 = vpop.f32.mrf.mxu0  ;;  %6873 = vmatprep.mubr.msk.f32.mxu0 %vm1943_vm0, %v8383_v30  ;;  %v1351_v50 = vpop.f32.mrf.mxu1 }
 0x1e2   : > { %v1238_v57 = vpop.f32.mrf.mxu0  ;;  %v8543_v43 = vpop.f32.mrf.mxu1 }
 0x1e3   : > { %6874 = vmatmul.mubr.msk.f32.gmra.mxu0 %vm1943_vm0, %v912_v22  ;;  %v8583_v22 = vadd.f32 %v1345_v32, %v1232_v41 }
 0x1e4   : > { %v8545_v9 = vpop.f32.mrf.mxu0  ;;  %6876 = vmatprep.mubr.msk.f32.mxu0 %vm1943_vm0, %v8416_v60  ;;  %v1357_v4 = vpop.f32.mrf.mxu1 }
 0x1e6   : > { %v1244_v36 = vpop.f32.mrf.mxu0  ;;  %v8550_v15 = vpop.f32.mrf.mxu1 }
 0x1e7   : > { %6877 = vmatmul.mubr.msk.f32.gmra.mxu0 %vm1943_vm0, %v924_v33  ;;  %v8577_v38 = vadd.f32 %v1357_v4, %v1244_v36  ;;  %v8597_v36 = vadd.f32 %v8363_v28, %v8371_v46  ;;  %v8615_v28 = vadd.f32 %v8406_v42, %v8410_v49  ;;  %v8643_v49 = vadd.f32 %v8413_v56, %v8418_v1 }
 0x1e8   : > { %v8552_v53 = vpop.f32.mrf.mxu0  ;;  %6879 = vmatprep.mubr.msk.f32.mxu0 %vm1943_vm0, %v8433_v18  ;;  %v1363_v30 = vpop.f32.mrf.mxu1 }
 0x1ea   : > { %v1250_v55 = vpop.f32.mrf.mxu0  ;;  %v8557_v5 = vpop.f32.mrf.mxu1 }
 0x1eb   : > { %6880 = vmatmul.mubr.msk.f32.gmra.mxu0 %vm1943_vm0, %v936_v34  ;;  %v8585_v33 = vadd.f32 %v1363_v30, %v1250_v55  ;;  %v8611_v30 = vadd.f32 %v8347_v2, %v8353_v10  ;;  %v8631_v2 = vadd.f32 %v8426_v29, %v8429_v14  ;;  %v8659_v14 = vadd.f32 %v8435_v39, %v8438_v19 }
 0x1ec   : > { %v8559_v17 = vpop.f32.mrf.mxu0  ;;  %v1369_v60 = vpop.f32.mrf.mxu1  ;;  %v8685_v19 = vadd.f32 %v8550_v15, %v8552_v53 }
 0x1ed   : > { %v8704_v15 = vadd.f32 %v8557_v5, %v8559_v17 }
 0x1ee   : > { %v1256_v24 = vpop.f32.mrf.mxu0  ;;  %v1371_v35 = vpop.f32.mrf.mxu1 }
 0x1ef   : > { %v8565_v44 = vadd.f32 %v1369_v60, %v1256_v24  ;;  %v8599_v60 = vadd.f32 %v1351_v50, %v1238_v57  ;;  %v8627_v57 = vadd.f32 %v8381_v8, %v8389_v12  ;;  %v8647_v8 = vadd.f32 %v8449_v26, %v8446_v47 }
 0x1f0   : > { %v1258_v61 = vpop.f32.mrf.mxu0  ;;  %v1375_v27 = vpop.f32.mrf.mxu1 }
 0x1f1   : > { %v8671_v26 = vadd.f32 %v1371_v35, %v1258_v61 }
 0x1f2   : > { %v1262_v20 = vpop.f32.mrf.mxu0  ;;  %v8561_v37 = vpop.f32.mrf.mxu1 }
 0x1f3   : > { %v8571_v7 = vadd.f32 %v1375_v27, %v1262_v20 }
 0x1f4   : > { %v1264_v23 = vpop.f32.mrf.mxu0  ;;  %v1381_v45 = vpop.f32.mrf.mxu1 }
 0x1f5   : > { %v8688_v20 = vadd.f32 %v8561_v37, %v1264_v23  ;;  %v8712_v23 = vadd.f32 %v8543_v43, %v8545_v9 }
 0x1f6   : > { %v1268_v51 = vpop.f32.mrf.mxu0  ;;  %v1383_v54 = vpop.f32.mrf.mxu1 }
 0x1f7   : > { %v8563_v18 = vadd.f32 %v1381_v45, %v1268_v51  ;;  %v8700_v45 = vadd.f32 %v8536_v6, %v8538_v13 }
 0x1f8   : > { %v1270_v40 = vpop.f32.mrf.mxu0  ;;  %v1387_v59 = vpop.f32.mrf.mxu1 }
 0x1f9   : > { %3678 = vrot.lane.b32.xlu1 %v8563_v18, %s7932_s21  ;;  %v8661_v56 = vadd.f32 %v1383_v54, %v1270_v40 }
 0x1fa   : > { %v1274_v16 = vpop.f32.mrf.mxu0  ;;  %v1389_v1 = vpop.f32.mrf.mxu1 }
 0x1fb   : > { %v8569_v25 = vadd.f32 %v1387_v59, %v1274_v16 }
 0x1fc   : > { %v1276_v52 = vpop.f32.mrf.mxu0 }
 0x1fd   : > { %3680 = vrot.lane.b32.xlu0 %v8569_v25, %s7932_s21  ;;  %3674 = vrot.lane.b32.xlu1 %v8565_v44, %s7932_s21  ;;  %v8673_v24 = vadd.f32 %v1389_v1, %v1276_v52 }
 0x201   : > { %3676 = vrot.lane.b32.xlu0 %v8571_v7, %s7932_s21  ;;  %3670 = vrot.lane.b32.xlu1 %v8577_v38, %s7932_s21 }
 0x204   : > { %v8587_v34 = vpop.f32.mrf.mxu0 }
 0x205   : > { %3672 = vrot.lane.b32.xlu0 %v8585_v33, %s7932_s21  ;;  %3666 = vrot.lane.b32.xlu1 %v8583_v22, %s7932_s21 }
 0x206   : > { %v8593_v4 = vpop.f32.mrf.mxu0 }
 0x208   : > { %v8601_v32 = vpop.f32.mrf.mxu0 }
 0x209   : > { %3668 = vrot.lane.b32.xlu0 %v8599_v60, %s7932_s21  ;;  %3644 = vrot.lane.b32.xlu1 %v8597_v36, %s7932_s21 }
 0x20a   : > { %v8607_v41 = vpop.f32.mrf.mxu0 }
 0x20c   : > { %v8617_v46 = vpop.f32.mrf.mxu0 }
 0x20d   : > { %3642 = vrot.lane.b32.xlu0 %v8611_v30, %s7932_s21  ;;  %3648 = vrot.lane.b32.xlu1 %v8615_v28, %s7932_s21 }
 0x20e   : > { %v8623_v50 = vpop.f32.mrf.mxu0 }
 0x210   : > { %v8633_v10 = vpop.f32.mrf.mxu0 }
 0x211   : > { %3646 = vrot.lane.b32.xlu0 %v8627_v57, %s7932_s21  ;;  %3652 = vrot.lane.b32.xlu1 %v8631_v2, %s7932_s21 }
 0x212   : > { %v8639_v42 = vpop.f32.mrf.mxu0 }
 0x214   : > { %v8649_v12 = vpop.f32.mrf.mxu0 }
 0x215   : > { %3650 = vrot.lane.b32.xlu0 %v8643_v49, %s7932_s21  ;;  %3656 = vrot.lane.b32.xlu1 %v8647_v8, %s7932_s21 }
 0x216   : > { %v8655_v29 = vpop.f32.mrf.mxu0 }
 0x218   : > { %v8663_v55 = vpop.f32.mrf.mxu0 }
 0x219   : > { %3654 = vrot.lane.b32.xlu0 %v8659_v14, %s7932_s21  ;;  %4836 = vrot.lane.b32.xlu1 %v8661_v56, %s7932_s21 }
 0x21a   : > { %v8669_v47 = vpop.f32.mrf.mxu0 }
 0x21c   : > { %v8675_v27 = vpop.f32.mrf.mxu0 }
 0x21d   : > { %4838 = vrot.lane.b32.xlu0 %v8673_v24, %s7932_s21  ;;  %4832 = vrot.lane.b32.xlu1 %v8671_v26, %s7932_s21 }
 0x21e   : > { %v8681_v39 = vpop.f32.mrf.mxu0 }
 0x220   : > { %v8690_v35 = vpop.f32.mrf.mxu0 }
 0x221   : > { %4834 = vrot.lane.b32.xlu0 %v8688_v20, %s7932_s21  ;;  %4828 = vrot.lane.b32.xlu1 %v8685_v19, %s7932_s21 }
 0x222   : > { %v8696_v61 = vpop.f32.mrf.mxu0 }
 0x224   : > { %v6394_v53 = vpop.f32.mrf.mxu0 }
 0x225   : > { %4830 = vrot.lane.b32.xlu0 %v8704_v15, %s7932_s21  ;;  %4824 = vrot.lane.b32.xlu1 %v8700_v45, %s7932_s21 }
 0x226   : > { %v6395_v37 = vpop.f32.mrf.mxu0 }
 0x227   : > { %v8714_v51 = vadd.f32 %v6395_v37, %v6394_v53 }
 0x228   : > { %v6397_v6 = vpop.f32.mrf.mxu0 }
 0x229   : > { %10425 = vst [vmem:[#allocation17_spill] sm:$0xff] %v8714_v51  ;;  %4826 = vrot.lane.b32.xlu0 %v8712_v23, %s7932_s21  ;;  %4802 = vrot.lane.b32.xlu1 %v8461_v58, %s7932_s21  ;;  %v2518_v16 = vpop.permute.xlu1 %2517 }
 0x22a   : > { %v6398_v13 = vpop.f32.mrf.mxu0 }
 0x22b   : > { %v8720_v5 = vadd.f32 %v6398_v13, %v6397_v6 }
 0x22c   : > { %v6400_v17 = vpop.f32.mrf.mxu0 }
 0x22d   : > { %4800 = vrot.lane.b32.xlu0 %v8453_v31, %s7932_s21  ;;  %4806 = vrot.lane.b32.xlu1 %v8473_v63, %s7932_s21 }
 0x22e   : > { %v6401_v43 = vpop.f32.mrf.mxu0 }
 0x22f   : > { %v8726_v9 = vadd.f32 %v6401_v43, %v6400_v17  ;;  %v2516_v17 = vpop.permute.xlu1 %2515 }
 0x230   : > { %v6403_v54 = vpop.f32.mrf.mxu0 }
 0x231   : > { %v2522_v40 = vpop.permute.xlu0 %2521  ;;  %4804 = vrot.lane.b32.xlu0 %v8469_v3, %s7932_s21  ;;  %4810 = vrot.lane.b32.xlu1 %v8481_v11, %s7932_s21 }
 0x232   : > { %6938 = vmatprep.subr.msk.mxu0 %vm1943_vm0, %v2522_v40  ;;  %v6404_v59 = vpop.f32.mrf.mxu0 }
 0x233   : > { %6939 = vmatpush3.xpose.msk.msra.mxu0 %vm1943_vm0, %v2522_v40  ;;  %v8734_v52 = vadd.f32 %v6404_v59, %v6403_v54 }
 0x234   : > { %v6406_v1 = vpop.f32.mrf.mxu0 }
 0x235   : > { %v2520_v53 = vpop.permute.xlu0 %2519  ;;  %4808 = vrot.lane.b32.xlu0 %v8477_v48, %s7932_s21  ;;  %4814 = vrot.lane.b32.xlu1 %v8486_v62, %s7932_s21 }
 0x236   : > { %6940 = vmatprep.subr.msk.mxu0 %vm1943_vm0, %v2520_v53  ;;  %v6407_v37 = vpop.f32.mrf.mxu0 }
 0x237   : > { %6941 = vmatpush3.xpose.msk.msra.mxu0 %vm1943_vm0, %v2520_v53  ;;  %v8742_v6 = vadd.f32 %v6407_v37, %v6406_v1  ;;  %v2512_v1 = vpop.permute.xlu1 %2511 }
 0x238   : > { %6942 = vmatprep.subr.msk.mxu0 %vm1943_vm0, %v2518_v16  ;;  %v6409_v13 = vpop.f32.mrf.mxu0 }
 0x239   : > { %v2514_v43 = vpop.permute.xlu0 %2513  ;;  %4812 = vrot.lane.b32.xlu0 %v8483_v21, %s7932_s21 }
 0x23a   : > { %v6410_v54 = vpop.f32.mrf.mxu0 }
 0x23b   : > { %6943 = vmatpush3.xpose.msk.msra.mxu0 %vm1943_vm0, %v2518_v16  ;;  %v8748_v40 = vadd.f32 %v6410_v54, %v6409_v13  ;;  %v2508_v16 = vpop.permute.xlu1 %2507 }
 0x23c   : > { %6944 = vmatprep.subr.msk.mxu0 %vm1943_vm0, %v2516_v17  ;;  %v6412_v59 = vpop.f32.mrf.mxu0 }
 0x23d   : > { %v2510_v0 = vpop.permute.xlu0 %2509 }
 0x23e   : > { %v6413_v53 = vpop.f32.mrf.mxu0 }
 0x23f   : > { %6945 = vmatpush3.xpose.msk.msra.mxu0 %vm1943_vm0, %v2516_v17  ;;  %v8752_v37 = vadd.f32 %v6413_v53, %v6412_v59 }
 0x240   : > { %6946 = vmatprep.subr.msk.mxu0 %vm1943_vm0, %v2514_v43 }
 0x241   : > { %v2484_v51 = vpop.permute.xlu0 %2483 }
 0x242   : > { %6954 = vmatprep.mubr.msk.f32.mxu0 %vm1943_vm0, %v2484_v51 }
 0x243   : > { %6947 = vmatpush3.xpose.msk.msra.mxu0 %vm1943_vm0, %v2514_v43  ;;  %v2486_v43 = vpop.permute.xlu1 %2485 }
 0x244   : > { %6948 = vmatprep.subr.msk.mxu0 %vm1943_vm0, %v2512_v1 }
 0x245   : > { %v1458_v13 = vpop.f32.mrf.mxu1 }
 0x246   : > { %v8760_v54 = vadd.f32 %v8587_v34, %v1458_v13 }
 0x247   : > { %6949 = vmatpush3.xpose.msk.msra.mxu0 %vm1943_vm0, %v2512_v1  ;;  %v1460_v17 = vpop.f32.mrf.mxu1 }
 0x248   : > { %6950 = vmatprep.subr.msk.mxu0 %vm1943_vm0, %v2510_v0  ;;  %v8764_v59 = vadd.f32 %v8593_v4, %v1460_v17  ;;  %2724 = vrot.lane.b32.xlu1 %v8760_v54, %s7932_s21  ;;  %v2488_v4 = vpop.permute.xlu0 %2487  ;;  %v2490_v17 = vpop.permute.xlu1 %2489 }
 0x249   : > { %v1464_v51 = vpop.f32.mrf.mxu1 }
 0x24a   : > { %v8770_v53 = vadd.f32 %v8601_v32, %v1464_v51 }
 0x24b   : > { %6951 = vmatpush3.xpose.msk.msra.mxu0 %vm1943_vm0, %v2510_v0  ;;  %v1466_v34 = vpop.f32.mrf.mxu1 }
 0x24c   : > { %6952 = vmatprep.subr.msk.mxu0 %vm1943_vm0, %v2508_v16  ;;  %v8774_v1 = vadd.f32 %v8607_v41, %v1466_v34  ;;  %3883 = vrot.lane.b32.xlu1 %v8764_v59, %s7932_s21  ;;  %v2492_v51 = vpop.permute.xlu0 %2491 }
 0x24d   : > { %2726 = vrot.lane.b32.xlu0 %v8770_v53, %s7932_s21  ;;  %v1470_v13 = vpop.f32.mrf.mxu1 }
 0x24e   : > { %v8782_v0 = vadd.f32 %v8617_v46, %v1470_v13 }
 0x24f   : > { %6953 = vmatpush3.xpose.msk.msra.mxu0 %vm1943_vm0, %v2508_v16  ;;  %v1472_v32 = vpop.f32.mrf.mxu1 }
 0x250   : > { %7022 = vmatprep.subr.msk.mxu0 %vm1943_vm0, %v8569_v25  ;;  %v8787_v41 = vadd.f32 %v8623_v50, %v1472_v32  ;;  %2728 = vrot.lane.b32.xlu1 %v8782_v0, %s7932_s21  ;;  %v2496_v13 = vpop.permute.xlu0 %2495 }
 0x251   : > { %3885 = vrot.lane.b32.xlu0 %v8774_v1, %s7932_s21  ;;  %v1476_v16 = vpop.f32.mrf.mxu1 }
 0x252   : > { %6955 = vmatmul.mubr.msk.f32.vlgmr.msra.gmra.mxu0 %vm1943_vm0, %v2486_v43  ;;  %v8798_v46 = vadd.f32 %v8633_v10, %v1476_v16  ;;  %v2494_v43 = vpop.permute.xlu1 %2493 }
 0x253   : > { %6957 = vmatprep.mubr.msk.f32.mxu0 %vm1943_vm0, %v2488_v4  ;;  %7023 = vmatpush3.xpose.msk.msra.mxu0 %vm1943_vm0, %v8569_v25  ;;  %v1478_v50 = vpop.f32.mrf.mxu1 }
 0x254   : > { %7024 = vmatprep.subr.msk.mxu0 %vm1943_vm0, %v8563_v18  ;;  %v8803_v34 = vadd.f32 %v8639_v42, %v1478_v50  ;;  %3887 = vrot.lane.b32.xlu1 %v8787_v41, %s7932_s21 }
 0x255   : > { %2730 = vrot.lane.b32.xlu0 %v8798_v46, %s7932_s21  ;;  %v1482_v25 = vpop.f32.mrf.mxu1 }
 0x256   : > { %6958 = vmatmul.mubr.msk.f32.gmra.mxu0 %vm1943_vm0, %v2490_v17  ;;  %v1596_v10 = vadd.f32 %v8649_v12, %v1482_v25  ;;  %v2498_v12 = vpop.permute.xlu1 %2497 }
 0x257   : > { %6960 = vmatprep.mubr.msk.f32.mxu0 %vm1943_vm0, %v2492_v51  ;;  %7025 = vmatpush3.xpose.msk.msra.mxu0 %vm1943_vm0, %v8563_v18  ;;  %v1484_v42 = vpop.f32.mrf.mxu1 }
 0x258   : > { %7026 = vmatprep.subr.msk.mxu0 %vm1943_vm0, %v8571_v7  ;;  %v8817_v4 = vadd.f32 %v8655_v29, %v1484_v42  ;;  %2732 = vrot.lane.b32.xlu1 %v1596_v10, %s7932_s21 }
 0x259   : > { %3889 = vrot.lane.b32.xlu0 %v8803_v34, %s7932_s21  ;;  %v1488_v32 = vpop.f32.mrf.mxu1 }
 0x25a   : > { %6961 = vmatmul.mubr.msk.f32.gmra.mxu0 %vm1943_vm0, %v2494_v43  ;;  %v1602_v17 = vadd.f32 %v8663_v55, %v1488_v32 }
 0x25b   : > { %6963 = vmatprep.mubr.msk.f32.mxu0 %vm1943_vm0, %v2496_v13  ;;  %7027 = vmatpush3.xpose.msk.msra.mxu0 %vm1943_vm0, %v8571_v7  ;;  %v1490_v18 = vpop.f32.mrf.mxu1 }
 0x25c   : > { %7028 = vmatprep.subr.msk.mxu0 %vm1943_vm0, %v8565_v44  ;;  %3891 = vrot.lane.b32.xlu1 %v8817_v4, %s7932_s21  ;;  %v8840_v51 = vadd.f32 %v8669_v47, %v1490_v18 }
 0x25d   : > { %v1494_v29 = vpop.f32.mrf.mxu1 }
 0x25e   : > { %6964 = vmatmul.mubr.msk.f32.gmra.mxu0 %vm1943_vm0, %v2498_v12  ;;  %v1608_v7 = vadd.f32 %v8675_v27, %v1494_v29 }
 0x25f   : > { %7029 = vmatpush3.xpose.msk.msra.mxu0 %vm1943_vm0, %v8565_v44  ;;  %7038 = vmatprep.mubr.msk.f32.mxu0 %vm1943_vm0, %v8611_v30  ;;  %v1496_v16 = vpop.f32.mrf.mxu1 }
 0x260   : > { %7030 = vmatprep.subr.msk.mxu0 %vm1943_vm0, %v8585_v33  ;;  %2734 = vrot.lane.b32.xlu1 %v1602_v17, %s7932_s21  ;;  %v8845_v55 = vadd.f32 %v8681_v39, %v1496_v16 }
 0x261   : > { %2736 = vrot.lane.b32.xlu0 %v1608_v7, %s7932_s21  ;;  %v1500_v44 = vpop.f32.mrf.mxu1 }
 0x262   : > { %v1614_v30 = vadd.f32 %v8690_v35, %v1500_v44  ;;  %v6415_v35 = vpop.f32.mrf.mxu0 }
 0x263   : > { %7031 = vmatpush3.xpose.msk.msra.mxu0 %vm1943_vm0, %v8585_v33  ;;  %v1502_v27 = vpop.f32.mrf.mxu1 }
 0x264   : > { %7032 = vmatprep.subr.msk.mxu0 %vm1943_vm0, %v8577_v38  ;;  %6882 = vmatprep.subr.mxu1 %v1614_v30  ;;  %v8866_v50 = vadd.f32 %v8696_v61, %v1502_v27  ;;  %v6416_v43 = vpop.f32.mrf.mxu0 }
 0x265   : > { %3893 = vrot.lane.b32.xlu1 %v8840_v51, %s7932_s21  ;;  %6883 = vmatpush3.msra.mxu1 %v1614_v30  ;;  %v6844_v47 = vpop.f32.mrf.mxu1 }
 0x266   : > { %3895 = vrot.lane.b32.xlu0 %v8845_v55, %s7932_s21  ;;  %6884 = vmatprep.subr.mxu1 %v1608_v7  ;;  %v8859_v33 = vadd.f32 %v6844_v47, %v8720_v5 }
 0x267   : > { %7033 = vmatpush3.xpose.msk.msra.mxu0 %vm1943_vm0, %v8577_v38  ;;  %6885 = vmatpush3.msra.mxu1 %v1608_v7  ;;  %v8863_v39 = vpop.f32.mrf.mxu1 }
 0x268   : > { %7034 = vmatprep.subr.msk.mxu0 %vm1943_vm0, %v8599_v60  ;;  %6886 = vmatprep.subr.mxu1 %v1602_v17 }
 0x269   : > { %2738 = vrot.lane.b32.xlu1 %v1614_v30, %s7932_s21  ;;  %6887 = vmatpush3.msra.mxu1 %v1602_v17  ;;  %v6847_v25 = vpop.f32.mrf.mxu1 }
 0x26a   : > { %6888 = vmatprep.subr.mxu1 %v1596_v10  ;;  %v8872_v38 = vadd.f32 %v6847_v25, %v8734_v52 }
 0x26b   : > { %7035 = vmatpush3.xpose.msk.msra.mxu0 %vm1943_vm0, %v8599_v60  ;;  %6889 = vmatpush3.msra.mxu1 %v1596_v10  ;;  %v8876_v5 = vpop.f32.mrf.mxu1  ;;  %v6417_v10 = vadd.f32 %v6416_v43, %v6415_v35 }
 0x26c   : > { %7036 = vmatprep.subr.msk.mxu0 %vm1943_vm0, %v8583_v22  ;;  %6890 = vmatprep.subr.mxu1 %v8798_v46 }
 0x26d   : > { %3897 = vrot.lane.b32.xlu1 %v8866_v50, %s7932_s21  ;;  %6891 = vmatpush3.msra.mxu1 %v8798_v46  ;;  %v6850_v61 = vpop.f32.mrf.mxu1  ;;  %v3679_v46 = vpop.permute.xlu1 %3678 }
 0x26e   : > { %6892 = vmatprep.subr.mxu1 %v8782_v0  ;;  %v8886_v52 = vadd.f32 %v6850_v61, %v8748_v40 }
 0x26f   : > { %v3681_v60 = vpop.permute.xlu0 %3680  ;;  %7037 = vmatpush3.xpose.msk.msra.mxu0 %vm1943_vm0, %v8583_v22  ;;  %6893 = vmatpush3.msra.mxu1 %v8782_v0  ;;  %v8890_v42 = vpop.f32.mrf.mxu1  ;;  %v1900_v0 = vlaneseq }
 0x270   : > { %10426 = vst [vmem:[#allocation18_spill] sm:$0xff] %v8886_v52  ;;  %7106 = vmatprep.subr.msk.mxu0 %vm1943_vm0, %v3681_v60  ;;  %6894 = vmatprep.subr.mxu1 %v8770_v53 }
 0x271   : > { %6895 = vmatpush3.msra.mxu1 %v8770_v53  ;;  %v6853_v22 = vpop.f32.mrf.mxu1  ;;  %v8938_v18 = vshrl.u32 %v1900_v0, 7 }
 0x272   : > { %7039 = vmatmul.mubr.msk.f32.vlgmr.msra.gmra.mxu0 %vm1943_vm0, %v8597_v36  ;;  %v8899_v40 = vadd.f32 %v6853_v22, %v6417_v10  ;;  %6896 = vmatprep.subr.mxu1 %v8760_v54 }
 0x273   : > { %v3677_v13 = vpop.permute.xlu0 %3676  ;;  %7041 = vmatprep.mubr.msk.f32.mxu0 %vm1943_vm0, %v8627_v57  ;;  %7107 = vmatpush3.xpose.msk.msra.mxu0 %vm1943_vm0, %v3681_v60  ;;  %v3675_v57 = vpop.permute.xlu1 %3674  ;;  %10428 = vst [vmem:[#allocation20_spill] sm:$0xff] %v8938_v18  ;;  %v1902_v29 = vadd.s32 8, %v8938_v18  ;;  %v1904_v16 = vadd.s32 24, %v8938_v18  ;;  %v1903_v47 = vadd.s32 16, %v8938_v18  ;;  %v1905_v61 = vadd.s32 32, %v8938_v18 }
 0x274   : > { %10427 = vst [vmem:[#allocation19_spill] sm:$0xff] %v8899_v40  ;;  %7108 = vmatprep.subr.msk.mxu0 %vm1943_vm0, %v3679_v46  ;;  %6897 = vmatpush3.msra.mxu1 %v8760_v54 }
 0x275   : > { %5055 = vrot.lane.b32.xlu1 %v8899_v40, %s7932_s21 }
 0x276   : > { %7042 = vmatmul.mubr.msk.f32.gmra.mxu0 %vm1943_vm0, %v8615_v28 }
 0x277   : > { %v3673_v36 = vpop.permute.xlu0 %3672  ;;  %7044 = vmatprep.mubr.msk.f32.mxu0 %vm1943_vm0, %v8643_v49  ;;  %7109 = vmatpush3.xpose.msk.msra.mxu0 %vm1943_vm0, %v3679_v46  ;;  %v3671_v28 = vpop.permute.xlu1 %3670 }
 0x278   : > { %7110 = vmatprep.subr.msk.mxu0 %vm1943_vm0, %v3677_v13 }
 0x27a   : > { %7045 = vmatmul.mubr.msk.f32.gmra.mxu0 %vm1943_vm0, %v8631_v2 }
 0x27b   : > { %v3669_v53 = vpop.permute.xlu0 %3668  ;;  %7047 = vmatprep.mubr.msk.f32.mxu0 %vm1943_vm0, %v8659_v14  ;;  %7111 = vmatpush3.xpose.msk.msra.mxu0 %vm1943_vm0, %v3677_v13  ;;  %v3667_v2 = vpop.permute.xlu1 %3666 }
 0x27c   : > { %7112 = vmatprep.subr.msk.mxu0 %vm1943_vm0, %v3675_v57 }
 0x27e   : > { %7048 = vmatmul.mubr.msk.f32.gmra.mxu0 %vm1943_vm0, %v8647_v8 }
 0x27f   : > { %v3643_v49 = vpop.permute.xlu0 %3642  ;;  %7113 = vmatpush3.xpose.msk.msra.mxu0 %vm1943_vm0, %v3675_v57  ;;  %v3645_v14 = vpop.permute.xlu1 %3644 }
 0x280   : > { %7114 = vmatprep.subr.msk.mxu0 %vm1943_vm0, %v3673_v36  ;;  %7122 = vmatprep.mubr.msk.f32.mxu0 %vm1943_vm0, %v3643_v49  ;;  %v1908_v49 = vadd.s32 56, %v8938_v18 }
 0x283   : > { %7115 = vmatpush3.xpose.msk.msra.mxu0 %vm1943_vm0, %v3673_v36  ;;  %v3647_v8 = vpop.permute.xlu0 %3646  ;;  %v3649_v54 = vpop.permute.xlu1 %3648 }
 0x284   : > { %7116 = vmatprep.subr.msk.mxu0 %vm1943_vm0, %v3671_v28 }
 0x287   : > { %7117 = vmatpush3.xpose.msk.msra.mxu0 %vm1943_vm0, %v3671_v28  ;;  %v3651_v32 = vpop.permute.xlu0 %3650  ;;  %v3653_v12 = vpop.permute.xlu1 %3652 }
 0x288   : > { %7118 = vmatprep.subr.msk.mxu0 %vm1943_vm0, %v3669_v53 }
 0x28b   : > { %7119 = vmatpush3.xpose.msk.msra.mxu0 %vm1943_vm0, %v3669_v53  ;;  %v3655_v17 = vpop.permute.xlu0 %3654  ;;  %v3657_v7 = vpop.permute.xlu1 %3656 }
 0x28c   : > { %7120 = vmatprep.subr.msk.mxu0 %vm1943_vm0, %v3667_v2 }
 0x28f   : > { %7121 = vmatpush3.xpose.msk.msra.mxu0 %vm1943_vm0, %v3667_v2  ;;  %v4839_v46 = vpop.permute.xlu0 %4838 }
 0x290   : > { %7190 = vmatprep.subr.msk.mxu0 %vm1943_vm0, %v8673_v24 }
 0x292   : > { %7123 = vmatmul.mubr.msk.f32.vlgmr.msra.gmra.mxu0 %vm1943_vm0, %v3645_v14 }
 0x293   : > { %7125 = vmatprep.mubr.msk.f32.mxu0 %vm1943_vm0, %v3647_v8  ;;  %7191 = vmatpush3.xpose.msk.msra.mxu0 %vm1943_vm0, %v8673_v24  ;;  %v8947_v24 = vand.u32 127, %v1900_v0 }
 0x294   : > { %7192 = vmatprep.subr.msk.mxu0 %vm1943_vm0, %v8661_v56 }
 0x295   : > { %vm8956_vm1 = vcmp.le.s32.totalorder %v8947_v24, %v1902_v29  ;;  %vm8968_vm2 = vcmp.le.s32.totalorder %v8947_v24, %v8938_v18  ;;  %vm8981_vm3 = vcmp.le.s32.totalorder %v8947_v24, %v1904_v16  ;;  %vm9002_vm4 = vcmp.le.s32.totalorder %v8947_v24, %v1903_v47  ;;  %v1819_v16 = vpop.f32.mrf.mxu1 }
 0x296   : > { %7126 = vmatmul.mubr.msk.f32.gmra.mxu0 %vm1943_vm0, %v3649_v54  ;;  %vm9012_vm5 = vcmp.le.s32.totalorder %v8947_v24, %v1905_v61  ;;  %v4835_v54 = vpop.permute.xlu0 %4834  ;;  %vm9043_vm7 = vcmp.le.s32.totalorder %v8947_v24, %v1908_v49  ;;  %v1907_v47 = vadd.s32 48, %v8938_v18 }
 0x297   : > { %7128 = vmatprep.mubr.msk.f32.mxu0 %vm1943_vm0, %v3651_v32  ;;  %7193 = vmatpush3.xpose.msk.msra.mxu0 %vm1943_vm0, %v8661_v56 }
 0x298   : > { %7194 = vmatprep.subr.msk.mxu0 %vm1943_vm0, %v8688_v20  ;;  %vm9104_vm8 = vcmp.le.s32.totalorder %v8947_v24, %v1907_v47 }
 0x29a   : > { %7129 = vmatmul.mubr.msk.f32.gmra.mxu0 %vm1943_vm0, %v3653_v12 }
 0x29b   : > { %7131 = vmatprep.mubr.msk.f32.mxu0 %vm1943_vm0, %v3655_v17  ;;  %7195 = vmatpush3.xpose.msk.msra.mxu0 %vm1943_vm0, %v8688_v20  ;;  %v4831_v17 = vpop.permute.xlu0 %4830 }
 0x29c   : > { %7196 = vmatprep.subr.msk.mxu0 %vm1943_vm0, %v8671_v26 }
 0x29e   : > { %7132 = vmatmul.mubr.msk.f32.gmra.mxu0 %vm1943_vm0, %v3657_v7  ;;  %v4837_v7 = vpop.permute.xlu1 %4836 }
 0x29f   : > { %v6872_v44 = vpop.f32.mrf.mxu0  ;;  %7197 = vmatpush3.xpose.msk.msra.mxu0 %vm1943_vm0, %v8671_v26  ;;  %7206 = vmatprep.mubr.msk.f32.mxu0 %vm1943_vm0, %v8453_v31 }
 0x2a0   : > { %v8974_v30 = vsel %vm8956_vm1, %v6872_v44, -1e+30  ;;  %7198 = vmatprep.subr.msk.mxu0 %vm1943_vm0, %v8704_v15 }
 0x2a1   : > { %v2058_v27 = vpop.f32.mrf.mxu0  ;;  %v2108_v26 = vsel %vm1943_vm0, %v8974_v30, -inf }
 0x2a2   : > { %v8988_v35 = vsel %vm8968_vm2, %v2058_v27, -1e+30  ;;  %2109 = vmax.xlane.f32.xlu1 %v2108_v26 }
 0x2a3   : > { %v6875_v25 = vpop.f32.mrf.mxu0  ;;  %7199 = vmatpush3.xpose.msk.msra.mxu0 %vm1943_vm0, %v8704_v15  ;;  %v2105_v43 = vsel %vm1943_vm0, %v8988_v35, -inf  ;;  %v1906_v15 = vadd.s32 40, %v8938_v18 }
 0x2a4   : > { %v8997_v60 = vsel %vm8981_vm3, %v6875_v25, -1e+30  ;;  %2106 = vmax.xlane.f32.xlu0 %v2105_v43  ;;  %7200 = vmatprep.subr.msk.mxu0 %vm1943_vm0, %v8685_v19 }
 0x2a5   : > { %v2068_v22 = vpop.f32.mrf.mxu0  ;;  %v2114_v36 = vsel %vm1943_vm0, %v8997_v60, -inf  ;;  %vm9023_vm6 = vcmp.le.s32.totalorder %v8947_v24, %v1906_v15 }
 0x2a6   : > { %v9018_v53 = vsel %vm9002_vm4, %v2068_v22, -1e+30 }
 0x2a7   : > { %v6878_v13 = vpop.f32.mrf.mxu0  ;;  %7201 = vmatpush3.xpose.msk.msra.mxu0 %vm1943_vm0, %v8685_v19  ;;  %v2111_v14 = vsel %vm1943_vm0, %v9018_v53, -inf }
 0x2a8   : > { %2115 = vmax.xlane.f32.xlu0 %v2114_v36  ;;  %7202 = vmatprep.subr.msk.mxu0 %vm1943_vm0, %v8712_v23  ;;  %v9040_v0 = vsel %vm9023_vm6, %v6878_v13, -1e+30 }
 0x2a9   : > { %v2078_v19 = vpop.f32.mrf.mxu0 }
 0x2aa   : > { %v9030_v2 = vsel %vm9012_vm5, %v2078_v19, -1e+30 }
 0x2ab   : > { %7203 = vmatpush3.xpose.msk.msra.mxu0 %vm1943_vm0, %v8712_v23  ;;  %v2117_v8 = vsel %vm1943_vm0, %v9030_v2, -inf  ;;  %v6881_v12 = vpop.f32.mrf.mxu0  ;;  %v2120_v23 = vsel %vm1943_vm0, %v9040_v0, -inf }
 0x2ac   : > { %2112 = vmax.xlane.f32.xlu0 %v2111_v14  ;;  %2118 = vmax.xlane.f32.xlu1 %v2117_v8  ;;  %v9055_v29 = vsel %vm9043_vm7, %v6881_v12, -1e+30 }
 0x2ad   : > { %7204 = vmatprep.subr.msk.mxu0 %vm1943_vm0, %v8700_v45  ;;  %v2088_v22 = vpop.f32.mrf.mxu0 }
 0x2af   : > { %7205 = vmatpush3.xpose.msk.msra.mxu0 %vm1943_vm0, %v8700_v45  ;;  %v2126_v45 = vsel %vm1943_vm0, %v9055_v29, -inf }
 0x2b0   : > { %2121 = vmax.xlane.f32.xlu0 %v2120_v23  ;;  %7274 = vmatprep.subr.msk.mxu0 %vm1943_vm0, %v4839_v46 }
 0x2b2   : > { %7207 = vmatmul.mubr.msk.f32.vlgmr.msra.gmra.mxu0 %vm1943_vm0, %v8461_v58  ;;  %v4827_v58 = vpop.permute.xlu0 %4826 }
 0x2b3   : > { %7209 = vmatprep.mubr.msk.f32.mxu0 %vm1943_vm0, %v8469_v3  ;;  %7275 = vmatpush3.xpose.msk.msra.mxu0 %vm1943_vm0, %v4839_v46  ;;  %v4833_v3 = vpop.permute.xlu1 %4832  ;;  %v9112_v46 = vsel %vm9104_vm8, %v2088_v22, -1e+30 }
 0x2b4   : > { %2127 = vmax.xlane.f32.xlu0 %v2126_v45  ;;  %7276 = vmatprep.subr.msk.mxu0 %vm1943_vm0, %v4837_v7  ;;  %v2123_v13 = vsel %vm1943_vm0, %v9112_v46, -inf }
 0x2b6   : > { %7210 = vmatmul.mubr.msk.f32.gmra.mxu0 %vm1943_vm0, %v8473_v63  ;;  %v4801_v63 = vpop.permute.xlu0 %4800 }
 0x2b7   : > { %7212 = vmatprep.mubr.msk.f32.mxu0 %vm1943_vm0, %v8477_v48  ;;  %7277 = vmatpush3.xpose.msk.msra.mxu0 %vm1943_vm0, %v4837_v7  ;;  %v4829_v48 = vpop.permute.xlu1 %4828 }
 0x2b8   : > { %7278 = vmatprep.subr.msk.mxu0 %vm1943_vm0, %v4835_v54 }
 0x2ba   : > { %7213 = vmatmul.mubr.msk.f32.gmra.mxu0 %vm1943_vm0, %v8481_v11  ;;  %v10382_v11 = vmov 1.0   ;;  %v4805_v27 = vpop.permute.xlu0 %4804 }
 0x2bb   : > { %7215 = vmatprep.mubr.msk.f32.mxu0 %vm1943_vm0, %v8483_v21  ;;  %7279 = vmatpush3.xpose.msk.msra.mxu0 %vm1943_vm0, %v4835_v54  ;;  %v4825_v21 = vpop.permute.xlu1 %4824 }
 0x2bc   : > { %7280 = vmatprep.subr.msk.mxu0 %vm1943_vm0, %v4833_v3  ;;  %6910 = vmatprep.subr.mxu1 %v10382_v11 }
 0x2bd   : > { %5051 = vrot.lane.b32.xlu1 %v8886_v52, %s7932_s21 }
 0x2be   : > { %7216 = vmatmul.mubr.msk.f32.gmra.mxu0 %vm1943_vm0, %v8486_v62  ;;  %v9090_v62 = vadd.f32 %v8752_v37, %v1819_v16  ;;  %v4809_v37 = vpop.permute.xlu0 %4808 }
 0x2bf   : > { %7281 = vmatpush3.xpose.msk.msra.mxu0 %vm1943_vm0, %v4833_v3  ;;  %7290 = vmatprep.mubr.msk.f32.mxu0 %vm1943_vm0, %v4801_v63  ;;  %v4803_v44 = vpop.permute.xlu1 %4802 }
 0x2c0   : > { %7282 = vmatprep.subr.msk.mxu0 %vm1943_vm0, %v4831_v17  ;;  %10443 = vst [vmem:[#allocation21_spill] sm:$0xff] %v9090_v62 }
 0x2c2   : > { %v4813_v43 = vpop.permute.xlu0 %4812 }
 0x2c3   : > { %7283 = vmatpush3.xpose.msk.msra.mxu0 %vm1943_vm0, %v4831_v17  ;;  %v4807_v26 = vpop.permute.xlu1 %4806 }
 0x2c4   : > { %7284 = vmatprep.subr.msk.mxu0 %vm1943_vm0, %v4829_v48 }
 0x2c6   : > { %v9129_v54 = vpop.permute.xlu0 %2726 }
 0x2c7   : > { %7285 = vmatpush3.xpose.msk.msra.mxu0 %vm1943_vm0, %v4829_v48  ;;  %v4811_v25 = vpop.permute.xlu1 %4810 }
 0x2c8   : > { %7286 = vmatprep.subr.msk.mxu0 %vm1943_vm0, %v4827_v58 }
 0x2ca   : > { %5053 = vrot.lane.b32.xlu0 %v9090_v62, %s7932_s21  ;;  %v9133_v17 = vpop.permute.xlu0 %3885 }
 0x2cb   : > { %7287 = vmatpush3.xpose.msk.msra.mxu0 %vm1943_vm0, %v4827_v58  ;;  %v4815_v15 = vpop.permute.xlu1 %4814  ;;  %10449 = vst [vmem:[#allocation25_spill] sm:$0xff] %v9133_v17 }
 0x2cc   : > { %7288 = vmatprep.subr.msk.mxu0 %vm1943_vm0, %v4825_v21 }
 0x2cf   : > { %7289 = vmatpush3.xpose.msk.msra.mxu0 %vm1943_vm0, %v4825_v21  ;;  %v9117_v24 = vpop.permute.xlu1 %2724 }
 0x2d2   : > { %7291 = vmatmul.mubr.msk.f32.vlgmr.msra.gmra.mxu0 %vm1943_vm0, %v4803_v44 }
 0x2d3   : > { %7293 = vmatprep.mubr.msk.f32.mxu0 %vm1943_vm0, %v4805_v27  ;;  %v9119_v36 = vpop.permute.xlu1 %3883 }
 0x2d4   : > { %10446 = vst [vmem:[#allocation22_spill] sm:$0xff] %v9119_v36 }
 0x2d6   : > { %7294 = vmatmul.mubr.msk.f32.gmra.mxu0 %vm1943_vm0, %v4807_v26  ;;  %v9155_v26 = vpop.permute.xlu0 %2730 }
 0x2d7   : > { %7296 = vmatprep.mubr.msk.f32.mxu0 %vm1943_vm0, %v4809_v37  ;;  %v9121_v19 = vpop.permute.xlu1 %2728 }
 0x2da   : > { %7297 = vmatmul.mubr.msk.f32.gmra.mxu0 %vm1943_vm0, %v4811_v25 }
 0x2db   : > { %7299 = vmatprep.mubr.msk.f32.mxu0 %vm1943_vm0, %v4813_v43  ;;  %v9123_v49 = vpop.permute.xlu1 %3887 }
 0x2dc   : > { %10447 = vst [vmem:[#allocation23_spill] sm:$0xff] %v9123_v49 }
 0x2de   : > { %7300 = vmatmul.mubr.msk.f32.gmra.mxu0 %vm1943_vm0, %v4815_v15 }
 0x2df   : > { %v9125_v14 = vpop.permute.xlu1 %2732 }
 0x2e1   : > { %2124 = vmax.xlane.f32.xlu1 %v2123_v13 }
 0x2e3   : > { %v9127_v8 = vpop.permute.xlu1 %3891 }
 0x2e4   : > { %10448 = vst [vmem:[#allocation24_spill] sm:$0xff] %v9127_v8 }
 0x2e7   : > { %v9131_v12 = vpop.permute.xlu1 %2734 }
 0x2eb   : > { %v9141_v3 = vpop.permute.xlu1 %3893 }
 0x2ec   : > { %10450 = vst [vmem:[#allocation26_spill] sm:$0xff] %v9141_v3 }
 0x2ef   : > { %v9163_v43 = vpop.permute.xlu1 %2738 }
 0x312   : > { %v6956_v23 = vpop.f32.mrf.mxu0 }
 0x313   : > { %v9137_v7 = vsel %vm8956_vm1, %v6956_v23, -1e+30 }
 0x314   : > { %v2621_v45 = vpop.f32.mrf.mxu0  ;;  %v2671_v58 = vsel %vm1943_vm0, %v9137_v7, -inf }
 0x315   : > { %v9145_v63 = vsel %vm8968_vm2, %v2621_v45, -1e+30  ;;  %2672 = vmax.xlane.f32.xlu0 %v2671_v58 }
 0x316   : > { %v6959_v48 = vpop.f32.mrf.mxu0  ;;  %v2668_v21 = vsel %vm1943_vm0, %v9145_v63, -inf }
 0x317   : > { %v9151_v16 = vsel %vm8981_vm3, %v6959_v48, -1e+30  ;;  %2669 = vmax.xlane.f32.xlu1 %v2668_v21  ;;  %v9177_v48 = vpop.permute.xlu0 %3889 }
 0x318   : > { %v2631_v44 = vpop.f32.mrf.mxu0  ;;  %v2677_v27 = vsel %vm1943_vm0, %v9151_v16, -inf  ;;  %10451 = vst [vmem:[#allocation27_spill] sm:$0xff] %v9177_v48 }
 0x319   : > { %v9159_v37 = vsel %vm9002_vm4, %v2631_v44, -1e+30  ;;  %2678 = vmax.xlane.f32.xlu0 %v2677_v27 }
 0x31a   : > { %v6962_v47 = vpop.f32.mrf.mxu0  ;;  %v2674_v25 = vsel %vm1943_vm0, %v9159_v37, -inf }
 0x31b   : > { %v9167_v22 = vsel %vm9023_vm6, %v6962_v47, -1e+30  ;;  %2675 = vmax.xlane.f32.xlu1 %v2674_v25  ;;  %v9185_v47 = vpop.permute.xlu1 %3897 }
 0x31c   : > { %v2641_v15 = vpop.f32.mrf.mxu0  ;;  %v2683_v13 = vsel %vm1943_vm0, %v9167_v22, -inf  ;;  %10452 = vst [vmem:[#allocation28_spill] sm:$0xff] %v9185_v47 }
 0x31d   : > { %v9173_v23 = vsel %vm9012_vm5, %v2641_v15, -1e+30  ;;  %2684 = vmax.xlane.f32.xlu0 %v2683_v13  ;;  %v9193_v13 = vpop.permute.xlu0 %2736 }
 0x31e   : > { %v6965_v45 = vpop.f32.mrf.mxu0  ;;  %v2680_v58 = vsel %vm1943_vm0, %v9173_v23, -inf }
 0x31f   : > { %v9181_v21 = vsel %vm9043_vm7, %v6965_v45, -1e+30  ;;  %2681 = vmax.xlane.f32.xlu1 %v2680_v58  ;;  %v9195_v45 = vpop.permute.xlu1 %5055 }
 0x320   : > { %v2651_v44 = vpop.f32.mrf.mxu0  ;;  %v2689_v27 = vsel %vm1943_vm0, %v9181_v21, -inf  ;;  %10453 = vst [vmem:[#allocation29_spill] sm:$0xff] %v9195_v45 }
 0x321   : > { %v9189_v25 = vsel %vm9104_vm8, %v2651_v44, -1e+30  ;;  %2690 = vmax.xlane.f32.xlu0 %v2689_v27  ;;  %v9197_v58 = vpop.permute.xlu0 %3895  ;;  %v9203_v27 = vadd.f32 %v8742_v6, %v8890_v42 }
 0x322   : > { %v2686_v15 = vsel %vm1943_vm0, %v9189_v25, -inf  ;;  %10454 = vst [vmem:[#allocation30_spill] sm:$0xff] %v9197_v58 }
 0x323   : > { %2687 = vmax.xlane.f32.xlu1 %v2686_v15  ;;  %10455 = vst [vmem:[#allocation31_spill] sm:$0xff] %v9203_v27 }
 0x32b   : > { %v2110_v11 = vpop.xlane.xlu1 %2109 }
 0x32c   : > { %v2130_v18 = vsub.f32 %v8974_v30, %v2110_v11 }
 0x32d   : > { %v2107_v52 = vpop.xlane.xlu0 %2106 }
 0x32e   : > { %v2129_v62 = vsub.f32 %v8988_v35, %v2107_v52  ;;  %v2139_v40 = vmul.f32 1.442695, %v2130_v18 }
 0x330   : > { %v2137_v44 = vmul.f32 1.442695, %v2129_v62 }
 0x331   : > { %v2116_v36 = vpop.xlane.xlu0 %2115 }
 0x332   : > { %7527 = vpow2.f32 %v2137_v44  ;;  %v9205_v17 = vpop.f32.mrf.mxu0  ;;  %v2132_v15 = vsub.f32 %v8997_v60, %v2116_v36 }
 0x333   : > { %7529 = vpow2.f32 %v2139_v40 }
 0x334   : > { %v3217_v45 = vpop.f32.mrf.mxu0  ;;  %5049 = vrot.lane.b32.xlu1 %v9203_v27, %s7932_s21  ;;  %v2143_v11 = vmul.f32 1.442695, %v2132_v15 }
 0x335   : > { %v9212_v52 = vsel %vm8968_vm2, %v3217_v45, -1e+30  ;;  %v2113_v18 = vpop.xlane.xlu0 %2112  ;;  %v2119_v30 = vpop.xlane.xlu1 %2118 }
 0x336   : > { %v2131_v35 = vsub.f32 %v9018_v53, %v2113_v18  ;;  %v2133_v6 = vsub.f32 %v9030_v2, %v2119_v30  ;;  %v7043_v42 = vpop.f32.mrf.mxu0  ;;  %v3264_v40 = vsel %vm1943_vm0, %v9212_v52, -inf }
 0x337   : > { %v9220_v60 = vsel %vm8981_vm3, %v7043_v42, -1e+30  ;;  %3265 = vmax.xlane.f32.xlu0 %v3264_v40 }
 0x338   : > { %v2141_v62 = vmul.f32 1.442695, %v2131_v35  ;;  %v2145_v36 = vmul.f32 1.442695, %v2133_v6  ;;  %v3227_v45 = vpop.f32.mrf.mxu0  ;;  %v3273_v2 = vsel %vm1943_vm0, %v9220_v60, -inf }
 0x339   : > { %v2122_v44 = vpop.xlane.xlu0 %2121  ;;  %v9227_v15 = vsel %vm9002_vm4, %v3227_v45, -1e+30 }
 0x33a   : > { %7531 = vpow2.f32 %v2141_v62  ;;  %v2134_v27 = vsub.f32 %v9040_v0, %v2122_v44  ;;  %v7046_v53 = vpop.f32.mrf.mxu0  ;;  %v3270_v35 = vsel %vm1943_vm0, %v9227_v15, -inf }
 0x33b   : > { %7533 = vpow2.f32 %v2143_v11  ;;  %3274 = vmax.xlane.f32.xlu0 %v3273_v2  ;;  %v9235_v0 = vsel %vm9023_vm6, %v7046_v53, -1e+30 }
 0x33c   : > { %7535 = vpow2.f32 %v2145_v36  ;;  %v2147_v18 = vmul.f32 1.442695, %v2134_v27  ;;  %v3237_v30 = vpop.f32.mrf.mxu0  ;;  %v10456_v27 = vmov 1.0   ;;  %v3279_v11 = vsel %vm1943_vm0, %v9235_v0, -inf }
 0x33e   : > { %7537 = vpow2.f32 %v2147_v18  ;;  %v7049_v40 = vpop.f32.mrf.mxu0 }
 0x33f   : > { %v9231_v6 = vpop.eup %7527  ;;  %3271 = vmax.xlane.f32.xlu0 %v3270_v35  ;;  %v9248_v62 = vsel %vm9043_vm7, %v7049_v40, -1e+30 }
 0x340   : > { %v9237_v42 = vpop.eup %7529  ;;  %6898 = vmatprep.mubr.msk.f32.mxu1 %vm1943_vm0, %v9231_v6  ;;  %10457 = vst [vmem:[#allocation32_spill] sm:$0xff] %v9248_v62  ;;  %v3285_v36 = vsel %vm1943_vm0, %v9248_v62, -inf  ;;  %v3247_v18 = vpop.f32.mrf.mxu0 }
 0x341   : > { %6899 = vmatmul.mubr.msk.f32.vlgmr.msra.gmra.mxu1 %vm1943_vm0, %v9237_v42 }
 0x342   : > { %6911 = vmatpush3.msra.mxu1 %v10456_v27 }
 0x343   : > { %6912 = vmatprep.subr.mxu1 %v10456_v27  ;;  %3280 = vmax.xlane.f32.xlu0 %v3279_v11  ;;  %v9290_v11 = vsel %vm8956_vm1, %v9205_v17, -1e+30 }
 0x344   : > { %6913 = vmatpush3.msra.mxu1 %v10456_v27  ;;  %v3267_v3 = vsel %vm1943_vm0, %v9290_v11, -inf }
 0x345   : > { %6914 = vmatprep.subr.mxu1 %v10456_v27 }
 0x346   : > { %6915 = vmatpush3.msra.mxu1 %v10456_v27 }
 0x347   : > { %v9256_v45 = vpop.eup %7531  ;;  %6916 = vmatprep.subr.mxu1 %v10456_v27  ;;  %3286 = vmax.xlane.f32.xlu0 %v3285_v36 }
 0x348   : > { %v9259_v44 = vpop.eup %7533  ;;  %6917 = vmatpush3.msra.mxu1 %v10456_v27  ;;  %6901 = vmatprep.mubr.msk.f32.mxu1 %vm1943_vm0, %v9256_v45 }
 0x349   : > { %v9264_v53 = vpop.eup %7535  ;;  %6918 = vmatprep.subr.mxu1 %v10456_v27  ;;  %6902 = vmatmul.mubr.msk.f32.gmra.mxu1 %vm1943_vm0, %v9259_v44 }
 0x34a   : > { %6919 = vmatpush3.msra.mxu1 %v10456_v27  ;;  %6904 = vmatprep.mubr.msk.f32.mxu1 %vm1943_vm0, %v9264_v53 }
 0x34b   : > { %v9272_v2 = vpop.eup %7537  ;;  %6920 = vmatprep.subr.mxu1 %v10456_v27 }
 0x34c   : > { %6921 = vmatpush3.msra.mxu1 %v10456_v27 }
 0x34d   : > { %6922 = vmatprep.subr.mxu1 %v10456_v27  ;;  %6905 = vmatmul.mubr.msk.f32.gmra.mxu1 %vm1943_vm0, %v9272_v2 }
 0x34e   : > { %6923 = vmatpush3.msra.mxu1 %v10456_v27 }
 0x34f   : > { %6924 = vmatprep.subr.mxu1 %v10456_v27 }
 0x350   : > { %6925 = vmatpush3.msra.mxu1 %v10456_v27 }
 0x351   : > { %6966 = vmatprep.subr.mxu1 %v9163_v43 }
 0x352   : > { %v7124_v35 = vpop.f32.mrf.mxu0 }
 0x353   : > { %v9285_v40 = vsel %vm8956_vm1, %v7124_v35, -1e+30  ;;  %v9302_v35 = vsel %vm9012_vm5, %v3237_v30, -1e+30 }
 0x354   : > { %10458 = vst [vmem:[#allocation33_spill] sm:$0xff] %v9285_v40  ;;  %v3780_v36 = vpop.f32.mrf.mxu0  ;;  %v3830_v49 = vsel %vm1943_vm0, %v9285_v40, -inf  ;;  %v9314_v40 = vsel %vm9104_vm8, %v3247_v18, -1e+30 }
 0x355   : > { %3831 = vmax.xlane.f32.xlu0 %v3830_v49  ;;  %10461 = vst [vmem:[#allocation36_spill] sm:$0xff] %v9314_v40  ;;  %v9326_v62 = vsel %vm8968_vm2, %v3780_v36, -1e+30 }
 0x356   : > { %v7127_v48 = vpop.f32.mrf.mxu0  ;;  %10463 = vst [vmem:[#allocation38_spill] sm:$0xff] %v9326_v62 }
 0x357   : > { %v9296_v8 = vsel %vm8981_vm3, %v7127_v48, -1e+30  ;;  %v3276_v48 = vsel %vm1943_vm0, %v9302_v35, -inf }
 0x358   : > { %10459 = vst [vmem:[#allocation34_spill] sm:$0xff] %v9296_v8  ;;  %3268 = vmax.xlane.f32.xlu1 %v3267_v3  ;;  %v3790_v17 = vpop.f32.mrf.mxu0  ;;  %v3836_v58 = vsel %vm1943_vm0, %v9296_v8, -inf }
 0x359   : > { %3837 = vmax.xlane.f32.xlu0 %v3836_v58 }
 0x35a   : > { %v7130_v47 = vpop.f32.mrf.mxu0 }
 0x35b   : > { %v9308_v49 = vsel %vm9023_vm6, %v7130_v47, -1e+30  ;;  %v3282_v47 = vsel %vm1943_vm0, %v9314_v40, -inf }
 0x35c   : > { %10460 = vst [vmem:[#allocation35_spill] sm:$0xff] %v9308_v49  ;;  %3277 = vmax.xlane.f32.xlu1 %v3276_v48  ;;  %v3800_v30 = vpop.f32.mrf.mxu0  ;;  %v3842_v3 = vsel %vm1943_vm0, %v9308_v49, -inf  ;;  %v3827_v48 = vsel %vm1943_vm0, %v9326_v62, -inf  ;;  %v9336_v49 = vpop.permute.xlu1 %5051 }
 0x35d   : > { %3843 = vmax.xlane.f32.xlu0 %v3842_v3  ;;  %v9334_v3 = vsel %vm9002_vm4, %v3790_v17, -1e+30  ;;  %10465 = vst [vmem:[#allocation40_spill] sm:$0xff] %v9336_v49 }
 0x35e   : > { %v7133_v8 = vpop.f32.mrf.mxu0  ;;  %10464 = vst [vmem:[#allocation39_spill] sm:$0xff] %v9334_v3  ;;  %v3833_v36 = vsel %vm1943_vm0, %v9334_v3, -inf }
 0x35f   : > { %v9320_v58 = vsel %vm9043_vm7, %v7133_v8, -1e+30  ;;  %v2128_v8 = vpop.xlane.xlu0 %2127 }
 0x360   : > { %10462 = vst [vmem:[#allocation37_spill] sm:$0xff] %v9320_v58  ;;  %3283 = vmax.xlane.f32.xlu1 %v3282_v47  ;;  %v3848_v18 = vsel %vm1943_vm0, %v9320_v58, -inf  ;;  %v2136_v47 = vsub.f32 %v9055_v29, %v2128_v8  ;;  %v9343_v58 = vsel %vm9012_vm5, %v3800_v30, -1e+30 }
 0x361   : > { %3849 = vmax.xlane.f32.xlu0 %v3848_v18  ;;  %v3810_v18 = vpop.f32.mrf.mxu0  ;;  %v3839_v17 = vsel %vm1943_vm0, %v9343_v58, -inf }
 0x362   : > { %v2151_v40 = vmul.f32 1.442695, %v2136_v47  ;;  %v9350_v49 = vsel %vm9104_vm8, %v3810_v18, -1e+30 }
 0x363   : > { %v3845_v29 = vsel %vm1943_vm0, %v9350_v49, -inf }
 0x364   : > { %3828 = vmax.xlane.f32.xlu1 %v3827_v48 }
 0x368   : > { %3834 = vmax.xlane.f32.xlu1 %v3833_v36 }
 0x36a   : > { %v2125_v62 = vpop.xlane.xlu1 %2124 }
 0x36b   : > { %v2135_v48 = vsub.f32 %v9112_v46, %v2125_v62  ;;  %v9360_v62 = vadd.f32 %v8726_v9, %v8876_v5 }
 0x36c   : > { %3840 = vmax.xlane.f32.xlu1 %v3839_v17 }
 0x36d   : > { %v2149_v3 = vmul.f32 1.442695, %v2135_v48 }
 0x36f   : > { %7539 = vpow2.f32 %v2149_v3 }
 0x370   : > { %7541 = vpow2.f32 %v2151_v40  ;;  %3846 = vmax.xlane.f32.xlu1 %v3845_v29 }
 0x372   : > { %v7208_v30 = vpop.f32.mrf.mxu0 }
 0x373   : > { %v9421_v17 = vsel %vm8956_vm1, %v7208_v30, -1e+30 }
 0x374   : > { %v4375_v46 = vpop.f32.mrf.mxu0  ;;  %v4425_v30 = vsel %vm1943_vm0, %v9421_v17, -inf }
 0x376   : > { %v7211_v40 = vpop.f32.mrf.mxu0 }
 0x377   : > { %5047 = vrot.lane.b32.xlu0 %v8872_v38, %s7932_s21 }
 0x378   : > { %v4385_v3 = vpop.f32.mrf.mxu0 }
 0x37a   : > { %v7214_v9 = vpop.f32.mrf.mxu0 }
 0x37c   : > { %v7540_v8 = vpop.eup %7539  ;;  %v4395_v5 = vpop.f32.mrf.mxu0 }
 0x37d   : > { %v7542_v36 = vpop.eup %7541  ;;  %6907 = vmatprep.mubr.msk.f32.mxu1 %vm1943_vm0, %v7540_v8 }
 0x37e   : > { %6908 = vmatmul.mubr.msk.f32.gmra.mxu1 %vm1943_vm0, %v7542_v36 }
 0x37f   : > { %6926 = vmatprep.mubr.msk.f32.mxu1 %vm1943_vm0, %v9231_v6  ;;  %v9410_v6 = vsel %vm9002_vm4, %v4385_v3, -1e+30 }
 0x381   : > { %5045 = vrot.lane.b32.xlu1 %v9360_v62, %s7932_s21 }
 0x382   : > { %6927 = vmatmul.mubr.msk.f32.vlgmr.msra.gmra.mxu1 %vm1943_vm0, %v9237_v42 }
 0x383   : > { %6967 = vmatpush3.msra.mxu1 %v9163_v43  ;;  %6929 = vmatprep.mubr.msk.f32.mxu1 %vm1943_vm0, %v9256_v45  ;;  %v9402_v43 = vsel %vm8981_vm3, %v7211_v40, -1e+30  ;;  %v4428_v45 = vsel %vm1943_vm0, %v9410_v6, -inf }
 0x384   : > { %6968 = vmatprep.subr.mxu1 %v9193_v13 }
 0x385   : > { %6969 = vmatpush3.msra.mxu1 %v9193_v13  ;;  %v4431_v13 = vsel %vm1943_vm0, %v9402_v43, -inf }
 0x386   : > { %6970 = vmatprep.subr.mxu1 %v9131_v12  ;;  %6930 = vmatmul.mubr.msk.f32.gmra.mxu1 %vm1943_vm0, %v9259_v44  ;;  %v9416_v44 = vsel %vm9023_vm6, %v7214_v9, -1e+30 }
 0x387   : > { %6971 = vmatpush3.msra.mxu1 %v9131_v12  ;;  %6932 = vmatprep.mubr.msk.f32.mxu1 %vm1943_vm0, %v9264_v53  ;;  %v9395_v12 = vsel %vm8968_vm2, %v4375_v46, -1e+30  ;;  %v4437_v48 = vsel %vm1943_vm0, %v9416_v44, -inf }
 0x388   : > { %6972 = vmatprep.subr.mxu1 %v9125_v14 }
 0x389   : > { %6973 = vmatpush3.msra.mxu1 %v9125_v14  ;;  %v7217_v14 = vpop.f32.mrf.mxu0 }
 0x38a   : > { %6974 = vmatprep.subr.mxu1 %v9155_v26  ;;  %6933 = vmatmul.mubr.msk.f32.gmra.mxu1 %vm1943_vm0, %v9272_v2 }
 0x38b   : > { %6975 = vmatpush3.msra.mxu1 %v9155_v26  ;;  %6935 = vmatprep.mubr.msk.f32.mxu1 %vm1943_vm0, %v7540_v8  ;;  %v4405_v26 = vpop.f32.mrf.mxu0  ;;  %v9428_v8 = vsel %vm9043_vm7, %v7217_v14, -1e+30 }
 0x38c   : > { %6976 = vmatprep.subr.mxu1 %v9121_v19 }
 0x38d   : > { %6977 = vmatpush3.msra.mxu1 %v9121_v19  ;;  %v4422_v19 = vsel %vm1943_vm0, %v9395_v12, -inf }
 0x38e   : > { %6978 = vmatprep.subr.mxu1 %v9129_v54  ;;  %6936 = vmatmul.mubr.msk.f32.gmra.mxu1 %vm1943_vm0, %v7542_v36 }
 0x38f   : > { %6979 = vmatpush3.msra.mxu1 %v9129_v54 }
 0x390   : > { %6980 = vmatprep.subr.mxu1 %v9117_v24 }
 0x391   : > { %6981 = vmatpush3.msra.mxu1 %v9117_v24  ;;  %v9406_v24 = vpop.permute.xlu0 %5053 }
 0x392   : > { %6994 = vmatprep.subr.mxu1 %v10456_v27  ;;  %v7292_v54 = vpop.f32.mrf.mxu0 }
 0x394   : > { %v4938_v42 = vpop.f32.mrf.mxu0 }
 0x396   : > { %4423 = vmax.xlane.f32.xlu0 %v4422_v19  ;;  %v7295_v2 = vpop.f32.mrf.mxu0  ;;  %v9435_v19 = vsel %vm9012_vm5, %v4395_v5, -1e+30 }
 0x398   : > { %v4948_v40 = vpop.f32.mrf.mxu0 }
 0x39a   : > { %4432 = vmax.xlane.f32.xlu0 %v4431_v13  ;;  %v9442_v13 = vsel %vm8956_vm1, %v7292_v54, -1e+30 }
 0x39b   : > { %v4988_v56 = vsel %vm1943_vm0, %v9442_v13, -inf }
 0x39e   : > { %v2673_v53 = vpop.xlane.xlu0 %2672  ;;  %4429 = vmax.xlane.f32.xlu0 %v4428_v45 }
 0x39f   : > { %v2693_v47 = vsub.f32 %v9137_v7, %v2673_v53  ;;  %v7298_v53 = vpop.f32.mrf.mxu0 }
 0x3a0   : > { %v2670_v18 = vpop.xlane.xlu1 %2669 }
 0x3a1   : > { %v2692_v29 = vsub.f32 %v9145_v63, %v2670_v18  ;;  %v2702_v36 = vmul.f32 1.442695, %v2693_v47  ;;  %v4443_v63 = vsel %vm1943_vm0, %v9428_v8, -inf  ;;  %v4434_v18 = vsel %vm1943_vm0, %v9435_v19, -inf }
 0x3a2   : > { %v2679_v46 = vpop.xlane.xlu0 %2678  ;;  %4438 = vmax.xlane.f32.xlu0 %v4437_v48 }
 0x3a3   : > { %v2700_v3 = vmul.f32 1.442695, %v2692_v29  ;;  %v2695_v7 = vsub.f32 %v9151_v16, %v2679_v46  ;;  %v9456_v29 = vsel %vm8981_vm3, %v7295_v2, -1e+30  ;;  %v4958_v46 = vpop.f32.mrf.mxu0 }
 0x3a4   : > { %v2676_v9 = vpop.xlane.xlu1 %2675  ;;  %v4994_v31 = vsel %vm1943_vm0, %v9456_v29, -inf }
 0x3a5   : > { %7543 = vpow2.f32 %v2700_v3  ;;  %v2694_v14 = vsub.f32 %v9159_v37, %v2676_v9  ;;  %4426 = vmax.xlane.f32.xlu1 %v4425_v30  ;;  %v2706_v16 = vmul.f32 1.442695, %v2695_v7  ;;  %v9449_v37 = vsel %vm9104_vm8, %v4405_v26, -1e+30 }
 0x3a6   : > { %7545 = vpow2.f32 %v2702_v36  ;;  %v2685_v45 = vpop.xlane.xlu0 %2684  ;;  %4444 = vmax.xlane.f32.xlu0 %v4443_v63  ;;  %v4440_v7 = vsel %vm1943_vm0, %v9449_v37, -inf  ;;  %v9470_v9 = vsel %vm9023_vm6, %v7298_v53, -1e+30  ;;  %v7301_v63 = vpop.f32.mrf.mxu0 }
 0x3a7   : > { %v2704_v47 = vmul.f32 1.442695, %v2694_v14  ;;  %v2697_v5 = vsub.f32 %v9167_v22, %v2685_v45 }
 0x3a8   : > { %v2682_v48 = vpop.xlane.xlu1 %2681 }
 0x3a9   : > { %7547 = vpow2.f32 %v2704_v47  ;;  %v2696_v54 = vsub.f32 %v9173_v23, %v2682_v48  ;;  %4435 = vmax.xlane.f32.xlu1 %v4434_v18  ;;  %v2710_v22 = vmul.f32 1.442695, %v2697_v5  ;;  %v9463_v23 = vsel %vm8968_vm2, %v4938_v42, -1e+30  ;;  %v4968_v47 = vpop.f32.mrf.mxu0 }
 0x3aa   : > { %7549 = vpow2.f32 %v2706_v16  ;;  %v2691_v36 = vpop.xlane.xlu0 %2690  ;;  %4989 = vmax.xlane.f32.xlu0 %v4988_v56  ;;  %v4985_v20 = vsel %vm1943_vm0, %v9463_v23, -inf  ;;  %v9476_v42 = vsel %vm9002_vm4, %v4948_v40, -1e+30  ;;  %v9482_v16 = vsel %vm9043_vm7, %v7301_v63, -1e+30 }
 0x3ab   : > { %v2708_v3 = vmul.f32 1.442695, %v2696_v54  ;;  %v2699_v26 = vsub.f32 %v9181_v21, %v2691_v36  ;;  %v4991_v10 = vsel %vm1943_vm0, %v9476_v42, -inf  ;;  %v9490_v40 = vsel %vm9012_vm5, %v4958_v46, -1e+30 }
 0x3ac   : > { %v2688_v30 = vpop.xlane.xlu1 %2687  ;;  %v5006_v53 = vsel %vm1943_vm0, %v9482_v16, -inf  ;;  %v4997_v57 = vsel %vm1943_vm0, %v9490_v40, -inf  ;;  %v9504_v18 = vsel %vm9104_vm8, %v4968_v47, -1e+30 }
 0x3ad   : > { %7551 = vpow2.f32 %v2708_v3  ;;  %v2698_v2 = vsub.f32 %v9189_v25, %v2688_v30  ;;  %4441 = vmax.xlane.f32.xlu1 %v4440_v7  ;;  %v2714_v21 = vmul.f32 1.442695, %v2699_v26  ;;  %v5000_v25 = vsel %vm1943_vm0, %v9470_v9, -inf }
 0x3ae   : > { %7553 = vpow2.f32 %v2710_v22  ;;  %4995 = vmax.xlane.f32.xlu0 %v4994_v31  ;;  %v5003_v54 = vsel %vm1943_vm0, %v9504_v18, -inf }
 0x3af   : > { %v2712_v14 = vmul.f32 1.442695, %v2698_v2 }
 0x3b1   : > { %7555 = vpow2.f32 %v2712_v14  ;;  %4986 = vmax.xlane.f32.xlu1 %v4985_v20 }
 0x3b2   : > { %v7544_v28 = vpop.eup %7543  ;;  %7557 = vpow2.f32 %v2714_v21  ;;  %5001 = vmax.xlane.f32.xlu0 %v5000_v25 }
 0x3b3   : > { %v7546_v45 = vpop.eup %7545  ;;  %6982 = vmatprep.mubr.msk.f32.mxu1 %vm1943_vm0, %v7544_v28 }
 0x3b4   : > { %6983 = vmatmul.mubr.msk.f32.vlgmr.msra.gmra.mxu1 %vm1943_vm0, %v7546_v45 }
 0x3b5   : > { %6995 = vmatpush3.msra.mxu1 %v10456_v27  ;;  %4992 = vmax.xlane.f32.xlu1 %v4991_v10 }
 0x3b6   : > { %v7548_v32 = vpop.eup %7547  ;;  %6996 = vmatprep.subr.mxu1 %v10456_v27  ;;  %5007 = vmax.xlane.f32.xlu0 %v5006_v53 }
 0x3b7   : > { %v7550_v5 = vpop.eup %7549  ;;  %6997 = vmatpush3.msra.mxu1 %v10456_v27  ;;  %6985 = vmatprep.mubr.msk.f32.mxu1 %vm1943_vm0, %v7548_v32 }
 0x3b8   : > { %6998 = vmatprep.subr.mxu1 %v10456_v27  ;;  %6986 = vmatmul.mubr.msk.f32.gmra.mxu1 %vm1943_vm0, %v7550_v5 }
 0x3b9   : > { %6999 = vmatpush3.msra.mxu1 %v10456_v27  ;;  %4998 = vmax.xlane.f32.xlu1 %v4997_v57 }
 0x3ba   : > { %v7552_v48 = vpop.eup %7551  ;;  %7000 = vmatprep.subr.mxu1 %v10456_v27 }
 0x3bb   : > { %v7554_v56 = vpop.eup %7553  ;;  %7001 = vmatpush3.msra.mxu1 %v10456_v27  ;;  %6988 = vmatprep.mubr.msk.f32.mxu1 %vm1943_vm0, %v7552_v48 }
 0x3bc   : > { %7002 = vmatprep.subr.mxu1 %v10456_v27  ;;  %6989 = vmatmul.mubr.msk.f32.gmra.mxu1 %vm1943_vm0, %v7554_v56 }
 0x3bd   : > { %7003 = vmatpush3.msra.mxu1 %v10456_v27  ;;  %5004 = vmax.xlane.f32.xlu1 %v5003_v54 }
 0x3be   : > { %v7556_v61 = vpop.eup %7555  ;;  %7004 = vmatprep.subr.mxu1 %v10456_v27 }
 0x3bf   : > { %v7558_v22 = vpop.eup %7557  ;;  %7005 = vmatpush3.msra.mxu1 %v10456_v27  ;;  %6991 = vmatprep.mubr.msk.f32.mxu1 %vm1943_vm0, %v7556_v61 }
 0x3c0   : > { %7006 = vmatprep.subr.mxu1 %v10456_v27  ;;  %v3266_v36 = vpop.xlane.xlu0 %3265  ;;  %6992 = vmatmul.mubr.msk.f32.gmra.mxu1 %vm1943_vm0, %v7558_v22 }
 0x3c1   : > { %v3288_v46 = vsub.f32 %v9212_v52, %v3266_v36  ;;  %7007 = vmatpush3.msra.mxu1 %v10456_v27  ;;  %7010 = vmatprep.mubr.msk.f32.mxu1 %vm1943_vm0, %v7544_v28 }
 0x3c2   : > { %7008 = vmatprep.subr.mxu1 %v10456_v27 }
 0x3c3   : > { %v3296_v3 = vmul.f32 1.442695, %v3288_v46  ;;  %7009 = vmatpush3.msra.mxu1 %v10456_v27  ;;  %v10470_v46 = vld [vmem:[#allocation33_spill] sm:$0xff] }
 0x3c4   : > { %7050 = vmatprep.subr.mxu1 %v8866_v50  ;;  %7011 = vmatmul.mubr.msk.f32.vlgmr.msra.gmra.mxu1 %vm1943_vm0, %v7546_v45  ;;  %v10468_v45 = vld [vmem:[#allocation36_spill] sm:$0xff] }
 0x3c5   : > { %7559 = vpow2.f32 %v3296_v3  ;;  %7051 = vmatpush3.msra.mxu1 %v8866_v50  ;;  %7013 = vmatprep.mubr.msk.f32.mxu1 %vm1943_vm0, %v7548_v32  ;;  %v10466_v50 = vld [vmem:[#allocation17_spill] sm:$0xff] }
 0x3c6   : > { %7052 = vmatprep.subr.mxu1 %v8845_v55  ;;  %v9541_v52 = vadd.f32 %v10466_v50, %v8863_v39 }
 0x3c7   : > { %7053 = vmatpush3.msra.mxu1 %v8845_v55 }
 0x3c8   : > { %7054 = vmatprep.subr.mxu1 %v8840_v51  ;;  %7014 = vmatmul.mubr.msk.f32.gmra.mxu1 %vm1943_vm0, %v7550_v5 }
 0x3c9   : > { %7055 = vmatpush3.msra.mxu1 %v8840_v51  ;;  %7016 = vmatprep.mubr.msk.f32.mxu1 %vm1943_vm0, %v7552_v48  ;;  %v9561_v51 = vpop.permute.xlu1 %5049 }
 0x3ca   : > { %7056 = vmatprep.subr.mxu1 %v8817_v4 }
 0x3cb   : > { %7057 = vmatpush3.msra.mxu1 %v8817_v4 }
 0x3cc   : > { %7058 = vmatprep.subr.mxu1 %v8803_v34  ;;  %7017 = vmatmul.mubr.msk.f32.gmra.mxu1 %vm1943_vm0, %v7554_v56 }
 0x3cd   : > { %7059 = vmatpush3.msra.mxu1 %v8803_v34  ;;  %5043 = vrot.lane.b32.xlu0 %v8859_v33, %s7932_s21 }
 0x3ce   : > { %7019 = vmatprep.mubr.msk.f32.mxu1 %vm1943_vm0, %v7556_v61  ;;  %7060 = vmatprep.subr.mxu1 %v8787_v41 }
 0x3cf   : > { %7061 = vmatpush3.msra.mxu1 %v8787_v41  ;;  %5041 = vrot.lane.b32.xlu1 %v9541_v52, %s7932_s21  ;;  %v3275_v41 = vpop.xlane.xlu0 %3274 }
 0x3d0   : > { %7062 = vmatprep.subr.mxu1 %v8774_v1  ;;  %7020 = vmatmul.mubr.msk.f32.gmra.mxu1 %vm1943_vm0, %v7558_v22  ;;  %v3291_v39 = vsub.f32 %v9220_v60, %v3275_v41  ;;  %v10467_v60 = vld [vmem:[#allocation32_spill] sm:$0xff]  ;;  %v10469_v22 = vld [vmem:[#allocation38_spill] sm:$0xff] }
 0x3d1   : > { %7063 = vmatpush3.msra.mxu1 %v8774_v1 }
 0x3d2   : > { %v9554_v4 = vpop.eup %7559  ;;  %7064 = vmatprep.subr.mxu1 %v8764_v59 }
 0x3d3   : > { %7065 = vmatpush3.msra.mxu1 %v8764_v59  ;;  %7066 = vmatprep.mubr.msk.f32.mxu1 %vm1943_vm0, %v9554_v4  ;;  %v3272_v34 = vpop.xlane.xlu0 %3271  ;;  %v3302_v59 = vmul.f32 1.442695, %v3291_v39 }
 0x3d4   : > { %7078 = vmatprep.subr.mxu1 %v10456_v27  ;;  %v3290_v55 = vsub.f32 %v9227_v15, %v3272_v34 }
 0x3d6   : > { %v3300_v30 = vmul.f32 1.442695, %v3290_v55  ;;  %v10471_v55 = vld [vmem:[#allocation39_spill] sm:$0xff] }
 0x3d7   : > { %v3281_v1 = vpop.xlane.xlu0 %3280 }
 0x3d8   : > { %v3293_v2 = vsub.f32 %v9235_v0, %v3281_v1 }
 0x3da   : > { %v3306_v15 = vmul.f32 1.442695, %v3293_v2 }
 0x3db   : > { %v3287_v14 = vpop.xlane.xlu0 %3286 }
 0x3dc   : > { %v3295_v28 = vsub.f32 %v10467_v60, %v3287_v14  ;;  %v10476_v60 = vld [vmem:[#allocation26_spill] sm:$0xff] }
 0x3de   : > { %v3310_v53 = vmul.f32 1.442695, %v3295_v28 }
 0x3e1   : > { %v3269_v26 = vpop.xlane.xlu1 %3268 }
 0x3e2   : > { %v3289_v7 = vsub.f32 %v9290_v11, %v3269_v26 }
 0x3e4   : > { %v3298_v31 = vmul.f32 1.442695, %v3289_v7  ;;  %v10472_v7 = vld [vmem:[#allocation34_spill] sm:$0xff] }
 0x3e5   : > { %v3278_v21 = vpop.xlane.xlu1 %3277 }
 0x3e6   : > { %7561 = vpow2.f32 %v3298_v31  ;;  %v3292_v63 = vsub.f32 %v9302_v35, %v3278_v21  ;;  %v3832_v35 = vpop.xlane.xlu0 %3831  ;;  %v10473_v21 = vld [vmem:[#allocation28_spill] sm:$0xff] }
 0x3e7   : > { %7563 = vpow2.f32 %v3300_v30  ;;  %v3852_v3 = vsub.f32 %v10470_v46, %v3832_v35  ;;  %v10481_v35 = vld [vmem:[#allocation25_spill] sm:$0xff] }
 0x3e8   : > { %v3304_v20 = vmul.f32 1.442695, %v3292_v63  ;;  %7565 = vpow2.f32 %v3302_v59  ;;  %v10474_v63 = vld [vmem:[#allocation35_spill] sm:$0xff] }
 0x3e9   : > { %v3284_v25 = vpop.xlane.xlu1 %3283  ;;  %v3861_v26 = vmul.f32 1.442695, %v3852_v3 }
 0x3ea   : > { %7567 = vpow2.f32 %v3304_v20  ;;  %v3294_v11 = vsub.f32 %v10468_v45, %v3284_v25  ;;  %v3838_v61 = vpop.xlane.xlu0 %3837  ;;  %v10475_v20 = vld [vmem:[#allocation30_spill] sm:$0xff]  ;;  %v10477_v45 = vld [vmem:[#allocation37_spill] sm:$0xff] }
 0x3eb   : > { %7569 = vpow2.f32 %v3306_v15  ;;  %v3854_v30 = vsub.f32 %v10472_v7, %v3838_v61 }
 0x3ec   : > { %v3308_v10 = vmul.f32 1.442695, %v3294_v11 }
 0x3ed   : > { %v3829_v0 = vpop.xlane.xlu1 %3828 }
 0x3ee   : > { %7571 = vpow2.f32 %v3308_v10  ;;  %v3851_v36 = vsub.f32 %v10469_v22, %v3829_v0  ;;  %v3844_v1 = vpop.xlane.xlu0 %3843  ;;  %v10478_v10 = vld [vmem:[#allocation24_spill] sm:$0xff] }
 0x3ef   : > { %7573 = vpow2.f32 %v3310_v53  ;;  %v3856_v14 = vsub.f32 %v10474_v63, %v3844_v1 }
 0x3f0   : > { %v3859_v34 = vmul.f32 1.442695, %v3851_v36 }
 0x3f1   : > { %v3835_v48 = vpop.xlane.xlu1 %3834  ;;  %v3869_v28 = vmul.f32 1.442695, %v3856_v14 }
 0x3f2   : > { %v3853_v39 = vsub.f32 %v10471_v55, %v3835_v48  ;;  %7575 = vpow2.f32 %v3859_v34  ;;  %v3850_v15 = vpop.xlane.xlu0 %3849 }
 0x3f3   : > { %v7562_v32 = vpop.eup %7561  ;;  %7577 = vpow2.f32 %v3861_v26  ;;  %v3858_v11 = vsub.f32 %v10477_v45, %v3850_v15  ;;  %v10485_v26 = vld [vmem:[#allocation18_spill] sm:$0xff] }
 0x3f4   : > { %v7564_v47 = vpop.eup %7563  ;;  %7067 = vmatmul.mubr.msk.f32.vlgmr.msra.gmra.mxu1 %vm1943_vm0, %v7562_v32  ;;  %v3863_v31 = vmul.f32 1.442695, %v3853_v39  ;;  %v10483_v39 = vld [vmem:[#allocation19_spill] sm:$0xff] }
 0x3f5   : > { %7079 = vmatpush3.msra.mxu1 %v10456_v27  ;;  %7069 = vmatprep.mubr.msk.f32.mxu1 %vm1943_vm0, %v7564_v47  ;;  %v7566_v5 = vpop.eup %7565  ;;  %v3841_v50 = vpop.xlane.xlu1 %3840  ;;  %v3873_v0 = vmul.f32 1.442695, %v3858_v11 }
 0x3f6   : > { %7080 = vmatprep.subr.mxu1 %v10456_v27  ;;  %v3855_v59 = vsub.f32 %v9343_v58, %v3841_v50  ;;  %7579 = vpow2.f32 %v3863_v31  ;;  %v9637_v36 = vpop.permute.xlu0 %5047 }
 0x3f7   : > { %v7568_v57 = vpop.eup %7567  ;;  %7081 = vmatpush3.msra.mxu1 %v10456_v27 }
 0x3f8   : > { %7082 = vmatprep.subr.mxu1 %v10456_v27  ;;  %7070 = vmatmul.mubr.msk.f32.gmra.mxu1 %vm1943_vm0, %v7566_v5  ;;  %v7570_v56 = vpop.eup %7569  ;;  %v3867_v58 = vmul.f32 1.442695, %v3855_v59 }
 0x3f9   : > { %7083 = vmatpush3.msra.mxu1 %v10456_v27  ;;  %7072 = vmatprep.mubr.msk.f32.mxu1 %vm1943_vm0, %v7568_v57  ;;  %v3847_v2 = vpop.xlane.xlu1 %3846 }
 0x3fa   : > { %7084 = vmatprep.subr.mxu1 %v10456_v27  ;;  %v3857_v25 = vsub.f32 %v9350_v49, %v3847_v2  ;;  %v10479_v49 = vld [vmem:[#allocation27_spill] sm:$0xff] }
 0x3fb   : > { %v7572_v54 = vpop.eup %7571  ;;  %7085 = vmatpush3.msra.mxu1 %v10456_v27 }
 0x3fc   : > { %7086 = vmatprep.subr.mxu1 %v10456_v27  ;;  %7073 = vmatmul.mubr.msk.f32.gmra.mxu1 %vm1943_vm0, %v7570_v56  ;;  %v7574_v41 = vpop.eup %7573  ;;  %v3871_v53 = vmul.f32 1.442695, %v3857_v25 }
 0x3fd   : > { %7087 = vmatpush3.msra.mxu1 %v10456_v27  ;;  %7075 = vmatprep.mubr.msk.f32.mxu1 %vm1943_vm0, %v7572_v54  ;;  %v9663_v7 = vpop.permute.xlu1 %5045 }
 0x3fe   : > { %7088 = vmatprep.subr.mxu1 %v10456_v27 }
 0x3ff   : > { %7089 = vmatpush3.msra.mxu1 %v10456_v27 }
 0x400   : > { %7090 = vmatprep.subr.mxu1 %v10456_v27  ;;  %7076 = vmatmul.mubr.msk.f32.gmra.mxu1 %vm1943_vm0, %v7574_v41 }
 0x401   : > { %7091 = vmatpush3.msra.mxu1 %v10456_v27  ;;  %7094 = vmatprep.mubr.msk.f32.mxu1 %vm1943_vm0, %v9554_v4  ;;  %v3865_v4 = vmul.f32 1.442695, %v3854_v30  ;;  %v10486_v30 = vld [vmem:[#allocation31_spill] sm:$0xff] }
 0x402   : > { %7092 = vmatprep.subr.mxu1 %v10456_v27 }
 0x403   : > { %7093 = vmatpush3.msra.mxu1 %v10456_v27  ;;  %7581 = vpow2.f32 %v3865_v4 }
 0x404   : > { %7134 = vmatprep.subr.mxu1 %v10473_v21  ;;  %7095 = vmatmul.mubr.msk.f32.vlgmr.msra.gmra.mxu1 %vm1943_vm0, %v7562_v32  ;;  %7583 = vpow2.f32 %v3867_v58  ;;  %v10480_v32 = vld [vmem:[#allocation23_spill] sm:$0xff] }
 0x405   : > { %7135 = vmatpush3.msra.mxu1 %v10473_v21  ;;  %7097 = vmatprep.mubr.msk.f32.mxu1 %vm1943_vm0, %v7564_v47  ;;  %7585 = vpow2.f32 %v3869_v28  ;;  %v7576_v47 = vpop.eup %7575  ;;  %v9690_v28 = vpop.f32.mrf.mxu1 }
 0x406   : > { %7136 = vmatprep.subr.mxu1 %v10475_v20  ;;  %7587 = vpow2.f32 %v3871_v53  ;;  %v7578_v48 = vpop.eup %7577  ;;  %10487 = vst [vmem:[#allocation17_spill] sm:$0xff] %v9690_v28 }
 0x407   : > { %7137 = vmatpush3.msra.mxu1 %v10475_v20  ;;  %7589 = vpow2.f32 %v3873_v0 }
 0x408   : > { %7138 = vmatprep.subr.mxu1 %v10476_v60  ;;  %7098 = vmatmul.mubr.msk.f32.gmra.mxu1 %vm1943_vm0, %v7566_v5  ;;  %v10482_v5 = vld [vmem:[#allocation22_spill] sm:$0xff] }
 0x409   : > { %7139 = vmatpush3.msra.mxu1 %v10476_v60  ;;  %7100 = vmatprep.mubr.msk.f32.mxu1 %vm1943_vm0, %v7568_v57  ;;  %v7934_v57 = vmov 0  }
 0x40a   : > { %7140 = vmatprep.subr.mxu1 %v10478_v10  ;;  %7525 = vset.pattern.permute.xlu0 %v7934_v57 }
 0x40b   : > { %7141 = vmatpush3.msra.mxu1 %v10478_v10  ;;  %7526 = vset.pattern.permute.xlu1 %v7934_v57 }
 0x40c   : > { %7142 = vmatprep.subr.mxu1 %v10479_v49  ;;  %7101 = vmatmul.mubr.msk.f32.gmra.mxu1 %vm1943_vm0, %v7570_v56  ;;  %v7580_v56 = vpop.eup %7579 }
 0x40d   : > { %7143 = vmatpush3.msra.mxu1 %v10479_v49  ;;  %7103 = vmatprep.mubr.msk.f32.mxu1 %vm1943_vm0, %v7572_v54 }
 0x40e   : > { %7144 = vmatprep.subr.mxu1 %v10480_v32 }
 0x40f   : > { %7145 = vmatpush3.msra.mxu1 %v10480_v32 }
 0x410   : > { %7146 = vmatprep.subr.mxu1 %v10481_v35  ;;  %7104 = vmatmul.mubr.msk.f32.gmra.mxu1 %vm1943_vm0, %v7574_v41  ;;  %v7582_v54 = vpop.eup %7581 }
 0x411   : > { %7147 = vmatpush3.msra.mxu1 %v10481_v35  ;;  %7150 = vmatprep.mubr.msk.f32.mxu1 %vm1943_vm0, %v7576_v47  ;;  %v7584_v61 = vpop.eup %7583 }
 0x412   : > { %7148 = vmatprep.subr.mxu1 %v10482_v5  ;;  %v7586_v22 = vpop.eup %7585 }
 0x413   : > { %7149 = vmatpush3.msra.mxu1 %v10482_v5  ;;  %v7588_v46 = vpop.eup %7587 }
 0x414   : > { %7162 = vmatprep.subr.mxu1 %v10456_v27  ;;  %7151 = vmatmul.mubr.msk.f32.vlgmr.msra.gmra.mxu1 %vm1943_vm0, %v7578_v48  ;;  %v7590_v3 = vpop.eup %7589 }
 0x415   : > { %7163 = vmatpush3.msra.mxu1 %v10456_v27  ;;  %7153 = vmatprep.mubr.msk.f32.mxu1 %vm1943_vm0, %v7580_v56 }
 0x416   : > { %7164 = vmatprep.subr.mxu1 %v10456_v27 }
 0x417   : > { %7165 = vmatpush3.msra.mxu1 %v10456_v27 }
 0x418   : > { %7166 = vmatprep.subr.mxu1 %v10456_v27  ;;  %7154 = vmatmul.mubr.msk.f32.gmra.mxu1 %vm1943_vm0, %v7582_v54 }
 0x419   : > { %7167 = vmatpush3.msra.mxu1 %v10456_v27  ;;  %7156 = vmatprep.mubr.msk.f32.mxu1 %vm1943_vm0, %v7584_v61 }
 0x41a   : > { %7168 = vmatprep.subr.mxu1 %v10456_v27 }
 0x41b   : > { %7169 = vmatpush3.msra.mxu1 %v10456_v27 }
 0x41c   : > { %7170 = vmatprep.subr.mxu1 %v10456_v27  ;;  %7157 = vmatmul.mubr.msk.f32.gmra.mxu1 %vm1943_vm0, %v7586_v22 }
 0x41d   : > { %7171 = vmatpush3.msra.mxu1 %v10456_v27  ;;  %7159 = vmatprep.mubr.msk.f32.mxu1 %vm1943_vm0, %v7588_v46 }
 0x41e   : > { %7172 = vmatprep.subr.mxu1 %v10456_v27 }
 0x41f   : > { %7173 = vmatpush3.msra.mxu1 %v10456_v27  ;;  %v4424_v50 = vpop.xlane.xlu0 %4423 }
 0x420   : > { %v4446_v41 = vsub.f32 %v9395_v12, %v4424_v50  ;;  %7174 = vmatprep.subr.mxu1 %v10456_v27  ;;  %7160 = vmatmul.mubr.msk.f32.gmra.mxu1 %vm1943_vm0, %v7590_v3  ;;  %v10484_v12 = vld [vmem:[#allocation21_spill] sm:$0xff] }
 0x421   : > { %7175 = vmatpush3.msra.mxu1 %v10456_v27  ;;  %7178 = vmatprep.mubr.msk.f32.mxu1 %vm1943_vm0, %v7576_v47 }
 0x422   : > { %v4454_v34 = vmul.f32 1.442695, %v4446_v41  ;;  %7176 = vmatprep.subr.mxu1 %v10456_v27 }
 0x423   : > { %7177 = vmatpush3.msra.mxu1 %v10456_v27  ;;  %v4433_v55 = vpop.xlane.xlu0 %4432 }
 0x424   : > { %7591 = vpow2.f32 %v4454_v34  ;;  %7218 = vmatprep.subr.mxu1 %v10483_v39  ;;  %7179 = vmatmul.mubr.msk.f32.vlgmr.msra.gmra.mxu1 %vm1943_vm0, %v7578_v48  ;;  %v4449_v59 = vsub.f32 %v9402_v43, %v4433_v55 }
 0x425   : > { %7219 = vmatpush3.msra.mxu1 %v10483_v39  ;;  %7181 = vmatprep.mubr.msk.f32.mxu1 %vm1943_vm0, %v7580_v56  ;;  %v10493_v39 = vld [vmem:[#allocation29_spill] sm:$0xff] }
 0x426   : > { %7220 = vmatprep.subr.mxu1 %v10484_v12  ;;  %v4460_v14 = vmul.f32 1.442695, %v4449_v59 }
 0x427   : > { %7221 = vmatpush3.msra.mxu1 %v10484_v12  ;;  %v4430_v1 = vpop.xlane.xlu0 %4429 }
 0x428   : > { %7222 = vmatprep.subr.mxu1 %v10485_v26  ;;  %7182 = vmatmul.mubr.msk.f32.gmra.mxu1 %vm1943_vm0, %v7582_v54  ;;  %v4448_v31 = vsub.f32 %v9410_v6, %v4430_v1 }
 0x429   : > { %7223 = vmatpush3.msra.mxu1 %v10485_v26  ;;  %7184 = vmatprep.mubr.msk.f32.mxu1 %vm1943_vm0, %v7584_v61 }
 0x42a   : > { %7224 = vmatprep.subr.mxu1 %v10486_v30  ;;  %v4458_v63 = vmul.f32 1.442695, %v4448_v31  ;;  %v10495_v31 = vld [vmem:[#allocation40_spill] sm:$0xff] }
 0x42b   : > { %7225 = vmatpush3.msra.mxu1 %v10486_v30  ;;  %v4439_v2 = vpop.xlane.xlu0 %4438 }
 0x42c   : > { %7226 = vmatprep.subr.mxu1 %v8872_v38  ;;  %7185 = vmatmul.mubr.msk.f32.gmra.mxu1 %vm1943_vm0, %v7586_v22  ;;  %v4451_v43 = vsub.f32 %v9416_v44, %v4439_v2 }
 0x42d   : > { %7227 = vmatpush3.msra.mxu1 %v8872_v38  ;;  %7187 = vmatprep.mubr.msk.f32.mxu1 %vm1943_vm0, %v7588_v46 }
 0x42e   : > { %7228 = vmatprep.subr.mxu1 %v9360_v62  ;;  %v4427_v21 = vpop.xlane.xlu1 %4426 }
 0x42f   : > { %7229 = vmatpush3.msra.mxu1 %v9360_v62  ;;  %v4447_v4 = vsub.f32 %v9421_v17, %v4427_v21  ;;  %v4445_v20 = vpop.xlane.xlu0 %4444 }
 0x430   : > { %7230 = vmatprep.subr.mxu1 %v8859_v33  ;;  %7188 = vmatmul.mubr.msk.f32.gmra.mxu1 %vm1943_vm0, %v7590_v3  ;;  %v4453_v44 = vsub.f32 %v9428_v8, %v4445_v20 }
 0x431   : > { %v9678_v6 = vpop.eup %7591  ;;  %v4456_v38 = vmul.f32 1.442695, %v4447_v4  ;;  %7231 = vmatpush3.msra.mxu1 %v8859_v33  ;;  %v4464_v33 = vmul.f32 1.442695, %v4451_v43 }
 0x432   : > { %7232 = vmatprep.subr.mxu1 %v9541_v52  ;;  %7234 = vmatprep.mubr.msk.f32.mxu1 %vm1943_vm0, %v9678_v6  ;;  %v4436_v62 = vpop.xlane.xlu1 %4435 }
 0x433   : > { %7593 = vpow2.f32 %v4456_v38  ;;  %7233 = vmatpush3.msra.mxu1 %v9541_v52  ;;  %v4450_v17 = vsub.f32 %v9435_v19, %v4436_v62  ;;  %v4468_v52 = vmul.f32 1.442695, %v4453_v44  ;;  %v9692_v19 = vpop.f32.mrf.mxu1  ;;  %v4990_v8 = vpop.xlane.xlu0 %4989 }
 0x434   : > { %7595 = vpow2.f32 %v4458_v63  ;;  %7246 = vmatprep.subr.mxu1 %v10456_v27  ;;  %v5010_v56 = vsub.f32 %v9442_v13, %v4990_v8 }
 0x435   : > { %v4462_v15 = vmul.f32 1.442695, %v4450_v17  ;;  %7597 = vpow2.f32 %v4460_v14  ;;  %v9694_v10 = vpop.f32.mrf.mxu1 }
 0x436   : > { %v4442_v58 = vpop.xlane.xlu1 %4441  ;;  %10488 = vst [vmem:[#allocation32_spill] sm:$0xff] %v9694_v10  ;;  %v5019_v13 = vmul.f32 1.442695, %v5010_v56 }
 0x437   : > { %7599 = vpow2.f32 %v4462_v15  ;;  %v4452_v25 = vsub.f32 %v9449_v37, %v4442_v58  ;;  %v9700_v0 = vpop.f32.mrf.mxu1  ;;  %v4996_v57 = vpop.xlane.xlu0 %4995 }
 0x438   : > { %7601 = vpow2.f32 %v4464_v33  ;;  %10489 = vst [vmem:[#allocation36_spill] sm:$0xff] %v9700_v0  ;;  %v5012_v41 = vsub.f32 %v9456_v29, %v4996_v57 }
 0x439   : > { %v4466_v60 = vmul.f32 1.442695, %v4452_v25  ;;  %v9708_v5 = vpop.f32.mrf.mxu1 }
 0x43a   : > { %v4987_v45 = vpop.xlane.xlu1 %4986  ;;  %10490 = vst [vmem:[#allocation38_spill] sm:$0xff] %v9708_v5  ;;  %v5023_v29 = vmul.f32 1.442695, %v5012_v41 }
 0x43b   : > { %7603 = vpow2.f32 %v4466_v60  ;;  %v5009_v48 = vsub.f32 %v9463_v23, %v4987_v45  ;;  %v9718_v22 = vpop.f32.mrf.mxu1  ;;  %v5002_v3 = vpop.xlane.xlu0 %5001 }
 0x43c   : > { %7605 = vpow2.f32 %v4468_v52  ;;  %10491 = vst [vmem:[#allocation33_spill] sm:$0xff] %v9718_v22  ;;  %v5014_v1 = vsub.f32 %v9470_v9, %v5002_v3 }
 0x43d   : > { %v5017_v46 = vmul.f32 1.442695, %v5009_v48 }
 0x43e   : > { %v4993_v32 = vpop.xlane.xlu1 %4992  ;;  %v9724_v50 = vpop.f32.mrf.mxu1  ;;  %v5027_v9 = vmul.f32 1.442695, %v5014_v1 }
 0x43f   : > { %v5011_v23 = vsub.f32 %v9476_v42, %v4993_v32  ;;  %10492 = vst [vmem:[#allocation39_spill] sm:$0xff] %v9724_v50  ;;  %7607 = vpow2.f32 %v5017_v46 }
 0x440   : > { %v7594_v11 = vpop.eup %7593  ;;  %v9735_v12 = vpop.f32.mrf.mxu1  ;;  %7609 = vpow2.f32 %v5019_v13 }
 0x441   : > { %v7596_v53 = vpop.eup %7595  ;;  %7235 = vmatmul.mubr.msk.f32.vlgmr.msra.gmra.mxu1 %vm1943_vm0, %v7594_v11  ;;  %v5021_v42 = vmul.f32 1.442695, %v5011_v23  ;;  %10494 = vst [vmem:[#allocation34_spill] sm:$0xff] %v9735_v12 }
 0x442   : > { %7247 = vmatpush3.msra.mxu1 %v10456_v27  ;;  %7237 = vmatprep.mubr.msk.f32.mxu1 %vm1943_vm0, %v7596_v53  ;;  %v7598_v37 = vpop.eup %7597  ;;  %v4999_v54 = vpop.xlane.xlu1 %4998 }
 0x443   : > { %7248 = vmatprep.subr.mxu1 %v10456_v27  ;;  %v5013_v34 = vsub.f32 %v9490_v40, %v4999_v54  ;;  %7611 = vpow2.f32 %v5021_v42  ;;  %v5008_v40 = vpop.xlane.xlu0 %5007  ;;  %v9745_v59 = vpop.f32.mrf.mxu1 }
 0x444   : > { %v7600_v49 = vpop.eup %7599  ;;  %7249 = vmatpush3.msra.mxu1 %v10456_v27  ;;  %7613 = vpow2.f32 %v5023_v29  ;;  %v5016_v2 = vsub.f32 %v9482_v16, %v5008_v40 }
 0x445   : > { %7250 = vmatprep.subr.mxu1 %v10456_v27  ;;  %7238 = vmatmul.mubr.msk.f32.gmra.mxu1 %vm1943_vm0, %v7598_v37  ;;  %v7602_v47 = vpop.eup %7601  ;;  %v5025_v26 = vmul.f32 1.442695, %v5013_v34 }
 0x446   : > { %7251 = vmatpush3.msra.mxu1 %v10456_v27  ;;  %7240 = vmatprep.mubr.msk.f32.mxu1 %vm1943_vm0, %v7600_v49  ;;  %v5005_v55 = vpop.xlane.xlu1 %5004  ;;  %v5031_v21 = vmul.f32 1.442695, %v5016_v2 }
 0x447   : > { %7252 = vmatprep.subr.mxu1 %v10456_v27  ;;  %v5015_v30 = vsub.f32 %v9504_v18, %v5005_v55  ;;  %7615 = vpow2.f32 %v5025_v26  ;;  %v5044_v16 = vpop.permute.xlu0 %5043 }
 0x448   : > { %v7604_v35 = vpop.eup %7603  ;;  %7253 = vmatpush3.msra.mxu1 %v10456_v27  ;;  %7617 = vpow2.f32 %v5027_v9 }
 0x449   : > { %7254 = vmatprep.subr.mxu1 %v10456_v27  ;;  %7241 = vmatmul.mubr.msk.f32.gmra.mxu1 %vm1943_vm0, %v7602_v47  ;;  %v7606_v61 = vpop.eup %7605  ;;  %v5029_v18 = vmul.f32 1.442695, %v5015_v30 }
 0x44a   : > { %7255 = vmatpush3.msra.mxu1 %v10456_v27  ;;  %7243 = vmatprep.mubr.msk.f32.mxu1 %vm1943_vm0, %v7604_v35  ;;  %v5042_v63 = vpop.permute.xlu1 %5041 }
 0x44b   : > { %7256 = vmatprep.subr.mxu1 %v10456_v27  ;;  %7619 = vpow2.f32 %v5029_v18 }
 0x44c   : > { %7257 = vmatpush3.msra.mxu1 %v10456_v27  ;;  %v7608_v4 = vpop.eup %7607  ;;  %7621 = vpow2.f32 %v5031_v21 }
 0x44d   : > { %7258 = vmatprep.subr.mxu1 %v10456_v27  ;;  %7244 = vmatmul.mubr.msk.f32.gmra.mxu1 %vm1943_vm0, %v7606_v61 }
 0x44e   : > { %7259 = vmatpush3.msra.mxu1 %v10456_v27  ;;  %7262 = vmatprep.mubr.msk.f32.mxu1 %vm1943_vm0, %v9678_v6 }
 0x44f   : > { %7260 = vmatprep.subr.mxu1 %v10456_v27 }
 0x450   : > { %7261 = vmatpush3.msra.mxu1 %v10456_v27 }
 0x451   : > { %7302 = vmatprep.subr.mxu1 %v10493_v39  ;;  %7263 = vmatmul.mubr.msk.f32.vlgmr.msra.gmra.mxu1 %vm1943_vm0, %v7594_v11  ;;  %v10498_v11 = vmov 0.0  }
 0x452   : > { %7303 = vmatpush3.msra.mxu1 %v10493_v39  ;;  %7265 = vmatprep.mubr.msk.f32.mxu1 %vm1943_vm0, %v7596_v53 }
 0x453   : > { %7304 = vmatprep.subr.mxu1 %v9406_v24 }
 0x454   : > { %7305 = vmatpush3.msra.mxu1 %v9406_v24  ;;  %v9754_v24 = vpop.f32.mrf.mxu1 }
 0x455   : > { %7306 = vmatprep.subr.mxu1 %v10495_v31  ;;  %7266 = vmatmul.mubr.msk.f32.gmra.mxu1 %vm1943_vm0, %v7598_v37 }
 0x456   : > { %7307 = vmatpush3.msra.mxu1 %v10495_v31  ;;  %7268 = vmatprep.mubr.msk.f32.mxu1 %vm1943_vm0, %v7600_v49 }
 0x457   : > { %7308 = vmatprep.subr.mxu1 %v9561_v51 }
 0x458   : > { %7309 = vmatpush3.msra.mxu1 %v9561_v51  ;;  %v9761_v51 = vpop.f32.mrf.mxu1 }
 0x459   : > { %7310 = vmatprep.subr.mxu1 %v9637_v36  ;;  %7269 = vmatmul.mubr.msk.f32.gmra.mxu1 %vm1943_vm0, %v7602_v47 }
 0x45a   : > { %7311 = vmatpush3.msra.mxu1 %v9637_v36  ;;  %7271 = vmatprep.mubr.msk.f32.mxu1 %vm1943_vm0, %v7604_v35  ;;  %v7610_v36 = vpop.eup %7609 }
 0x45b   : > { %7312 = vmatprep.subr.mxu1 %v9663_v7  ;;  %v7612_v6 = vpop.eup %7611 }
 0x45c   : > { %7313 = vmatpush3.msra.mxu1 %v9663_v7  ;;  %v9766_v7 = vpop.f32.mrf.mxu1  ;;  %v7614_v38 = vpop.eup %7613 }
 0x45d   : > { %7314 = vmatprep.subr.mxu1 %v5044_v16  ;;  %7272 = vmatmul.mubr.msk.f32.gmra.mxu1 %vm1943_vm0, %v7606_v61  ;;  %v7616_v14 = vpop.eup %7615 }
 0x45e   : > { %7315 = vmatpush3.msra.mxu1 %v5044_v16  ;;  %7318 = vmatprep.mubr.msk.f32.mxu1 %vm1943_vm0, %v7608_v4  ;;  %v9774_v43 = vpop.f32.mrf.mxu1  ;;  %v7618_v62 = vpop.eup %7617 }
 0x45f   : > { %7316 = vmatprep.subr.mxu1 %v5042_v63  ;;  %v7620_v17 = vpop.eup %7619 }
 0x460   : > { %7317 = vmatpush3.msra.mxu1 %v5042_v63  ;;  %v9782_v20 = vpop.f32.mrf.mxu1  ;;  %v7622_v15 = vpop.eup %7621 }
 0x461   : > { %7319 = vmatmul.mubr.msk.f32.vlgmr.msra.gmra.mxu1 %vm1943_vm0, %v7610_v36  ;;  %7330 = vmatprep.subr.mxu1 %v10456_v27 }
 0x462   : > { %7321 = vmatprep.mubr.msk.f32.mxu1 %vm1943_vm0, %v7612_v6  ;;  %7331 = vmatpush3.msra.mxu1 %v10456_v27  ;;  %v9790_v33 = vpop.f32.mrf.mxu1 }
 0x463   : > { %7332 = vmatprep.subr.mxu1 %v10456_v27 }
 0x464   : > { %7333 = vmatpush3.msra.mxu1 %v10456_v27  ;;  %v9797_v58 = vpop.f32.mrf.mxu1 }
 0x465   : > { %7322 = vmatmul.mubr.msk.f32.gmra.mxu1 %vm1943_vm0, %v7614_v38  ;;  %7334 = vmatprep.subr.mxu1 %v10456_v27 }
 0x466   : > { %7324 = vmatprep.mubr.msk.f32.mxu1 %vm1943_vm0, %v7616_v14  ;;  %7335 = vmatpush3.msra.mxu1 %v10456_v27 }
 0x467   : > { %7336 = vmatprep.subr.mxu1 %v10456_v27 }
 0x468   : > { %7337 = vmatpush3.msra.mxu1 %v10456_v27 }
 0x469   : > { %7325 = vmatmul.mubr.msk.f32.gmra.mxu1 %vm1943_vm0, %v7618_v62  ;;  %7338 = vmatprep.subr.mxu1 %v10456_v27 }
 0x46a   : > { %7327 = vmatprep.mubr.msk.f32.mxu1 %vm1943_vm0, %v7620_v17  ;;  %7339 = vmatpush3.msra.mxu1 %v10456_v27 }
 0x46b   : > { %7340 = vmatprep.subr.mxu1 %v10456_v27 }
 0x46c   : > { %7341 = vmatpush3.msra.mxu1 %v10456_v27 }
 0x46d   : > { %7328 = vmatmul.mubr.msk.f32.gmra.mxu1 %vm1943_vm0, %v7622_v15  ;;  %7342 = vmatprep.subr.mxu1 %v10456_v27 }
 0x46e   : > { %7343 = vmatpush3.msra.mxu1 %v10456_v27  ;;  %7346 = vmatprep.mubr.msk.f32.mxu1 %vm1943_vm0, %v7608_v4 }
 0x46f   : > { %7344 = vmatprep.subr.mxu1 %v10456_v27 }
 0x470   : > { %7345 = vmatpush3.msra.mxu1 %v10456_v27 }
 0x471   : > { %7347 = vmatmul.mubr.msk.f32.vlgmr.msra.gmra.mxu1 %vm1943_vm0, %v7610_v36 }
 0x472   : > { %7349 = vmatprep.mubr.msk.f32.mxu1 %vm1943_vm0, %v7612_v6 }
 0x474   : > { %v9800_v44 = vpop.f32.mrf.mxu1 }
 0x475   : > { %7350 = vmatmul.mubr.msk.f32.gmra.mxu1 %vm1943_vm0, %v7614_v38 }
 0x476   : > { %v9803_v25 = vpop.f32.mrf.mxu1  ;;  %7352 = vmatprep.mubr.msk.f32.mxu1 %vm1943_vm0, %v7616_v14 }
 0x478   : > { %v9806_v60 = vpop.f32.mrf.mxu1 }
 0x479   : > { %7353 = vmatmul.mubr.msk.f32.gmra.mxu1 %vm1943_vm0, %v7618_v62 }
 0x47a   : > { %v9809_v52 = vpop.f32.mrf.mxu1  ;;  %7355 = vmatprep.mubr.msk.f32.mxu1 %vm1943_vm0, %v7620_v17 }
 0x47c   : > { %v9812_v27 = vpop.f32.mrf.mxu1 }
 0x47d   : > { %10496 = vst [vmem:[#allocation28_spill] sm:$0xff] %v9812_v27  ;;  %7356 = vmatmul.mubr.msk.f32.gmra.mxu1 %vm1943_vm0, %v7622_v15 }
 0x47e   : > { %v9815_v45 = vpop.f32.mrf.mxu1  ;;  %5757 = vmatprep.mubr.f32.mxu1 %v10498_v11 }
 0x47f   : > { %10497 = vst [vmem:[#allocation35_spill] sm:$0xff] %v9815_v45 }
 0x480   : > { %v9818_v53 = vpop.f32.mrf.mxu1 }
 0x481   : > { %10499 = vst [vmem:[#allocation30_spill] sm:$0xff] %v9818_v53 }
 0x482   : > { %v9820_v8 = vpop.f32.mrf.mxu1 }
 0x483   : > { %10500 = vst [vmem:[#allocation26_spill] sm:$0xff] %v9820_v8 }
 0x484   : > { %v7012_v37 = vpop.f32.mrf.mxu1 }
 0x485   : > { %7623 = vrcp.f32 %v7012_v37 }
 0x486   : > { %v2943_v49 = vpop.f32.mrf.mxu1 }
 0x487   : > { %7625 = vrcp.f32 %v2943_v49 }
 0x488   : > { %v7015_v32 = vpop.f32.mrf.mxu1 }
 0x489   : > { %7627 = vrcp.f32 %v7015_v32 }
 0x48a   : > { %v2953_v47 = vpop.f32.mrf.mxu1 }
 0x48b   : > { %7629 = vrcp.f32 %v2953_v47 }
 0x48c   : > { %v9822_v54 = vpop.f32.mrf.mxu1 }
 0x48e   : > { %v9824_v61 = vpop.f32.mrf.mxu1 }
 0x490   : > { %v9826_v46 = vpop.f32.mrf.mxu1 }
 0x492   : > { %v7624_v35 = vpop.eup %7623  ;;  %v9828_v23 = vpop.f32.mrf.mxu1 }
 0x493   : > { %2997 = vperm.xlu0 %7525, %v7624_v35  }
 0x494   : > { %v7626_v57 = vpop.eup %7625 }
 0x496   : > { %v7628_v48 = vpop.eup %7627 }
 0x497   : > { %2992 = vperm.xlu0 %7525, %v7626_v57  }
 0x498   : > { %v7630_v56 = vpop.eup %7629 }
 0x49b   : > { %3007 = vperm.xlu0 %7525, %v7628_v48  }
 0x49f   : > { %3002 = vperm.xlu0 %7525, %v7630_v56  }
 0x4b4   : > { %v9830_v3 = vpop.f32.mrf.mxu1 }
 0x4b6   : > { %v9832_v13 = vpop.f32.mrf.mxu1 }
 0x4b7   : > { %10501 = vst [vmem:[#allocation37_spill] sm:$0xff] %v9832_v13 }
 0x4b8   : > { %v9834_v41 = vpop.f32.mrf.mxu1 }
 0x4b9   : > { %10502 = vst [vmem:[#allocation24_spill] sm:$0xff] %v9834_v41 }
 0x4ba   : > { %v9836_v42 = vpop.f32.mrf.mxu1 }
 0x4bb   : > { %10503 = vst [vmem:[#allocation27_spill] sm:$0xff] %v9836_v42 }
 0x4bc   : > { %v9838_v34 = vpop.f32.mrf.mxu1 }
 0x4bd   : > { %10504 = vst [vmem:[#allocation23_spill] sm:$0xff] %v9838_v34 }
 0x4be   : > { %v9840_v55 = vpop.f32.mrf.mxu1 }
 0x4bf   : > { %10505 = vst [vmem:[#allocation25_spill] sm:$0xff] %v9840_v55 }
 0x4c0   : > { %v9842_v39 = vpop.f32.mrf.mxu1 }
 0x4c1   : > { %10506 = vst [vmem:[#allocation22_spill] sm:$0xff] %v9842_v39 }
 0x4c2   : > { %v9844_v29 = vpop.f32.mrf.mxu1 }
 0x4c3   : > { %10507 = vst [vmem:[#allocation19_spill] sm:$0xff] %v9844_v29 }
 0x4c4   : > { %v9846_v1 = vpop.f32.mrf.mxu1 }
 0x4c6   : > { %v9848_v40 = vpop.f32.mrf.mxu1 }
 0x4c8   : > { %v9850_v26 = vpop.f32.mrf.mxu1 }
 0x4ca   : > { %v9852_v30 = vpop.f32.mrf.mxu1 }
 0x4cc   : > { %v9854_v31 = vpop.f32.mrf.mxu1 }
 0x4ce   : > { %v9856_v9 = vpop.f32.mrf.mxu1 }
 0x4d0   : > { %v9858_v2 = vpop.f32.mrf.mxu1 }
 0x4d2   : > { %v9860_v18 = vpop.f32.mrf.mxu1 }
 0x4d4   : > { %v9862_v21 = vpop.f32.mrf.mxu1 }
 0x4d6   : > { %v9864_v16 = vpop.f32.mrf.mxu1 }
 0x4d8   : > { %v9866_v4 = vpop.f32.mrf.mxu1 }
 0x4da   : > { %v9868_v63 = vpop.f32.mrf.mxu1 }
 0x4dc   : > { %v9870_v36 = vpop.f32.mrf.mxu1 }
 0x4dd   : > { %10508 = vst [vmem:[#allocation21_spill] sm:$0xff] %v9870_v36 }
 0x4de   : > { %v9872_v6 = vpop.f32.mrf.mxu1 }
 0x4df   : > { %10509 = vst [vmem:[#allocation18_spill] sm:$0xff] %v9872_v6  ;;  %v5464_v6 = vld [vmem:[#allocation9 + $0x168] sm:$0xff] }
 0x4e0   : > { %v9874_v38 = vpop.f32.mrf.mxu1 }
 0x4e1   : > { %10510 = vst [vmem:[#allocation31_spill] sm:$0xff] %v9874_v38 }
 0x4e2   : > { %v9876_v14 = vpop.f32.mrf.mxu1 }
 0x4e3   : > { %10511 = vst [vmem:[#allocation29_spill] sm:$0xff] %v9876_v14 }
 0x4e4   : > { %v7180_v62 = vpop.f32.mrf.mxu1 }
 0x4e5   : > { %7631 = vrcp.f32 %v7180_v62 }
 0x4e6   : > { %v4102_v17 = vpop.f32.mrf.mxu1 }
 0x4e7   : > { %7633 = vrcp.f32 %v4102_v17 }
 0x4e8   : > { %v7183_v15 = vpop.f32.mrf.mxu1 }
 0x4e9   : > { %7635 = vrcp.f32 %v7183_v15 }
 0x4ea   : > { %v4112_v37 = vpop.f32.mrf.mxu1 }
 0x4eb   : > { %7637 = vrcp.f32 %v4112_v37 }
 0x4ec   : > { %v7186_v49 = vpop.f32.mrf.mxu1 }
 0x4ee   : > { %v4122_v47 = vpop.f32.mrf.mxu1 }
 0x4ef   : > { %7639 = vrcp.f32 %v4122_v47 }
 0x4f0   : > { %v9878_v48 = vpop.f32.mrf.mxu1 }
 0x4f2   : > { %v7632_v32 = vpop.eup %7631  ;;  %v4132_v50 = vpop.f32.mrf.mxu1 }
 0x4f3   : > { %4156 = vperm.xlu1 %7526, %v7632_v32  }
 0x4f4   : > { %v7634_v35 = vpop.eup %7633 }
 0x4f6   : > { %v7636_v57 = vpop.eup %7635 }
 0x4f7   : > { %4151 = vperm.xlu1 %7526, %v7634_v35  }
 0x4f8   : > { %v7638_v56 = vpop.eup %7637 }
 0x4fb   : > { %4166 = vperm.xlu1 %7526, %v7636_v57  }
 0x4fc   : > { %v7640_v17 = vpop.eup %7639 }
 0x4ff   : > { %4161 = vperm.xlu1 %7526, %v7638_v56  }
 0x501   : > { %v9880_v62 = vpop.f32.mrf.mxu1 }
 0x503   : > { %4171 = vperm.xlu1 %7526, %v7640_v17   ;;  %v9882_v15 = vpop.f32.mrf.mxu1 }
 0x505   : > { %v9884_v37 = vpop.f32.mrf.mxu1 }
 0x507   : > { %v9886_v39 = vpop.f32.mrf.mxu1 }
 0x509   : > { %v9888_v32 = vpop.f32.mrf.mxu1 }
 0x50a   : > { %10512 = vst [vmem:[#allocation40_spill] sm:$0xff] %v9888_v32 }
 0x50b   : > { %v9890_v47 = vpop.f32.mrf.mxu1 }
 0x50d   : > { %v9892_v35 = vpop.f32.mrf.mxu1 }
 0x50e   : > { %10513 = vst [vmem:[#allocation41_spill] sm:$0xff] %v9892_v35 }
 0x50f   : > { %v9894_v57 = vpop.f32.mrf.mxu1 }
 0x510   : > { %10514 = vst [vmem:[#allocation42_spill] sm:$0xff] %v9894_v57 }
 0x511   : > { %v9896_v12 = vpop.f32.mrf.mxu1 }
 0x513   : > { %v4665_v56 = vpop.f32.mrf.mxu1 }
 0x515   : > { %v9898_v29 = vpop.f32.mrf.mxu1 }
 0x517   : > { %v9900_v17 = vpop.f32.mrf.mxu1 }
 0x519   : > { %v9902_v5 = vpop.f32.mrf.mxu1 }
 0x51b   : > { %v9904_v34 = vpop.f32.mrf.mxu1 }
 0x51d   : > { %v9906_v22 = vpop.f32.mrf.mxu1 }
 0x51f   : > { %v9908_v11 = vpop.f32.mrf.mxu1 }
 0x521   : > { %v9910_v55 = vpop.f32.mrf.mxu1 }
 0x523   : > { %v9912_v10 = vpop.f32.mrf.mxu1 }
 0x525   : > { %v9914_v41 = vpop.f32.mrf.mxu1 }
 0x527   : > { %v9916_v0 = vpop.f32.mrf.mxu1 }
 0x529   : > { %v9918_v42 = vpop.f32.mrf.mxu1 }
 0x52b   : > { %v9920_v53 = vpop.f32.mrf.mxu1 }
 0x52d   : > { %v9922_v28 = vpop.f32.mrf.mxu1 }
 0x52f   : > { %v9924_v8 = vpop.f32.mrf.mxu1 }
 0x531   : > { %v7348_v13 = vpop.f32.mrf.mxu1 }
 0x532   : > { %7641 = vrcp.f32 %v7348_v13  ;;  %v5465_v13 = vld [vmem:[#allocation9 + $0x170] sm:$0xff] }
 0x533   : > { %v5260_v38 = vpop.f32.mrf.mxu1  ;;  %5580 = vmatprep.subr.mxu0 %v5465_v13  ;;  %v5455_v13 = vld [vmem:[#allocation9 + $0x120] sm:$0xff] }
 0x534   : > { %7643 = vrcp.f32 %v5260_v38  ;;  %v5462_v38 = vld [vmem:[#allocation9 + $0x158] sm:$0xff]  ;;  %5581 = vmatpush1.msra.mxu0 %v5464_v6  ;;  %v5453_v6 = vld [vmem:[#allocation9 + $0x110] sm:$0xff] }
 0x535   : > { %v7351_v27 = vpop.f32.mrf.mxu1  ;;  %7645 = vrcp.f32 %v9824_v61  ;;  %5582 = vmatprep.subr.mxu0 %v5462_v38  ;;  %v5452_v38 = vld [vmem:[#allocation9 + $0x108] sm:$0xff] }
 0x537   : > { %v5270_v35 = vpop.f32.mrf.mxu1 }
 0x538   : > { %7647 = vrcp.f32 %v5270_v35  ;;  %v5461_v35 = vld [vmem:[#allocation9 + $0x150] sm:$0xff] }
 0x539   : > { %v7354_v14 = vpop.f32.mrf.mxu1  ;;  %7649 = vrcp.f32 %v7186_v49  ;;  %5583 = vmatpush1.msra.mxu0 %v5461_v35  ;;  %v5449_v35 = vld [vmem:[#allocation9 + $0xf0] sm:$0xff] }
 0x53a   : > { %7651 = vrcp.f32 %v7351_v27 }
 0x53b   : > { %v5280_v36 = vpop.f32.mrf.mxu1  ;;  %7653 = vrcp.f32 %v9822_v54  ;;  %v5459_v54 = vld [vmem:[#allocation9 + $0x140] sm:$0xff] }
 0x53c   : > { %7655 = vrcp.f32 %v5280_v36  ;;  %v5458_v36 = vld [vmem:[#allocation9 + $0x138] sm:$0xff]  ;;  %5584 = vmatprep.subr.mxu0 %v5459_v54 }
 0x53d   : > { %v7357_v32 = vpop.f32.mrf.mxu1  ;;  %7657 = vrcp.f32 %v4132_v50  ;;  %5585 = vmatpush1.msra.mxu0 %v5458_v36  ;;  %v5446_v54 = vld [vmem:[#allocation9 + $0xd8] sm:$0xff] }
 0x53e   : > { %7659 = vrcp.f32 %v7354_v14 }
 0x53f   : > { %v7642_v57 = vpop.eup %7641  ;;  %v5290_v27 = vpop.f32.mrf.mxu1  ;;  %7661 = vrcp.f32 %v9828_v23  ;;  %v5450_v23 = vld [vmem:[#allocation9 + $0xf8] sm:$0xff] }
 0x540   : > { %5314 = vperm.xlu1 %7526, %v7642_v57   ;;  %7663 = vrcp.f32 %v5290_v27  ;;  %v5456_v57 = vld [vmem:[#allocation9 + $0x128] sm:$0xff]  ;;  %v5447_v27 = vld [vmem:[#allocation9 + $0xe0] sm:$0xff] }
 0x541   : > { %v7644_v45 = vpop.eup %7643  ;;  %7665 = vrcp.f32 %v4665_v56  ;;  %5586 = vmatprep.subr.mxu0 %v5456_v57  ;;  %v5441_v57 = vld [vmem:[#allocation9 + $0xb0] sm:$0xff] }
 0x542   : > { %5309 = vperm.xlu0 %7525, %v7644_v45   ;;  %v7646_v61 = vpop.eup %7645  ;;  %7667 = vrcp.f32 %v7357_v32  ;;  %5587 = vmatpush1.msra.mxu0 %v5455_v13  ;;  %v5444_v32 = vld [vmem:[#allocation9 + $0xc8] sm:$0xff] }
 0x543   : > { %5588 = vmatprep.subr.mxu0 %v5453_v6  ;;  %7669 = vrcp.f32 %v9826_v46  ;;  %v5443_v46 = vld [vmem:[#allocation9 + $0xc0] sm:$0xff]  ;;  %v5437_v6 = vld [vmem:[#allocation9 + $0x90] sm:$0xff] }
 0x544   : > { %5589 = vmatpush1.msra.mxu0 %v5452_v38  ;;  %7671 = vrcp.f32 %v9878_v48  ;;  %v5440_v48 = vld [vmem:[#allocation9 + $0xa8] sm:$0xff] }
 0x545   : > { %v7648_v49 = vpop.eup %7647  ;;  %5590 = vmatprep.subr.mxu0 %v5450_v23  ;;  %7673 = vrcp.f32 %v9896_v12  ;;  %v5438_v12 = vld [vmem:[#allocation9 + $0x98] sm:$0xff] }
 0x546   : > { %3012 = vperm.xlu0 %7525, %v7646_v61   ;;  %5319 = vperm.xlu1 %7526, %v7648_v49   ;;  %v7650_v45 = vpop.eup %7649  ;;  %7675 = vrcp.f32 %v9900_v17  ;;  %v5435_v17 = vld [vmem:[#allocation9 + $0x80] sm:$0xff] }
 0x547   : > { %v7652_v50 = vpop.eup %7651  ;;  %5591 = vmatpush1.msra.mxu0 %v5449_v35  ;;  %7677 = vrcp.f32 %v9754_v24  ;;  %v5434_v24 = vld [vmem:[#allocation9 + $0x78] sm:$0xff]  ;;  %v5429_v35 = vld [vmem:[#allocation9 + $0x50] sm:$0xff] }
 0x548   : > { %v7654_v14 = vpop.eup %7653  ;;  %5592 = vmatprep.subr.mxu0 %v5447_v27  ;;  %7679 = vrcp.f32 %v9898_v29  ;;  %v5431_v29 = vld [vmem:[#allocation9 + $0x60] sm:$0xff]  ;;  %v2998_v27 = vpop.permute.xlu0 %2997 }
 0x549   : > { %v7656_v61 = vpop.eup %7655  ;;  %5593 = vmatpush1.msra.mxu0 %v5446_v54  ;;  %7681 = vrcp.f32 %v9846_v1  ;;  %v5428_v1 = vld [vmem:[#allocation9 + $0x48] sm:$0xff]  ;;  %v5425_v54 = vld [vmem:[#allocation9 + $0x30] sm:$0xff] }
 0x54a   : > { %5324 = vperm.xlu0 %7525, %v7652_v50   ;;  %4176 = vperm.xlu1 %7526, %v7650_v45   ;;  %v7658_v49 = vpop.eup %7657  ;;  %7683 = vrcp.f32 %v9904_v34  ;;  %v5426_v34 = vld [vmem:[#allocation9 + $0x38] sm:$0xff] }
 0x54b   : > { %v7660_v56 = vpop.eup %7659  ;;  %5594 = vmatprep.subr.mxu0 %v5444_v32  ;;  %7685 = vrcp.f32 %v9902_v5  ;;  %v5422_v5 = vld [vmem:[#allocation9 + $0x18] sm:$0xff] }
 0x54c   : > { %v7662_v36 = vpop.eup %7661  ;;  %5595 = vmatpush1.msra.mxu0 %v5443_v46  ;;  %7687 = vrcp.f32 %v9908_v11  ;;  %v5513_v11 = vld [vmem:[#allocation9 + $0x2f0] sm:$0xff] }
 0x54d   : > { %v7664_v45 = vpop.eup %7663  ;;  %5596 = vmatprep.subr.mxu0 %v5441_v57  ;;  %7689 = vrcp.f32 %v9906_v22  ;;  %v5509_v22 = vld [vmem:[#allocation9 + $0x2d0] sm:$0xff] }
 0x54e   : > { %3017 = vperm.xlu0 %7525, %v7654_v14   ;;  %5329 = vperm.xlu1 %7526, %v7656_v61   ;;  %v7666_v50 = vpop.eup %7665  ;;  %v5432_v61 = vld [vmem:[#allocation9 + $0x68] sm:$0xff]  ;;  %7691 = vrcp.f32 %v9848_v40 }
 0x54f   : > { %v7668_v13 = vpop.eup %7667  ;;  %5597 = vmatpush1.msra.mxu0 %v5440_v48  ;;  %v2993_v48 = vpop.permute.xlu0 %2992  ;;  %7693 = vrcp.f32 %v9745_v59 }
 0x550   : > { %5598 = vmatprep.subr.mxu0 %v5438_v12  ;;  %v7670_v14 = vpop.eup %7669  ;;  %v3030_v12 = vmul.f32 %v2993_v48, %v9803_v25  ;;  %v5506_v25 = vld [vmem:[#allocation9 + $0x2b8] sm:$0xff]  ;;  %7695 = vrcp.f32 %v9852_v30  ;;  %v5480_v48 = vld [vmem:[#allocation9 + $0x1e8] sm:$0xff] }
 0x551   : > { %5599 = vmatpush1.msra.mxu0 %v5437_v6  ;;  %v7672_v38 = vpop.eup %7671  ;;  %7697 = vrcp.f32 %v9766_v7  ;;  %v5491_v7 = vld [vmem:[#allocation9 + $0x240] sm:$0xff] }
 0x552   : > { %5334 = vperm.xlu0 %7525, %v7660_v56   ;;  %4181 = vperm.xlu1 %7526, %v7658_v49   ;;  %v7674_v23 = vpop.eup %7673  ;;  %7699 = vrcp.f32 %v9850_v26  ;;  %v5483_v26 = vld [vmem:[#allocation9 + $0x200] sm:$0xff] }
 0x553   : > { %5600 = vmatprep.subr.mxu0 %v5435_v17  ;;  %v7676_v49 = vpop.eup %7675  ;;  %v5510_v17 = vld [vmem:[#allocation9 + $0x2d8] sm:$0xff]  ;;  %7701 = vrcp.f32 %v9761_v51  ;;  %v5477_v51 = vld [vmem:[#allocation9 + $0x1d0] sm:$0xff] }
 0x554   : > { %5601 = vmatpush1.msra.mxu0 %v5434_v24  ;;  %v7678_v56 = vpop.eup %7677  ;;  %v3031_v24 = vmul.f32 %v9800_v44, %v2998_v27  ;;  %v5501_v44 = vld [vmem:[#allocation9 + $0x290] sm:$0xff]  ;;  %v5495_v27 = vld [vmem:[#allocation9 + $0x260] sm:$0xff]  ;;  %7703 = vrcp.f32 %v9856_v9  ;;  %v5470_v9 = vld [vmem:[#allocation9 + $0x198] sm:$0xff] }
 0x555   : > { %5602 = vmatprep.subr.mxu0 %v5432_v61  ;;  %v7680_v32 = vpop.eup %7679  ;;  %v5504_v61 = vld [vmem:[#allocation9 + $0x2a8] sm:$0xff]  ;;  %7705 = vrcp.f32 %v9782_v20 }
 0x556   : > { %3022 = vperm.xlu0 %7525, %v7662_v36   ;;  %5339 = vperm.xlu1 %7526, %v7664_v45   ;;  %v5423_v36 = vld [vmem:[#allocation9 + $0x20] sm:$0xff]  ;;  %v7682_v46 = vpop.eup %7681  ;;  %v5420_v45 = vld [vmem:[#allocation9 + $0x8] sm:$0xff]  ;;  %7707 = vrcp.f32 %v9854_v31 }
 0x557   : > { %5603 = vmatpush1.msra.mxu0 %v5431_v29  ;;  %v7684_v57 = vpop.eup %7683  ;;  %7709 = vrcp.f32 %v9774_v43 }
 0x558   : > { %5604 = vmatprep.subr.mxu0 %v5429_v35  ;;  %v7686_v6 = vpop.eup %7685  ;;  %7711 = vrcp.f32 %v9860_v18 }
 0x559   : > { %5605 = vmatpush1.msra.mxu0 %v5428_v1  ;;  %v7688_v40 = vpop.eup %7687  ;;  %7713 = vrcp.f32 %v9797_v58 }
 0x55a   : > { %5344 = vperm.xlu0 %7525, %v7668_v13   ;;  %4714 = vperm.xlu1 %7526, %v7666_v50   ;;  %v5419_v50 = vld [vmem:[#allocation9] sm:$0xff]  ;;  %v5512_v13 = vld [vmem:[#allocation9 + $0x2e8] sm:$0xff]  ;;  %v7690_v35 = vpop.eup %7689  ;;  %7715 = vrcp.f32 %v9858_v2 }
 0x55b   : > { %5606 = vmatprep.subr.mxu0 %v5426_v34  ;;  %v5498_v34 = vld [vmem:[#allocation9 + $0x278] sm:$0xff]  ;;  %v7692_v30 = vpop.eup %7691  ;;  %7717 = vrcp.f32 %v9790_v33 }
 0x55c   : > { %5607 = vmatpush1.msra.mxu0 %v5425_v54  ;;  %v5492_v54 = vld [vmem:[#allocation9 + $0x248] sm:$0xff] }
 0x55d   : > { %5608 = vmatprep.subr.mxu0 %v5423_v36  ;;  %v5488_v36 = vld [vmem:[#allocation9 + $0x228] sm:$0xff] }
 0x55e   : > { %4186 = vperm.xlu0 %7525, %v7672_v38   ;;  %3027 = vperm.xlu1 %7526, %v7670_v14   ;;  %v5507_v38 = vld [vmem:[#allocation9 + $0x2c0] sm:$0xff] }
 0x55f   : > { %5609 = vmatpush1.msra.mxu0 %v5422_v5  ;;  %v5486_v5 = vld [vmem:[#allocation9 + $0x218] sm:$0xff] }
 0x560   : > { %5610 = vmatprep.subr.mxu0 %v5420_v45  ;;  %v5485_v45 = vld [vmem:[#allocation9 + $0x210] sm:$0xff] }
 0x561   : > { %5611 = vmatpush1.msra.mxu0 %v5419_v50 }
 0x562   : > { %4719 = vperm.xlu0 %7525, %v7674_v23   ;;  %4724 = vperm.xlu1 %7526, %v7676_v49   ;;  %v5503_v23 = vld [vmem:[#allocation9 + $0x2a0] sm:$0xff]  ;;  %v5500_v49 = vld [vmem:[#allocation9 + $0x288] sm:$0xff] }
 0x563   : > { %5612 = vmatprep.subr.mxu0 %v5513_v11  ;;  %v5479_v11 = vld [vmem:[#allocation9 + $0x1e0] sm:$0xff] }
 0x564   : > { %5613 = vmatpush2.msra.mxu0 %v5512_v13  ;;  %v5474_v13 = vld [vmem:[#allocation9 + $0x1b8] sm:$0xff] }
 0x565   : > { %5614 = vmatprep.subr.mxu0 %v5510_v17  ;;  %v5473_v17 = vld [vmem:[#allocation9 + $0x1b0] sm:$0xff] }
 0x566   : > { %2397 = vperm.xlu0 %7525, %v7678_v56   ;;  %4729 = vperm.xlu1 %7526, %v7680_v32   ;;  %v5494_v56 = vld [vmem:[#allocation9 + $0x258] sm:$0xff]  ;;  %v7694_v32 = vpop.eup %7693 }
 0x567   : > { %5615 = vmatpush2.msra.mxu0 %v5509_v22  ;;  %v5471_v22 = vld [vmem:[#allocation9 + $0x1a0] sm:$0xff] }
 0x568   : > { %5616 = vmatprep.subr.mxu0 %v5507_v38  ;;  %v5467_v38 = vld [vmem:[#allocation9 + $0x180] sm:$0xff] }
 0x569   : > { %5617 = vmatpush2.msra.mxu0 %v5506_v25  ;;  %v5560_v25 = vld [vmem:[#allocation9 + $0x468] sm:$0xff] }
 0x56a   : > { %3561 = vperm.xlu0 %7525, %v7682_v46   ;;  %4734 = vperm.xlu1 %7526, %v7684_v57   ;;  %v7696_v46 = vpop.eup %7695  ;;  %v5482_v57 = vld [vmem:[#allocation9 + $0x1f8] sm:$0xff] }
 0x56b   : > { %5618 = vmatprep.subr.mxu0 %v5504_v61  ;;  %v7698_v50 = vpop.eup %7697  ;;  %v5558_v61 = vld [vmem:[#allocation9 + $0x458] sm:$0xff] }
 0x56c   : > { %5619 = vmatpush2.msra.mxu0 %v5503_v23  ;;  %v5557_v23 = vld [vmem:[#allocation9 + $0x450] sm:$0xff] }
 0x56d   : > { %5620 = vmatprep.subr.mxu0 %v5501_v44  ;;  %v5552_v44 = vld [vmem:[#allocation9 + $0x428] sm:$0xff] }
 0x56e   : > { %3046 = vrot.lane.b32.xlu0 %v3030_v12, %s7932_s21  ;;  %4739 = vperm.xlu1 %7526, %v7686_v6   ;;  %v4157_v14 = vpop.permute.xlu1 %4156  ;;  %v5476_v12 = vld [vmem:[#allocation9 + $0x1c8] sm:$0xff]  ;;  %v7700_v6 = vpop.eup %7699 }
 0x56f   : > { %v4190_v29 = vmul.f32 %v9862_v21, %v4157_v14  ;;  %5621 = vmatpush2.msra.mxu0 %v5500_v49  ;;  %v5497_v21 = vld [vmem:[#allocation9 + $0x270] sm:$0xff]  ;;  %v5468_v14 = vld [vmem:[#allocation9 + $0x188] sm:$0xff]  ;;  %v5551_v49 = vld [vmem:[#allocation9 + $0x420] sm:$0xff] }
 0x570   : > { %5622 = vmatprep.subr.mxu0 %v5498_v34  ;;  %v5548_v34 = vld [vmem:[#allocation9 + $0x408] sm:$0xff] }
 0x571   : > { %5623 = vmatpush2.msra.mxu0 %v5497_v21  ;;  %v5545_v21 = vld [vmem:[#allocation9 + $0x3f0] sm:$0xff] }
 0x572   : > { %3048 = vrot.lane.b32.xlu0 %v3031_v24, %s7932_s21  ;;  %4744 = vperm.xlu1 %7526, %v7688_v40   ;;  %v4152_v59 = vpop.permute.xlu1 %4151  ;;  %v7702_v24 = vpop.eup %7701  ;;  %v5561_v40 = vld [vmem:[#allocation9 + $0x470] sm:$0xff] }
 0x573   : > { %v4189_v1 = vmul.f32 %v4152_v59, %v9864_v16  ;;  %5624 = vmatprep.subr.mxu0 %v5495_v27  ;;  %v5489_v16 = vld [vmem:[#allocation9 + $0x230] sm:$0xff]  ;;  %5693 = vmatprep.subr.mxu1 %v5561_v40  ;;  %v5554_v59 = vld [vmem:[#allocation9 + $0x438] sm:$0xff]  ;;  %v5543_v27 = vld [vmem:[#allocation9 + $0x3e0] sm:$0xff] }
 0x574   : > { %5625 = vmatpush2.msra.mxu0 %v5494_v56  ;;  %5694 = vmatpush1.msra.mxu1 %v5560_v25  ;;  %v5542_v56 = vld [vmem:[#allocation9 + $0x3d8] sm:$0xff]  ;;  %v5515_v40 = vld [vmem:[#allocation9 + $0x300] sm:$0xff] }
 0x575   : > { %5626 = vmatprep.subr.mxu0 %v5492_v54  ;;  %5695 = vmatprep.subr.mxu1 %v5558_v61  ;;  %v5540_v54 = vld [vmem:[#allocation9 + $0x3c8] sm:$0xff] }
 0x576   : > { %4749 = vperm.xlu1 %7526, %v7690_v35   ;;  %4207 = vrot.lane.b32.xlu0 %v4190_v29, %s7932_s21  ;;  %v7704_v29 = vpop.eup %7703  ;;  %v5555_v35 = vld [vmem:[#allocation9 + $0x440] sm:$0xff] }
 0x577   : > { %5627 = vmatpush2.msra.mxu0 %v5491_v7  ;;  %5696 = vmatpush1.msra.mxu1 %v5557_v23  ;;  %v5537_v7 = vld [vmem:[#allocation9 + $0x3b0] sm:$0xff] }
 0x578   : > { %5628 = vmatprep.subr.mxu0 %v5489_v16  ;;  %5697 = vmatprep.subr.mxu1 %v5555_v35  ;;  %v5536_v16 = vld [vmem:[#allocation9 + $0x3a8] sm:$0xff] }
 0x579   : > { %5629 = vmatpush2.msra.mxu0 %v5488_v36  ;;  %5698 = vmatpush1.msra.mxu1 %v5554_v59  ;;  %v5534_v36 = vld [vmem:[#allocation9 + $0x398] sm:$0xff] }
 0x57a   : > { %3556 = vperm.xlu1 %7526, %v7692_v30   ;;  %4205 = vrot.lane.b32.xlu0 %v4189_v1, %s7932_s21  ;;  %v5549_v1 = vld [vmem:[#allocation9 + $0x410] sm:$0xff]  ;;  %v5546_v30 = vld [vmem:[#allocation9 + $0x3f8] sm:$0xff] }
 0x57b   : > { %5630 = vmatprep.subr.mxu0 %v5486_v5  ;;  %5699 = vmatprep.subr.mxu1 %v5552_v44  ;;  %v5533_v5 = vld [vmem:[#allocation9 + $0x390] sm:$0xff] }
 0x57c   : > { %5631 = vmatpush2.msra.mxu0 %v5485_v45  ;;  %5700 = vmatpush1.msra.mxu1 %v5551_v49 }
 0x57d   : > { %5632 = vmatprep.subr.mxu0 %v5483_v26  ;;  %5701 = vmatprep.subr.mxu1 %v5549_v1  ;;  %v5531_v26 = vld [vmem:[#allocation9 + $0x380] sm:$0xff] }
 0x57e   : > { %2402 = vperm.xlu1 %7526, %v7694_v32   ;;  %5633 = vmatpush2.msra.mxu0 %v5482_v57  ;;  %v5539_v32 = vld [vmem:[#allocation9 + $0x3c0] sm:$0xff]  ;;  %v5530_v57 = vld [vmem:[#allocation9 + $0x378] sm:$0xff] }
 0x57f   : > { %5634 = vmatprep.subr.mxu0 %v5480_v48  ;;  %5702 = vmatpush1.msra.mxu1 %v5548_v34  ;;  %v5528_v48 = vld [vmem:[#allocation9 + $0x368] sm:$0xff] }
 0x580   : > { %5635 = vmatpush2.msra.mxu0 %v5479_v11  ;;  %5703 = vmatprep.subr.mxu1 %v5546_v30  ;;  %v9957_v11 = vpop.permute.xlu0 %3007 }
 0x581   : > { %5636 = vmatprep.subr.mxu0 %v5477_v51  ;;  %5704 = vmatpush1.msra.mxu1 %v5545_v21  ;;  %v5525_v51 = vld [vmem:[#allocation9 + $0x350] sm:$0xff] }
 0x582   : > { %3566 = vperm.xlu1 %7526, %v7696_v46   ;;  %5637 = vmatpush2.msra.mxu0 %v5476_v12  ;;  %v9955_v46 = vpop.permute.xlu1 %4166  ;;  %v5524_v12 = vld [vmem:[#allocation9 + $0x348] sm:$0xff] }
 0x583   : > { %5638 = vmatprep.subr.mxu0 %v5474_v13  ;;  %5705 = vmatprep.subr.mxu1 %v5543_v27  ;;  %v5522_v13 = vld [vmem:[#allocation9 + $0x338] sm:$0xff]  ;;  %v4192_v2 = vmul.f32 %v9866_v4, %v9955_v46  ;;  %v3033_v4 = vmul.f32 %v9806_v60, %v9957_v11 }
 0x584   : > { %5639 = vmatpush2.msra.mxu0 %v5473_v17  ;;  %5706 = vmatpush1.msra.mxu1 %v5542_v56  ;;  %v10516_v60 = vld [vmem:[#allocation40_spill] sm:$0xff] }
 0x585   : > { %5640 = vmatprep.subr.mxu0 %v5471_v22  ;;  %5707 = vmatprep.subr.mxu1 %v5540_v54  ;;  %v5519_v22 = vld [vmem:[#allocation9 + $0x320] sm:$0xff] }
 0x586   : > { %2407 = vperm.xlu1 %7526, %v7698_v50   ;;  %5641 = vmatpush2.msra.mxu0 %v5470_v9  ;;  %v4162_v45 = vpop.permute.xlu1 %4161  ;;  %v5527_v50 = vld [vmem:[#allocation9 + $0x360] sm:$0xff]  ;;  %v5518_v9 = vld [vmem:[#allocation9 + $0x318] sm:$0xff] }
 0x587   : > { %5642 = vmatprep.subr.mxu0 %v5468_v14  ;;  %5708 = vmatpush1.msra.mxu1 %v5539_v32  ;;  %v3003_v14 = vpop.permute.xlu0 %3002 }
 0x588   : > { %5643 = vmatpush2.msra.mxu0 %v5467_v38  ;;  %5709 = vmatprep.subr.mxu1 %v5537_v7  ;;  %v5516_v38 = vld [vmem:[#allocation9 + $0x308] sm:$0xff]  ;;  %v7706_v7 = vpop.eup %7705 }
 0x589   : > { %5710 = vmatpush1.msra.mxu1 %v5536_v16  ;;  %v7708_v16 = vpop.eup %7707 }
 0x58a   : > { %3571 = vperm.xlu1 %7526, %v7700_v6   ;;  %5711 = vmatprep.subr.mxu1 %v5534_v36  ;;  %v5521_v6 = vld [vmem:[#allocation9 + $0x330] sm:$0xff]  ;;  %v9959_v17 = vpop.permute.xlu1 %4171 }
 0x58b   : > { %5712 = vmatpush1.msra.mxu1 %v5533_v5 }
 0x58c   : > { %5713 = vmatprep.subr.mxu1 %v5531_v26 }
 0x58d   : > { %5714 = vmatpush1.msra.mxu1 %v5530_v57 }
 0x58e   : > { %2412 = vperm.xlu1 %7526, %v7702_v24   ;;  %5715 = vmatprep.subr.mxu1 %v5528_v48 }
 0x58f   : > { %5716 = vmatpush1.msra.mxu1 %v5527_v50 }
 0x590   : > { %5717 = vmatprep.subr.mxu1 %v5525_v51  ;;  %v10515_v51 = vld [vmem:[#allocation18_spill] sm:$0xff] }
 0x591   : > { %5718 = vmatpush1.msra.mxu1 %v5524_v12  ;;  %v4193_v12 = vmul.f32 %v9959_v17, %v10515_v51  ;;  %v10120_v51 = vld [vmem:[#allocation9 + $0x388] sm:$0xff] }
 0x592   : > { %3576 = vperm.xlu1 %7526, %v7704_v29   ;;  %5719 = vmatprep.subr.mxu1 %v5522_v13  ;;  %v5514_v29 = vld [vmem:[#allocation9 + $0x2f8] sm:$0xff] }
 0x593   : > { %5720 = vmatpush1.msra.mxu1 %v5521_v6  ;;  %v10517_v6 = vld [vmem:[#allocation35_spill] sm:$0xff] }
 0x594   : > { %5721 = vmatprep.subr.mxu1 %v5519_v22 }
 0x595   : > { %5722 = vmatpush1.msra.mxu1 %v5518_v9  ;;  %v10518_v9 = vld [vmem:[#allocation42_spill] sm:$0xff] }
 0x596   : > { %5723 = vmatprep.subr.mxu1 %v5516_v38 }
 0x597   : > { %5724 = vmatpush1.msra.mxu1 %v5515_v40  ;;  %v10519_v40 = vld [vmem:[#allocation21_spill] sm:$0xff] }
 0x598   : > { %6730 = vmatprep.subr.mxu1 %v5514_v29 }
 0x5bb   : > { %v5315_v24 = vpop.permute.xlu1 %5314 }
 0x5bc   : > { %v5348_v25 = vmul.f32 %v9910_v55, %v5315_v24 }
 0x5bd   : > { %v5310_v61 = vpop.permute.xlu0 %5309 }
 0x5be   : > { %5365 = vrot.lane.b32.xlu0 %v5348_v25, %s7932_s21  ;;  %v5347_v23 = vmul.f32 %v5310_v61, %v9912_v10  ;;  %v10520_v61 = vld [vmem:[#allocation29_spill] sm:$0xff] }
 0x5c1   : > { %v9964_v35 = vpop.permute.xlu0 %3012  ;;  %v5320_v59 = vpop.permute.xlu1 %5319 }
 0x5c2   : > { %5363 = vrot.lane.b32.xlu0 %v5347_v23, %s7932_s21  ;;  %v5349_v10 = vmul.f32 %v5320_v59, %v9916_v0  ;;  %v3034_v22 = vmul.f32 %v9964_v35, %v10517_v6  ;;  %v10521_v23 = vld [vmem:[#allocation41_spill] sm:$0xff] }
 0x5c5   : > { %v5325_v44 = vpop.permute.xlu0 %5324  ;;  %v9967_v49 = vpop.permute.xlu1 %4176 }
 0x5c6   : > { %v5350_v1 = vmul.f32 %v9914_v41, %v5325_v44  ;;  %v4194_v25 = vmul.f32 %v10519_v40, %v9967_v49  ;;  %v10522_v44 = vld [vmem:[#allocation28_spill] sm:$0xff]  ;;  %v10533_v40 = vmov 0.0  }
 0x5c8   : > { %5369 = vrot.lane.b32.xlu0 %v5350_v1, %s7932_s21 }
 0x5c9   : > { %v9971_v55 = vpop.permute.xlu0 %3017  ;;  %v5330_v34 = vpop.permute.xlu1 %5329 }
 0x5ca   : > { %v5351_v20 = vmul.f32 %v5330_v34, %v9920_v53  ;;  %v3035_v1 = vmul.f32 %v10522_v44, %v9971_v55  ;;  %v10523_v34 = vld [vmem:[#allocation31_spill] sm:$0xff] }
 0x5cb   : > { %v5502_v44 = vld [vmem:[#allocation9 + $0x298] sm:$0xff] }
 0x5cc   : > { %5367 = vrot.lane.b32.xlu0 %v5349_v10, %s7932_s21  ;;  %v10524_v10 = vld [vmem:[#allocation37_spill] sm:$0xff] }
 0x5cd   : > { %v5335_v30 = vpop.permute.xlu0 %5334  ;;  %v9976_v21 = vpop.permute.xlu1 %4181 }
 0x5ce   : > { %v5352_v27 = vmul.f32 %v9918_v42, %v5335_v30  ;;  %v4191_v42 = vmul.f32 %v4162_v45, %v9868_v63  ;;  %v7710_v45 = vpop.eup %7709  ;;  %v4195_v29 = vmul.f32 %v9976_v21, %v10520_v61  ;;  %v5460_v61 = vld [vmem:[#allocation9 + $0x148] sm:$0xff] }
 0x5cf   : > { %v7712_v26 = vpop.eup %7711 }
 0x5d0   : > { %5373 = vrot.lane.b32.xlu0 %v5352_v27, %s7932_s21  ;;  %v7714_v46 = vpop.eup %7713 }
 0x5d1   : > { %v9981_v41 = vpop.permute.xlu0 %3022  ;;  %v5340_v56 = vpop.permute.xlu1 %5339 }
 0x5d2   : > { %v5353_v0 = vmul.f32 %v5340_v56, %v9924_v8  ;;  %v7716_v11 = vpop.eup %7715  ;;  %v10525_v56 = vld [vmem:[#allocation26_spill] sm:$0xff] }
 0x5d3   : > { %v7718_v24 = vpop.eup %7717 }
 0x5d4   : > { %5371 = vrot.lane.b32.xlu0 %v5351_v20, %s7932_s21  ;;  %5375 = vrot.lane.b32.xlu1 %v5353_v0, %s7932_s21  ;;  %v3036_v20 = vmul.f32 %v9981_v41, %v10525_v56  ;;  %v10526_v0 = vld [vmem:[#allocation17_spill] sm:$0xff] }
 0x5d5   : > { %v5345_v54 = vpop.permute.xlu0 %5344  ;;  %v4715_v32 = vpop.permute.xlu1 %4714  ;;  %v5448_v56 = vld [vmem:[#allocation9 + $0xe8] sm:$0xff] }
 0x5d6   : > { %v4752_v31 = vmul.f32 %v4715_v32, %v9882_v15  ;;  %v5354_v8 = vmul.f32 %v9922_v28, %v5345_v54  ;;  %v3032_v15 = vmul.f32 %v3003_v14, %v9809_v52  ;;  %v10527_v32 = vld [vmem:[#allocation30_spill] sm:$0xff] }
 0x5d8   : > { %4760 = vst.msk [vmem:[#allocation3 + $0x10] sm:$0xff] %vm1943_vm0, %v4752_v31  ;;  %4209 = vrot.lane.b32.xlu0 %v4191_v42, %s7932_s21  ;;  %2417 = vperm.xlu1 %7526, %v7706_v7   ;;  %v10528_v31 = vld [vmem:[#allocation27_spill] sm:$0xff] }
 0x5d9   : > { %v9993_v43 = vpop.permute.xlu0 %4186  ;;  %v9995_v53 = vpop.permute.xlu1 %3027 }
 0x5da   : > { %v4196_v49 = vmul.f32 %v10523_v34, %v9993_v43  ;;  %v3037_v42 = vmul.f32 %v10527_v32, %v9995_v53  ;;  %v5499_v34 = vld [vmem:[#allocation9 + $0x280] sm:$0xff]  ;;  %v5490_v32 = vld [vmem:[#allocation9 + $0x238] sm:$0xff] }
 0x5dc   : > { %5377 = vrot.lane.b32.xlu0 %v5354_v8, %s7932_s21  ;;  %3581 = vperm.xlu1 %7526, %v7708_v16   ;;  %v10070_v16 = vld [vmem:[#allocation9 + $0x460] sm:$0xff] }
 0x5dd   : > { %v4720_v18 = vpop.permute.xlu0 %4719  ;;  %v4725_v63 = vpop.permute.xlu1 %4724 }
 0x5de   : > { %v4753_v36 = vmul.f32 %v9880_v62, %v4720_v18  ;;  %v4754_v5 = vmul.f32 %v4725_v63, %v9886_v39  ;;  %v10012_v39 = vld [vmem:[#allocation9 + $0x478] sm:$0xff] }
 0x5df   : > { %7358 = vmatprep.subr.mxu0 %v10012_v39  ;;  %v10529_v18 = vld [vmem:[#allocation36_spill] sm:$0xff] }
 0x5e0   : > { %4761 = vst.msk [vmem:[#allocation3 + $0x28] sm:$0xff] %vm1943_vm0, %v4753_v36  ;;  %4762 = vst.msk [vmem:[#allocation3 + $0x40] sm:$0xff] %vm1943_vm0, %v4754_v5  ;;  %3050 = vrot.lane.b32.xlu0 %v3032_v15, %s7932_s21  ;;  %2422 = vperm.xlu1 %7526, %v7710_v45   ;;  %v10078_v15 = vld [vmem:[#allocation9 + $0x448] sm:$0xff]  ;;  %v10085_v45 = vld [vmem:[#allocation9 + $0x430] sm:$0xff] }
 0x5e1   : > { %v2398_v28 = vpop.permute.xlu0 %2397  ;;  %v4730_v58 = vpop.permute.xlu1 %4729 }
 0x5e2   : > { %v2435_v52 = vmul.f32 %v2398_v28, %v9692_v19  ;;  %v4755_v62 = vmul.f32 %v9884_v37, %v4730_v58  ;;  %v10530_v28 = vld [vmem:[#allocation24_spill] sm:$0xff] }
 0x5e4   : > { %2443 = vst.msk [vmem:[#allocation3] sm:$0xff] %vm1943_vm0, %v2435_v52  ;;  %4763 = vst.msk [vmem:[#allocation3 + $0x58] sm:$0xff] %vm1943_vm0, %v4755_v62  ;;  %4211 = vrot.lane.b32.xlu0 %v4192_v2, %s7932_s21  ;;  %3586 = vperm.xlu1 %7526, %v7712_v26   ;;  %v10091_v2 = vld [vmem:[#allocation9 + $0x418] sm:$0xff]  ;;  %v10096_v62 = vld [vmem:[#allocation9 + $0x400] sm:$0xff] }
 0x5e5   : > { %v3562_v33 = vpop.permute.xlu0 %3561  ;;  %v4735_v57 = vpop.permute.xlu1 %4734  ;;  %v10531_v26 = vld [vmem:[#allocation32_spill] sm:$0xff] }
 0x5e6   : > { %v3595_v19 = vmul.f32 %v9830_v3, %v3562_v33  ;;  %v4756_v37 = vmul.f32 %v4735_v57, %v9890_v47  ;;  %v10101_v57 = vld [vmem:[#allocation9 + $0x3e8] sm:$0xff] }
 0x5e8   : > { %3603 = vst.msk [vmem:[#allocation3 + $0x20] sm:$0xff] %vm1943_vm0, %v3595_v19  ;;  %4764 = vst.msk [vmem:[#allocation3 + $0x70] sm:$0xff] %vm1943_vm0, %v4756_v37  ;;  %3052 = vrot.lane.b32.xlu0 %v3033_v4, %s7932_s21  ;;  %2427 = vperm.xlu1 %7526, %v7714_v46   ;;  %v10106_v19 = vld [vmem:[#allocation9 + $0x3d0] sm:$0xff]  ;;  %v10532_v37 = vld [vmem:[#allocation25_spill] sm:$0xff] }
 0x5e9   : > { %v3047_v48 = vpop.permute.xlu0 %3046  ;;  %v4740_v50 = vpop.permute.xlu1 %4739 }
 0x5ea   : > { %3071 = vst.msk [vmem:[#allocation3] sm:$0xff] %vm3070_vm9, %v3047_v48  ;;  %v4757_v3 = vmul.f32 %v10516_v60, %v4740_v50  ;;  %v10111_v48 = vld [vmem:[#allocation9 + $0x3b8] sm:$0xff]  ;;  %v10116_v50 = vld [vmem:[#allocation9 + $0x3a0] sm:$0xff] }
 0x5eb   : > { %v10128_v60 = vld [vmem:[#allocation9 + $0x358] sm:$0xff] }
 0x5ec   : > { %4765 = vst.msk [vmem:[#allocation3 + $0x88] sm:$0xff] %vm1943_vm0, %v4757_v3  ;;  %4213 = vrot.lane.b32.xlu0 %v4193_v12, %s7932_s21  ;;  %3591 = vperm.xlu1 %7526, %v7716_v11   ;;  %v10124_v12 = vld [vmem:[#allocation9 + $0x370] sm:$0xff]  ;;  %v10132_v3 = vld [vmem:[#allocation9 + $0x340] sm:$0xff]  ;;  %v10136_v11 = vld [vmem:[#allocation9 + $0x328] sm:$0xff] }
 0x5ed   : > { %v3049_v47 = vpop.permute.xlu0 %3048  ;;  %v4745_v13 = vpop.permute.xlu1 %4744 }
 0x5ee   : > { %v4758_v14 = vmul.f32 %v4745_v13, %v10518_v9  ;;  %v5466_v9 = vld [vmem:[#allocation9 + $0x178] sm:$0xff] }
 0x5f0   : > { %4766 = vst.msk [vmem:[#allocation3 + $0xa0] sm:$0xff] %vm1943_vm0, %v4758_v14  ;;  %3054 = vrot.lane.b32.xlu0 %v3034_v22, %s7932_s21  ;;  %2432 = vperm.xlu1 %7526, %v7718_v24   ;;  %v5511_v24 = vld [vmem:[#allocation9 + $0x2e0] sm:$0xff] }
 0x5f1   : > { %v4208_v17 = vpop.permute.xlu0 %4207  ;;  %v4750_v38 = vpop.permute.xlu1 %4749  ;;  %v10068_v8 = vld [vmem:[#allocation3] sm:$0xff] }
 0x5f2   : > { %4230 = vst.msk [vmem:[#allocation3 + $0x20] sm:$0xff] %vm3070_vm9, %v4208_v17  ;;  %v4759_v35 = vmul.f32 %v10521_v23, %v4750_v38  ;;  %v5463_v17 = vld [vmem:[#allocation9 + $0x160] sm:$0xff]  ;;  %v5505_v23 = vld [vmem:[#allocation9 + $0x2b0] sm:$0xff] }
 0x5f4   : > { %4767 = vst.msk [vmem:[#allocation3 + $0xb8] sm:$0xff] %vm1943_vm0, %v4759_v35  ;;  %4215 = vrot.lane.b32.xlu0 %v4194_v25, %s7932_s21  ;;  %4217 = vrot.lane.b32.xlu1 %v4195_v29, %s7932_s21  ;;  %v5508_v25 = vld [vmem:[#allocation9 + $0x2c8] sm:$0xff]  ;;  %v5457_v35 = vld [vmem:[#allocation9 + $0x130] sm:$0xff] }
 0x5f5   : > { %v3557_v59 = vpop.permute.xlu1 %3556  ;;  %v4206_v21 = vpop.permute.xlu0 %4205 }
 0x5f6   : > { %v3594_v30 = vmul.f32 %v3557_v59, %v10524_v10 }
 0x5f8   : > { %3602 = vst.msk [vmem:[#allocation3 + $0x8] sm:$0xff] %vm1943_vm0, %v3594_v30  ;;  %3056 = vrot.lane.b32.xlu0 %v3035_v1, %s7932_s21  ;;  %4219 = vrot.lane.b32.xlu1 %v4196_v49, %s7932_s21  ;;  %v5454_v1 = vld [vmem:[#allocation9 + $0x118] sm:$0xff]  ;;  %v5451_v49 = vld [vmem:[#allocation9 + $0x100] sm:$0xff] }
 0x5f9   : > { %4229 = vst.msk [vmem:[#allocation3 + $0x8] sm:$0xff] %vm3070_vm9, %v4206_v21  ;;  %v2403_v27 = vpop.permute.xlu1 %2402  ;;  %v10074_v53 = vld [vmem:[#allocation3 + $0x20] sm:$0xff] }
 0x5fa   : > { %v2436_v55 = vmul.f32 %v10526_v0, %v2403_v27  ;;  %v5496_v27 = vld [vmem:[#allocation9 + $0x268] sm:$0xff]  ;;  %v5445_v0 = vld [vmem:[#allocation9 + $0xd0] sm:$0xff] }
 0x5fc   : > { %2444 = vst.msk [vmem:[#allocation3 + $0x18] sm:$0xff] %vm1943_vm0, %v2436_v55  ;;  %3058 = vrot.lane.b32.xlu0 %v3036_v20, %s7932_s21  ;;  %v5493_v20 = vld [vmem:[#allocation9 + $0x250] sm:$0xff] }
 0x5fd   : > { %3072 = vst.msk [vmem:[#allocation3 + $0x18] sm:$0xff] %vm3070_vm9, %v3049_v47  ;;  %v3567_v54 = vpop.permute.xlu1 %3566  ;;  %v10140_v47 = vld [vmem:[#allocation9 + $0x310] sm:$0xff] }
 0x5fe   : > { %v3596_v7 = vmul.f32 %v3567_v54, %v10528_v31  ;;  %v5487_v31 = vld [vmem:[#allocation9 + $0x220] sm:$0xff] }
 0x600   : > { %3604 = vst.msk [vmem:[#allocation3 + $0x38] sm:$0xff] %vm1943_vm0, %v3596_v7  ;;  %3060 = vrot.lane.b32.xlu0 %v3037_v42, %s7932_s21  ;;  %v10065_v43 = vld [vmem:[#allocation3 + $0x8] sm:$0xff]  ;;  %v5442_v42 = vld [vmem:[#allocation9 + $0xb8] sm:$0xff]  ;;  %v5439_v7 = vld [vmem:[#allocation9 + $0xa0] sm:$0xff] }
 0x601   : > { %5644 = vmatprep.mubr.f32.mxu0 %v10065_v43  ;;  %v2408_v41 = vpop.permute.xlu1 %2407 }
 0x602   : > { %v2437_v63 = vmul.f32 %v2408_v41, %v10529_v18  ;;  %5645 = vmatmul.mubr.f32.vlgmr.msra.gmra.mxu0 %v10068_v8 }
 0x603   : > { %5650 = vmatprep.mubr.f32.mxu0 %v10074_v53  ;;  %7359 = vmatpush3.msra.mxu0 %v10012_v39 }
 0x604   : > { %2445 = vst.msk [vmem:[#allocation3 + $0x30] sm:$0xff] %vm1943_vm0, %v2437_v63  ;;  %v10081_v36 = vld [vmem:[#allocation3 + $0x18] sm:$0xff]  ;;  %7360 = vmatprep.subr.mxu0 %v10070_v16  ;;  %v5484_v63 = vld [vmem:[#allocation9 + $0x208] sm:$0xff] }
 0x605   : > { %v3572_v5 = vpop.permute.xlu1 %3571  ;;  %7361 = vmatpush3.msra.mxu0 %v10070_v16 }
 0x606   : > { %v3597_v58 = vmul.f32 %v10530_v28, %v3572_v5  ;;  %5651 = vmatmul.mubr.f32.gmra.mxu0 %v10081_v36  ;;  %7362 = vmatprep.subr.mxu0 %v10078_v15  ;;  %v5436_v5 = vld [vmem:[#allocation9 + $0x88] sm:$0xff]  ;;  %v5481_v28 = vld [vmem:[#allocation9 + $0x1f0] sm:$0xff] }
 0x607   : > { %7363 = vmatpush3.msra.mxu0 %v10078_v15 }
 0x608   : > { %3605 = vst.msk [vmem:[#allocation3 + $0x50] sm:$0xff] %vm1943_vm0, %v3597_v58  ;;  %7364 = vmatprep.subr.mxu0 %v10085_v45 }
 0x609   : > { %v2413_v52 = vpop.permute.xlu1 %2412  ;;  %7365 = vmatpush3.msra.mxu0 %v10085_v45 }
 0x60a   : > { %v2438_v33 = vmul.f32 %v10531_v26, %v2413_v52  ;;  %7366 = vmatprep.subr.mxu0 %v10091_v2 }
 0x60b   : > { %7367 = vmatpush3.msra.mxu0 %v10091_v2 }
 0x60c   : > { %2446 = vst.msk [vmem:[#allocation3 + $0x48] sm:$0xff] %vm1943_vm0, %v2438_v33  ;;  %7368 = vmatprep.subr.mxu0 %v10096_v62  ;;  %v5433_v33 = vld [vmem:[#allocation9 + $0x70] sm:$0xff] }
 0x60d   : > { %v3577_v4 = vpop.permute.xlu1 %3576  ;;  %7369 = vmatpush3.msra.mxu0 %v10096_v62 }
 0x60e   : > { %v3598_v46 = vmul.f32 %v3577_v4, %v10532_v37  ;;  %7370 = vmatprep.subr.mxu0 %v10101_v57  ;;  %v5478_v37 = vld [vmem:[#allocation9 + $0x1d8] sm:$0xff] }
 0x60f   : > { %7371 = vmatpush3.msra.mxu0 %v10101_v57 }
 0x610   : > { %3606 = vst.msk [vmem:[#allocation3 + $0x68] sm:$0xff] %vm1943_vm0, %v3598_v46  ;;  %7372 = vmatprep.subr.mxu0 %v10106_v19  ;;  %v10534_v46 = vld [vmem:[#allocation33_spill] sm:$0xff] }
 0x611   : > { %7373 = vmatpush3.msra.mxu0 %v10106_v19 }
 0x612   : > { %7374 = vmatprep.subr.mxu0 %v10111_v48 }
 0x613   : > { %7375 = vmatpush3.msra.mxu0 %v10111_v48 }
 0x614   : > { %7376 = vmatprep.subr.mxu0 %v10116_v50 }
 0x615   : > { %7377 = vmatpush3.msra.mxu0 %v10116_v50 }
 0x616   : > { %7378 = vmatprep.subr.mxu0 %v10120_v51 }
 0x617   : > { %7379 = vmatpush3.msra.mxu0 %v10120_v51 }
 0x618   : > { %7380 = vmatprep.subr.mxu0 %v10124_v12 }
 0x619   : > { %7381 = vmatpush3.msra.mxu0 %v10124_v12 }
 0x61a   : > { %7382 = vmatprep.subr.mxu0 %v10128_v60 }
 0x61b   : > { %7383 = vmatpush3.msra.mxu0 %v10128_v60 }
 0x61c   : > { %7384 = vmatprep.subr.mxu0 %v10132_v3 }
 0x61d   : > { %7385 = vmatpush3.msra.mxu0 %v10132_v3 }
 0x61e   : > { %7386 = vmatprep.subr.mxu0 %v10136_v11 }
 0x61f   : > { %7387 = vmatpush3.msra.mxu0 %v10136_v11 }
 0x620   : > { %7388 = vmatprep.subr.mxu0 %v10140_v47 }
 0x621   : > { %7389 = vmatpush3.msra.mxu0 %v10140_v47 }
 0x630   : > { %v5366_v13 = vpop.permute.xlu0 %5365 }
 0x631   : > { %5388 = vst.msk [vmem:[#allocation3 + $0x28] sm:$0xff] %vm3070_vm9, %v5366_v13 }
 0x634   : > { %v5364_v6 = vpop.permute.xlu0 %5363 }
 0x635   : > { %5387 = vst.msk [vmem:[#allocation3 + $0x10] sm:$0xff] %vm3070_vm9, %v5364_v6  ;;  %v5430_v6 = vld [vmem:[#allocation9 + $0x58] sm:$0xff] }
 0x638   : > { %v10154_v29 = vld [vmem:[#allocation3 + $0x28] sm:$0xff] }
 0x63a   : > { %v5370_v22 = vpop.permute.xlu0 %5369 }
 0x63b   : > { %5390 = vst.msk [vmem:[#allocation3 + $0x58] sm:$0xff] %vm3070_vm9, %v5370_v22 }
 0x63c   : > { %v10149_v14 = vld [vmem:[#allocation3 + $0x10] sm:$0xff] }
 0x63d   : > { %5758 = vmatmul.mubr.f32.vlgmr.msra.gmra.mxu1 %v10149_v14 }
 0x63e   : > { %v5368_v38 = vpop.permute.xlu0 %5367  ;;  %5763 = vmatprep.mubr.f32.mxu1 %v10533_v40  ;;  %6731 = vmatpush3.msra.mxu1 %v5466_v9 }
 0x63f   : > { %5389 = vst.msk [vmem:[#allocation3 + $0x40] sm:$0xff] %vm3070_vm9, %v5368_v38  ;;  %6732 = vmatprep.subr.mxu1 %v5511_v24  ;;  %v5475_v24 = vld [vmem:[#allocation9 + $0x1c0] sm:$0xff] }
 0x640   : > { %6733 = vmatpush3.msra.mxu1 %v5463_v17  ;;  %v5427_v38 = vld [vmem:[#allocation9 + $0x40] sm:$0xff] }
 0x641   : > { %5764 = vmatmul.mubr.f32.gmra.mxu1 %v10154_v29  ;;  %6734 = vmatprep.subr.mxu1 %v5508_v25  ;;  %v10535_v25 = vld [vmem:[#allocation23_spill] sm:$0xff] }
 0x642   : > { %v5374_v59 = vpop.permute.xlu0 %5373  ;;  %6735 = vmatpush3.msra.mxu1 %v5460_v61  ;;  %5769 = vmatprep.mubr.f32.mxu1 %v10533_v40  ;;  %v10165_v54 = vld [vmem:[#allocation3 + $0x58] sm:$0xff] }
 0x643   : > { %5392 = vst.msk [vmem:[#allocation3 + $0x88] sm:$0xff] %vm3070_vm9, %v5374_v59  ;;  %6736 = vmatprep.subr.mxu1 %v5505_v23  ;;  %v5472_v23 = vld [vmem:[#allocation9 + $0x1a8] sm:$0xff] }
 0x644   : > { %6737 = vmatpush3.msra.mxu1 %v5457_v35 }
 0x645   : > { %6738 = vmatprep.subr.mxu1 %v5502_v44 }
 0x646   : > { %v5372_v10 = vpop.permute.xlu0 %5371  ;;  %v5376_v30 = vpop.permute.xlu1 %5375  ;;  %v10159_v21 = vld [vmem:[#allocation3 + $0x40] sm:$0xff]  ;;  %6739 = vmatpush3.msra.mxu1 %v5454_v1  ;;  %v5424_v1 = vld [vmem:[#allocation9 + $0x28] sm:$0xff] }
 0x647   : > { %5391 = vst.msk [vmem:[#allocation3 + $0x70] sm:$0xff] %vm3070_vm9, %v5372_v10  ;;  %5393 = vst.msk [vmem:[#allocation3 + $0xa0] sm:$0xff] %vm3070_vm9, %v5376_v30  ;;  %5770 = vmatmul.mubr.f32.gmra.mxu1 %v10159_v21  ;;  %6740 = vmatprep.subr.mxu1 %v5499_v34  ;;  %v10536_v10 = vld [vmem:[#allocation38_spill] sm:$0xff] }
 0x648   : > { %5775 = vmatprep.mubr.f32.mxu1 %v10533_v40  ;;  %6741 = vmatpush3.msra.mxu1 %v5451_v49  ;;  %v5469_v49 = vld [vmem:[#allocation9 + $0x190] sm:$0xff] }
 0x649   : > { %6742 = vmatprep.subr.mxu1 %v5496_v27  ;;  %v5421_v30 = vld [vmem:[#allocation9 + $0x10] sm:$0xff] }
 0x64a   : > { %v4210_v55 = vpop.permute.xlu0 %4209  ;;  %6743 = vmatpush3.msra.mxu1 %v5448_v56  ;;  %v10177_v26 = vld [vmem:[#allocation3 + $0x88] sm:$0xff] }
 0x64b   : > { %4231 = vst.msk [vmem:[#allocation3 + $0x38] sm:$0xff] %vm3070_vm9, %v4210_v55  ;;  %5776 = vmatmul.mubr.f32.gmra.mxu1 %v10165_v54  ;;  %6744 = vmatprep.subr.mxu1 %v5493_v20 }
 0x64c   : > { %5781 = vmatprep.mubr.f32.mxu1 %v10533_v40  ;;  %6745 = vmatpush3.msra.mxu1 %v5445_v0  ;;  %v10537_v0 = vld [vmem:[#allocation19_spill] sm:$0xff] }
 0x64d   : > { %6746 = vmatprep.subr.mxu1 %v5490_v32 }
 0x64e   : > { %v5378_v41 = vpop.permute.xlu0 %5377  ;;  %v10170_v18 = vld [vmem:[#allocation3 + $0x70] sm:$0xff]  ;;  %6747 = vmatpush3.msra.mxu1 %v5442_v42  ;;  %v10185_v9 = vld [vmem:[#allocation3 + $0xa0] sm:$0xff] }
 0x64f   : > { %5394 = vst.msk [vmem:[#allocation3 + $0xb8] sm:$0xff] %vm3070_vm9, %v5378_v41  ;;  %5782 = vmatmul.mubr.f32.gmra.mxu1 %v10170_v18  ;;  %6748 = vmatprep.subr.mxu1 %v5487_v31 }
 0x650   : > { %5787 = vmatprep.mubr.f32.mxu1 %v10533_v40  ;;  %6749 = vmatpush3.msra.mxu1 %v5439_v7 }
 0x651   : > { %6750 = vmatprep.subr.mxu1 %v5484_v63 }
 0x652   : > { %v3051_v58 = vpop.permute.xlu0 %3050  ;;  %v10175_v52 = vld [vmem:[#allocation3 + $0x38] sm:$0xff]  ;;  %6751 = vmatpush3.msra.mxu1 %v5436_v5 }
 0x653   : > { %3073 = vst.msk [vmem:[#allocation3 + $0x30] sm:$0xff] %vm3070_vm9, %v3051_v58  ;;  %5656 = vmatprep.mubr.f32.mxu0 %v10175_v52  ;;  %5788 = vmatmul.mubr.f32.gmra.mxu1 %v10177_v26  ;;  %v2418_v4 = vpop.permute.xlu1 %2417 }
 0x654   : > { %v2439_v13 = vmul.f32 %v2418_v4, %v10534_v46  ;;  %6752 = vmatprep.subr.mxu1 %v5481_v28  ;;  %5793 = vmatprep.mubr.f32.mxu1 %v10533_v40 }
 0x655   : > { %6753 = vmatpush3.msra.mxu1 %v5433_v33 }
 0x656   : > { %2447 = vst.msk [vmem:[#allocation3 + $0x60] sm:$0xff] %vm1943_vm0, %v2439_v13  ;;  %v4212_v22 = vpop.permute.xlu0 %4211  ;;  %6754 = vmatprep.subr.mxu1 %v5478_v37  ;;  %v10192_v44 = vld [vmem:[#allocation3 + $0xb8] sm:$0xff] }
 0x657   : > { %4232 = vst.msk [vmem:[#allocation3 + $0x50] sm:$0xff] %vm3070_vm9, %v4212_v22  ;;  %5794 = vmatmul.mubr.f32.gmra.mxu1 %v10185_v9  ;;  %v3582_v17 = vpop.permute.xlu1 %3581 }
 0x658   : > { %v3599_v61 = vmul.f32 %v10535_v25, %v3582_v17  ;;  %6755 = vmatpush3.msra.mxu1 %v5430_v6  ;;  %5799 = vmatprep.mubr.f32.mxu1 %v10533_v40 }
 0x659   : > { %6756 = vmatprep.subr.mxu1 %v5475_v24 }
 0x65a   : > { %3607 = vst.msk [vmem:[#allocation3 + $0x80] sm:$0xff] %vm1943_vm0, %v3599_v61  ;;  %v3053_v35 = vpop.permute.xlu0 %3052  ;;  %6757 = vmatpush3.msra.mxu1 %v5427_v38  ;;  %v5401_v59 = vld [vmem:[#allocation3 + $0x30] sm:$0xff] }
 0x65b   : > { %3074 = vst.msk [vmem:[#allocation3 + $0x48] sm:$0xff] %vm3070_vm9, %v3053_v35  ;;  %5657 = vmatmul.mubr.f32.gmra.mxu0 %v5401_v59  ;;  %5800 = vmatmul.mubr.f32.gmra.mxu1 %v10192_v44  ;;  %v2423_v34 = vpop.permute.xlu1 %2422 }
 0x65c   : > { %6758 = vmatprep.subr.mxu1 %v5472_v23  ;;  %v2440_v40 = vmul.f32 %v10536_v10, %v2423_v34  ;;  %5870 = vmatprep.mubr.f32.mxu1 %v10065_v43 }
 0x65d   : > { %6759 = vmatpush3.msra.mxu1 %v5424_v1 }
 0x65e   : > { %2448 = vst.msk [vmem:[#allocation3 + $0x78] sm:$0xff] %vm1943_vm0, %v2440_v40  ;;  %6760 = vmatprep.subr.mxu1 %v5469_v49  ;;  %v4214_v27 = vpop.permute.xlu0 %4213  ;;  %v5405_v56 = vld [vmem:[#allocation3 + $0x50] sm:$0xff] }
 0x65f   : > { %4233 = vst.msk [vmem:[#allocation3 + $0x68] sm:$0xff] %vm3070_vm9, %v4214_v27  ;;  %6761 = vmatpush3.msra.mxu1 %v5421_v30  ;;  %5662 = vmatprep.mubr.f32.mxu0 %v5405_v56  ;;  %v3587_v20 = vpop.permute.xlu1 %3586 }
 0x660   : > { %5871 = vmatmul.mubr.f32.vlgmr.msra.gmra.mxu1 %v10068_v8  ;;  %v3600_v55 = vmul.f32 %v3587_v20, %v10537_v0  ;;  %7402 = vmatprep.subr.mxu1 %v10012_v39  ;;  %v10538_v8 = vld [vmem:[#allocation34_spill] sm:$0xff] }
 0x661   : > { %5875 = vmatprep.mubr.f32.mxu1 %v10074_v53  ;;  %7418 = vmatpush3.msra.mxu1 %v10012_v39 }
 0x662   : > { %3608 = vst.msk [vmem:[#allocation3 + $0x98] sm:$0xff] %vm1943_vm0, %v3600_v55  ;;  %v3055_v43 = vpop.permute.xlu0 %3054  ;;  %v5404_v32 = vld [vmem:[#allocation3 + $0x48] sm:$0xff]  ;;  %7403 = vmatprep.subr.mxu1 %v10070_v16 }
 0x663   : > { %3075 = vst.msk [vmem:[#allocation3 + $0x60] sm:$0xff] %vm3070_vm9, %v3055_v43  ;;  %5663 = vmatmul.mubr.f32.gmra.mxu0 %v5404_v32  ;;  %v2428_v42 = vpop.permute.xlu1 %2427  ;;  %7419 = vmatpush3.msra.mxu1 %v10070_v16 }
 0x664   : > { %5876 = vmatmul.mubr.f32.gmra.mxu1 %v10081_v36  ;;  %v2441_v31 = vmul.f32 %v2428_v42, %v10538_v8  ;;  %7404 = vmatprep.subr.mxu1 %v10078_v15  ;;  %v10539_v36 = vld [vmem:[#allocation22_spill] sm:$0xff] }
 0x665   : > { %5880 = vmatprep.mubr.f32.mxu1 %v10175_v52  ;;  %7420 = vmatpush3.msra.mxu1 %v10078_v15 }
 0x666   : > { %2449 = vst.msk [vmem:[#allocation3 + $0x90] sm:$0xff] %vm1943_vm0, %v2441_v31  ;;  %v4216_v39 = vpop.permute.xlu0 %4215  ;;  %v5408_v53 = vld [vmem:[#allocation3 + $0x68] sm:$0xff]  ;;  %7405 = vmatprep.subr.mxu1 %v10085_v45 }
 0x667   : > { %4234 = vst.msk [vmem:[#allocation3 + $0x80] sm:$0xff] %vm3070_vm9, %v4216_v39  ;;  %5668 = vmatprep.mubr.f32.mxu0 %v5408_v53  ;;  %v3592_v16 = vpop.permute.xlu1 %3591  ;;  %7421 = vmatpush3.msra.mxu1 %v10085_v45  ;;  %v10540_v45 = vld [vmem:[#allocation39_spill] sm:$0xff] }
 0x668   : > { %5881 = vmatmul.mubr.f32.gmra.mxu1 %v5401_v59  ;;  %v3601_v7 = vmul.f32 %v10539_v36, %v3592_v16  ;;  %7406 = vmatprep.subr.mxu1 %v10091_v2 }
 0x669   : > { %5885 = vmatprep.mubr.f32.mxu1 %v5405_v56  ;;  %7422 = vmatpush3.msra.mxu1 %v10091_v2 }
 0x66a   : > { %3609 = vst.msk [vmem:[#allocation3 + $0xb0] sm:$0xff] %vm1943_vm0, %v3601_v7  ;;  %v3057_v15 = vpop.permute.xlu0 %3056  ;;  %v5407_v41 = vld [vmem:[#allocation3 + $0x60] sm:$0xff]  ;;  %7407 = vmatprep.subr.mxu1 %v10096_v62 }
 0x66b   : > { %3076 = vst.msk [vmem:[#allocation3 + $0x78] sm:$0xff] %vm3070_vm9, %v3057_v15  ;;  %5669 = vmatmul.mubr.f32.gmra.mxu0 %v5407_v41  ;;  %v2433_v63 = vpop.permute.xlu1 %2432  ;;  %7423 = vmatpush3.msra.mxu1 %v10096_v62 }
 0x66c   : > { %5886 = vmatmul.mubr.f32.gmra.mxu1 %v5404_v32  ;;  %v2442_v5 = vmul.f32 %v10540_v45, %v2433_v63  ;;  %7408 = vmatprep.subr.mxu1 %v10101_v57 }
 0x66d   : > { %5890 = vmatprep.mubr.f32.mxu1 %v5408_v53  ;;  %7424 = vmatpush3.msra.mxu1 %v10101_v57 }
 0x66e   : > { %2450 = vst.msk [vmem:[#allocation3 + $0xa8] sm:$0xff] %vm1943_vm0, %v2442_v5  ;;  %v3059_v2 = vpop.permute.xlu0 %3058  ;;  %v5411_v28 = vld [vmem:[#allocation3 + $0x80] sm:$0xff]  ;;  %7409 = vmatprep.subr.mxu1 %v10106_v19 }
 0x66f   : > { %3077 = vst.msk [vmem:[#allocation3 + $0x90] sm:$0xff] %vm3070_vm9, %v3059_v2  ;;  %5674 = vmatprep.mubr.f32.mxu0 %v5411_v28  ;;  %v4218_v58 = vpop.permute.xlu1 %4217  ;;  %7425 = vmatpush3.msra.mxu1 %v10106_v19 }
 0x670   : > { %5891 = vmatmul.mubr.f32.gmra.mxu1 %v5407_v41  ;;  %4235 = vst.msk [vmem:[#allocation3 + $0x98] sm:$0xff] %vm3070_vm9, %v4218_v58  ;;  %7410 = vmatprep.subr.mxu1 %v10111_v48 }
 0x671   : > { %5895 = vmatprep.mubr.f32.mxu1 %v5411_v28  ;;  %7426 = vmatpush3.msra.mxu1 %v10111_v48 }
 0x672   : > { %v3061_v62 = vpop.permute.xlu0 %3060  ;;  %v5410_v57 = vld [vmem:[#allocation3 + $0x78] sm:$0xff]  ;;  %7411 = vmatprep.subr.mxu1 %v10116_v50 }
 0x673   : > { %3078 = vst.msk [vmem:[#allocation3 + $0xa8] sm:$0xff] %vm3070_vm9, %v3061_v62  ;;  %5675 = vmatmul.mubr.f32.gmra.mxu0 %v5410_v57  ;;  %v4220_v52 = vpop.permute.xlu1 %4219  ;;  %7427 = vmatpush3.msra.mxu1 %v10116_v50 }
 0x674   : > { %5896 = vmatmul.mubr.f32.gmra.mxu1 %v5410_v57  ;;  %4236 = vst.msk [vmem:[#allocation3 + $0xb0] sm:$0xff] %vm3070_vm9, %v4220_v52  ;;  %7412 = vmatprep.subr.mxu1 %v10120_v51 }
 0x675   : > { %7428 = vmatpush3.msra.mxu1 %v10120_v51 }
 0x676   : > { %7413 = vmatprep.subr.mxu1 %v10124_v12  ;;  %v5413_v48 = vld [vmem:[#allocation3 + $0x90] sm:$0xff] }
 0x677   : > { %v5414_v19 = vld [vmem:[#allocation3 + $0x98] sm:$0xff]  ;;  %7429 = vmatpush3.msra.mxu1 %v10124_v12 }
 0x678   : > { %5680 = vmatprep.mubr.f32.mxu0 %v5414_v19  ;;  %5900 = vmatprep.mubr.f32.mxu1 %v5414_v19 }
 0x679   : > { %5681 = vmatmul.mubr.f32.gmra.mxu0 %v5413_v48  ;;  %5901 = vmatmul.mubr.f32.gmra.mxu1 %v5413_v48 }
 0x67a   : > { %7414 = vmatprep.subr.mxu1 %v10128_v60  ;;  %v5416_v51 = vld [vmem:[#allocation3 + $0xa8] sm:$0xff] }
 0x67b   : > { %7430 = vmatpush3.msra.mxu1 %v10128_v60  ;;  %v5417_v50 = vld [vmem:[#allocation3 + $0xb0] sm:$0xff]  ;;  %v10541_v60 = vld [vmem:[#allocation20_spill] sm:$0xff] }
 0x67c   : > { %7415 = vmatprep.subr.mxu1 %v10132_v3  ;;  %5686 = vmatprep.mubr.f32.mxu0 %v5417_v50 }
 0x67d   : > { %5905 = vmatprep.mubr.f32.mxu1 %v5417_v50  ;;  %7431 = vmatpush3.msra.mxu1 %v10132_v3  ;;  %v5567_v3 = vsub.s32 0, %v10541_v60 }
 0x67e   : > { %5687 = vmatmul.mubr.f32.gmra.mxu0 %v5416_v51  ;;  %5906 = vmatmul.mubr.f32.gmra.mxu1 %v5416_v51 }
 0x67f   : > { %7416 = vmatprep.subr.mxu1 %v10136_v11  ;;  %7390 = vmatprep.mubr.f32.mxu0 %v10149_v14 }
 0x680   : > { %7432 = vmatpush3.msra.mxu1 %v10136_v11  ;;  %7396 = vmatprep.mubr.f32.mxu1 %v10170_v18  ;;  %v10260_v11 = vld [vmem:[#allocation10] sm:$0x7] }
 0x681   : > { %7417 = vmatprep.subr.mxu1 %v10140_v47 }
 0x682   : > { %7433 = vmatpush3.msra.mxu1 %v10140_v47  ;;  %7391 = vmatmul.mubr.f32.vlgmr.msra.gmra.mxu0 %v10154_v29  ;;  %v5571_v47 = vsub.s32 1, %v10541_v60  ;;  %v10264_v29 = vrot.slane %v10260_v11, %v5567_v3 }
 0x683   : > { %7397 = vmatmul.mubr.f32.vlgmr.msra.gmra.mxu1 %v10177_v26  ;;  %7393 = vmatprep.mubr.f32.mxu0 %v10159_v21 }
 0x684   : > { %7399 = vmatprep.mubr.f32.mxu1 %v10185_v9  ;;  %v10267_v21 = vrot.slane %v10260_v11, %v5571_v47 }
 0x686   : > { %7394 = vmatmul.mubr.f32.gmra.mxu0 %v10165_v54 }
 0x687   : > { %7400 = vmatmul.mubr.f32.gmra.mxu1 %v10192_v44 }
 0x6c2   : > { %v5646_v12 = vpop.f32.mrf.mxu0 }
 0x6c3   : > { %v5647_v54 = vadd.f32 %v5646_v12, %v10264_v29 }
 0x6c4   : > { %v5648_v14 = vpop.f32.mrf.mxu0 }
 0x6c5   : > { %v5649_v33 = vadd.f32 %v5648_v14, %v10267_v21 }
 0x6c6   : > { %v5652_v18 = vpop.f32.mrf.mxu0 }
 0x6c7   : > { %v5653_v13 = vadd.f32 %v5652_v18, %v10264_v29 }
 0x6c8   : > { %v5654_v37 = vpop.f32.mrf.mxu0 }
 0x6c9   : > { %v5655_v9 = vadd.f32 %v5654_v37, %v10267_v21 }
 0x6fd   : > { %v5759_v26 = vpop.f32.mrf.mxu1 }
 0x6fe   : > { %v5760_v4 = vadd.f32 %v5759_v26, %v5647_v54 }
 0x6ff   : > { %v5761_v46 = vpop.f32.mrf.mxu1 }
 0x700   : > { %6016 = vst [vmem:[%s10274_s23] sm:$0xff] %v5760_v4  ;;  %v5762_v6 = vadd.f32 %v5761_v46, %v5649_v33 }
 0x701   : > { %v5765_v22 = vpop.f32.mrf.mxu1 }
 0x702   : > { %6017 = vst [vmem:[%s10274_s23 + $0x8] sm:$0xff] %v5762_v6  ;;  %v5766_v24 = vadd.f32 %v5765_v22, %v5653_v13  ;;  %v5575_v13 = vsub.s32 2, %v10541_v60 }
 0x703   : > { %v5767_v17 = vpop.f32.mrf.mxu1 }
 0x704   : > { %6019 = vst [vmem:[%s10274_s23 + $0x18] sm:$0xff] %v5766_v24  ;;  %v5768_v38 = vadd.f32 %v5767_v17, %v5655_v9 }
 0x706   : > { %6020 = vst [vmem:[%s10274_s23 + $0x20] sm:$0xff] %v5768_v38 }
 0x707   : > { %v5771_v25 = vpop.f32.mrf.mxu1 }
 0x709   : > { %v5773_v61 = vpop.f32.mrf.mxu1 }
 0x70b   : > { %v5777_v23 = vpop.f32.mrf.mxu1 }
 0x70d   : > { %v5779_v35 = vpop.f32.mrf.mxu1 }
 0x70f   : > { %v5783_v59 = vpop.f32.mrf.mxu1 }
 0x711   : > { %v5785_v44 = vpop.f32.mrf.mxu1 }
 0x713   : > { %v5789_v1 = vpop.f32.mrf.mxu1 }
 0x715   : > { %v5791_v34 = vpop.f32.mrf.mxu1 }
 0x717   : > { %v5795_v49 = vpop.f32.mrf.mxu1 }
 0x719   : > { %v5797_v10 = vpop.f32.mrf.mxu1 }
 0x71b   : > { %v5658_v40 = vpop.f32.mrf.mxu0  ;;  %v10281_v30 = vpop.f32.mrf.mxu1 }
 0x71c   : > { %v5659_v27 = vadd.f32 %v5658_v40, %v10264_v29 }
 0x71d   : > { %v5660_v56 = vpop.f32.mrf.mxu0  ;;  %v10284_v20 = vpop.f32.mrf.mxu1 }
 0x71e   : > { %v5772_v0 = vadd.f32 %v5771_v25, %v5659_v27  ;;  %v5661_v55 = vadd.f32 %v5660_v56, %v10267_v21 }
 0x720   : > { %6022 = vst [vmem:[%s10274_s23 + $0x30] sm:$0xff] %v5772_v0  ;;  %v5774_v43 = vadd.f32 %v5773_v61, %v5661_v55  ;;  %v6762_v32 = vpop.f32.mrf.mxu1 }
 0x722   : > { %6023 = vst [vmem:[%s10274_s23 + $0x38] sm:$0xff] %v5774_v43  ;;  %v6763_v42 = vpop.f32.mrf.mxu1 }
 0x723   : > { %v5664_v8 = vpop.f32.mrf.mxu0  ;;  %v6764_v61 = vadd.f32 %v6763_v42, %v6762_v32 }
 0x724   : > { %v5665_v31 = vadd.f32 %v5664_v8, %v10264_v29  ;;  %v6765_v39 = vpop.f32.mrf.mxu1 }
 0x725   : > { %v5666_v53 = vpop.f32.mrf.mxu0 }
 0x726   : > { %v5778_v16 = vadd.f32 %v5777_v23, %v5665_v31  ;;  %v5667_v36 = vadd.f32 %v5666_v53, %v10267_v21  ;;  %v6766_v7 = vpop.f32.mrf.mxu1 }
 0x727   : > { %v6767_v9 = vadd.f32 %v6766_v7, %v6765_v39 }
 0x728   : > { %6025 = vst [vmem:[%s10274_s23 + $0x48] sm:$0xff] %v5778_v16  ;;  %v5780_v15 = vadd.f32 %v5779_v35, %v5667_v36  ;;  %v6768_v41 = vpop.f32.mrf.mxu1  ;;  %v5576_v35 = vrot.slane %v10260_v11, %v5575_v13 }
 0x72a   : > { %6026 = vst [vmem:[%s10274_s23 + $0x50] sm:$0xff] %v5780_v15  ;;  %v6769_v63 = vpop.f32.mrf.mxu1  ;;  %v5873_v43 = vadd.f32 %v6764_v61, %v5576_v35 }
 0x72b   : > { %v5670_v45 = vpop.f32.mrf.mxu0  ;;  %v6770_v0 = vadd.f32 %v6769_v63, %v6768_v41 }
 0x72c   : > { %v5671_v5 = vadd.f32 %v5670_v45, %v10264_v29  ;;  %v6771_v2 = vpop.f32.mrf.mxu1 }
 0x72d   : > { %v5672_v28 = vpop.f32.mrf.mxu0  ;;  %v5883_v15 = vadd.f32 %v6770_v0, %v5576_v35 }
 0x72e   : > { %v5784_v58 = vadd.f32 %v5783_v59, %v5671_v5  ;;  %v5673_v62 = vadd.f32 %v5672_v28, %v10267_v21  ;;  %v6772_v57 = vpop.f32.mrf.mxu1 }
 0x72f   : > { %v6773_v60 = vadd.f32 %v6772_v57, %v6771_v2 }
 0x730   : > { %6028 = vst [vmem:[%s10274_s23 + $0x60] sm:$0xff] %v5784_v58  ;;  %v5786_v52 = vadd.f32 %v5785_v44, %v5673_v62  ;;  %v6774_v19 = vpop.f32.mrf.mxu1 }
 0x731   : > { %v5888_v39 = vadd.f32 %v6773_v60, %v5576_v35 }
 0x732   : > { %6029 = vst [vmem:[%s10274_s23 + $0x68] sm:$0xff] %v5786_v52  ;;  %v6775_v48 = vpop.f32.mrf.mxu1 }
 0x733   : > { %v5676_v50 = vpop.f32.mrf.mxu0  ;;  %v6776_v59 = vadd.f32 %v6775_v48, %v6774_v19 }
 0x734   : > { %v5677_v51 = vadd.f32 %v5676_v50, %v10264_v29  ;;  %v6777_v12 = vpop.f32.mrf.mxu1 }
 0x735   : > { %v5678_v3 = vpop.f32.mrf.mxu0 }
 0x736   : > { %v5790_v47 = vadd.f32 %v5789_v1, %v5677_v51  ;;  %v5679_v14 = vadd.f32 %v5678_v3, %v10267_v21  ;;  %v6778_v18 = vpop.f32.mrf.mxu1 }
 0x737   : > { %v6779_v24 = vadd.f32 %v6778_v18, %v6777_v12 }
 0x738   : > { %6031 = vst [vmem:[%s10274_s23 + $0x78] sm:$0xff] %v5790_v47  ;;  %v5792_v54 = vadd.f32 %v5791_v34, %v5679_v14 }
 0x739   : > { %v5682_v26 = vpop.f32.mrf.mxu0  ;;  %v6780_v33 = vpop.f32.mrf.mxu1  ;;  %v5898_v56 = vadd.f32 %v6779_v24, %v5576_v35 }
 0x73a   : > { %6032 = vst [vmem:[%s10274_s23 + $0x80] sm:$0xff] %v5792_v54  ;;  %v5683_v4 = vadd.f32 %v5682_v26, %v10264_v29 }
 0x73b   : > { %v5684_v37 = vpop.f32.mrf.mxu0  ;;  %v6781_v46 = vpop.f32.mrf.mxu1 }
 0x73c   : > { %v5796_v6 = vadd.f32 %v5795_v49, %v5683_v4  ;;  %v5685_v22 = vadd.f32 %v5684_v37, %v10267_v21 }
 0x73e   : > { %6034 = vst [vmem:[%s10274_s23 + $0x90] sm:$0xff] %v5796_v6  ;;  %v5798_v17 = vadd.f32 %v5797_v10, %v5685_v22  ;;  %v5688_v38 = vpop.f32.mrf.mxu0  ;;  %v6783_v25 = vpop.f32.mrf.mxu1  ;;  %v5878_v10 = vadd.f32 %v6767_v9, %v5576_v35 }
 0x73f   : > { %v5689_v23 = vadd.f32 %v5688_v38, %v10264_v29 }
 0x740   : > { %6035 = vst [vmem:[%s10274_s23 + $0x98] sm:$0xff] %v5798_v17  ;;  %v5690_v44 = vpop.f32.mrf.mxu0  ;;  %v6784_v1 = vpop.f32.mrf.mxu1 }
 0x741   : > { %v5802_v34 = vadd.f32 %v10281_v30, %v5689_v23  ;;  %v5691_v49 = vadd.f32 %v5690_v44, %v10267_v21  ;;  %v6785_v40 = vadd.f32 %v6784_v1, %v6783_v25  ;;  %v6782_v30 = vadd.f32 %v6781_v46, %v6780_v33 }
 0x742   : > { %v7392_v27 = vpop.f32.mrf.mxu0  ;;  %v5893_v21 = vadd.f32 %v6776_v59, %v5576_v35 }
 0x743   : > { %6037 = vst [vmem:[%s10274_s23 + $0xa8] sm:$0xff] %v5802_v34  ;;  %v5804_v11 = vadd.f32 %v10284_v20, %v5691_v49  ;;  %v5983_v29 = vadd.f32 %v7392_v27, %v5878_v10  ;;  %v7398_v55 = vpop.f32.mrf.mxu1  ;;  %v5908_v16 = vadd.f32 %v6785_v40, %v5576_v35  ;;  %v5903_v45 = vadd.f32 %v6782_v30, %v5576_v35 }
 0x744   : > { %v6003_v32 = vadd.f32 %v7398_v55, %v5898_v56  ;;  %v5977_v42 = vpop.f32.mrf.mxu0 }
 0x745   : > { %6038 = vst [vmem:[%s10274_s23 + $0xb0] sm:$0xff] %v5804_v11  ;;  %6021 = vst [vmem:[%s10274_s23 + $0x28] sm:$0xff] %v5983_v29  ;;  %v5978_v8 = vadd.f32 %v5977_v42, %v5873_v43  ;;  %v5997_v31 = vpop.f32.mrf.mxu1 }
 0x746   : > { %6033 = vst [vmem:[%s10274_s23 + $0x88] sm:$0xff] %v6003_v32  ;;  %v5998_v53 = vadd.f32 %v5997_v31, %v5893_v21  ;;  %v7395_v20 = vpop.f32.mrf.mxu0 }
 0x747   : > { %6018 = vst [vmem:[%s10274_s23 + $0x10] sm:$0xff] %v5978_v8  ;;  %v5993_v36 = vadd.f32 %v7395_v20, %v5888_v39  ;;  %v7401_v7 = vpop.f32.mrf.mxu1 }
 0x748   : > { %6030 = vst [vmem:[%s10274_s23 + $0x70] sm:$0xff] %v5998_v53  ;;  %v6013_v41 = vadd.f32 %v7401_v7, %v5908_v16  ;;  %v5987_v63 = vpop.f32.mrf.mxu0 }
 0x749   : > { %6027 = vst [vmem:[%s10274_s23 + $0x58] sm:$0xff] %v5993_v36  ;;  %v5988_v5 = vadd.f32 %v5987_v63, %v5883_v15  ;;  %v6007_v2 = vpop.f32.mrf.mxu1 }
 0x74a   : > { %6039 = vst [vmem:[%s10274_s23 + $0xb8] sm:$0xff] %v6013_v41  ;;  %v6008_v28 = vadd.f32 %v6007_v2, %v5903_v45 }
 0x74b   : > { %6024 = vst [vmem:[%s10274_s23 + $0x40] sm:$0xff] %v5988_v5 }
 0x74c   : > { %6036 = vst [vmem:[%s10274_s23 + $0xa0] sm:$0xff] %v6008_v28 }
 0x74d   : > { %7862 = shalt.err (!%p7859_p9)
}
 0x74e   : > { %s7863_s24 = scalar_lea.hbm %s10323_s25, 3072  ;;  %s7867_s7 = scalar_lea.hbm %s10375_s4, 6144 }
 0x74f   : > { %p7864_p7 = scmp.ne.s32.totalorder %s10323_s25, %s7863_s24  ;;  %p7868_p6 = scmp.lt.s32.totalorder %s10323_s25, %s10375_s4 }
 0x750   : > { %p7869_p3 = scmp.lt.s32.totalorder %s7867_s7, %s7863_s24 }
 0x751   : > { %p7865_p4 = pnand %p7864_p7, %p10542_p0 }
 0x752   : > { %p7870_p13 = por %p7869_p3, %p7868_p6 }
 0x753   : > { %p7866_p8 = pneg %p7865_p4 }
 0x755   : > { %p7871_p12 = pnand %p7870_p13, %p7866_p8 }
 0x757   : > { %7874 = shalt.err (!%p7871_p12)
}
 0x758   : > { %s7936_s23 = smov 384   ;;  %s7937_s9 = smov 24  }
 0x759   : > { %7452 = dma.vmem_to_hbm [thread:$0]  (%p10542_p0), %s10325_s10, 3072, %s10323_s25, %s6041_s27, %s7936_s23, %s7936_s23, %s7937_s9  }
 0x75a PF: > { %s6069_s19 = sand.u32 1, %s7909_s15   ;;  %p10543_p5 = scmp.ne.s32.totalorder %s10413_s22, 0 }
 0x75b   : > { %p10544_p10 = scmp.ge.s32.totalorder %s7921_s18, 2  ;;  %s6070_s14 = scalar_lea.sflag [#allocation6], %s6069_s19 }
 0x75d   : > { %p7469_p1 = pnand %p10544_p10, %p10543_p5 }
 0x75f   : > { %p7470_p2 = pneg %p7469_p1 }
 0x761   : > { %7904 = dma.done.wait (%p7470_p2), %s6070_s14, 3072  }
 0x762   : > { %7906 = vsyncadd (%p7470_p2), %s6070_s14, 4294964224  ;;  %p19_p11 = scmp.ge.s32.totalorder %s8038_s20, 4   ;;  %s10545_s15 = smov %s7913_s16 }
 0x763   : > { %s10546_s16 = smov %s7917_s17  ;;  %s10547_s17 = smov %s8056_s26 }
 0x764   : > { %s10548_s18 = smov %s8038_s20  ;;  %21 = sbr.rel (!%p19_p11) target bundleno = 7 (0x7), region = 93 }
 0x769   :  { %6075 = vsyncpa [#allocation5], 1 }
 0x76a   :  { %6077 = vsyncpa [#allocation5 + $0x1], 1 }
 0x76b   :  { %6078 = vsyncpa [#allocation8], 1 }
 0x76c   :  { %6079 = vsyncpa [#allocation11], 1 }
 0x76d   :  { %6080 = vsyncpa [#allocation6], 1 }
 0x76e   :  { %6082 = vsyncpa [#allocation6 + $0x1], 1 }

</bundles_post_ra>
